<compile_context>
chip_gen: v7x
topology: tpu7x:2x2x1
jax: 0.10.0
libtpu: 0.0.40
codegen_flags: <defaults>
</compile_context>

<pallas_src>
import functools

import jax
import jax.numpy as jnp
from jax import lax
from jax.experimental import pallas as pl
from jax.experimental.pallas import tpu as pltpu


# ----------------------------------------------------------------------------
# In-kernel helpers
# ----------------------------------------------------------------------------
def _mm(a, w_bf16):
    """MXU matmul: activations cast to bf16, weights already bf16, f32 accum."""
    return jnp.dot(a.astype(jnp.bfloat16), w_bf16,
                   preferred_element_type=jnp.float32)


def _layernorm(x, g, b, eps):
    x = x.astype(jnp.float32)
    mu = jnp.mean(x, axis=-1, keepdims=True)
    var = jnp.mean(jnp.square(x - mu), axis=-1, keepdims=True)
    return (x - mu) * lax.rsqrt(var + eps) * g + b


# ----------------------------------------------------------------------------
# Fused whole-model kernel (Bt batch elements per grid step, tokens kept flat)
# ----------------------------------------------------------------------------
def _fused_vit_kernel(patches_ref, pw_ref, off_ref, segb_ref, sel_ref,
                      ln1_g_ref, ln1_b_ref,
                      wq_ref, wk_ref, wv_ref, bq_ref, bk_ref, bv_ref,
                      wproj_ref, proj_b_ref, ln2_g_ref, ln2_b_ref,
                      fc1_w_ref, fc1_b_ref, fc2_w_ref, fc2_b_ref,
                      norm_g_ref, norm_b_ref,
                      ha_w_ref, hln_g_ref, hln_b_ref,
                      hfc1_w_ref, hfc1_b_ref, hfc2_w_ref, hfc2_b_ref,
                      out_ref, *, depth, heads, scale):
    # --- patch embedding: Conv2d(kernel=stride=patch) == per-patch matmul ----
    # patches row 0 of each element is zeros (CLS slot); off = pos + [cls ;
    # patch_bias rows] tiled over the Bt elements of this chunk.
    patches = patches_ref[0]                                      # (M, Cpp) bf16
    tok = jnp.dot(patches, pw_ref[...],
                  preferred_element_type=jnp.float32) + off_ref[...]   # (M, D)
    M, D = tok.shape
    seg_bias = segb_ref[...]        # (M, M) additive block-diagonal mask (0 / -1e9)

    # --- transformer encoder blocks (statically unrolled, VMEM-resident) -----
    for d in range(depth):
        h = _layernorm(tok, ln1_g_ref[d], ln1_b_ref[d], 1e-6)
        hb = h.astype(jnp.bfloat16)
        attn = jnp.zeros((M, D), jnp.float32)
        # Per-head weights were split on the host, so no activation lane-slices.
        for hd in range(heads):
            i = d * heads + hd
            qh = jnp.dot(hb, wq_ref[i], preferred_element_type=jnp.float32) + bq_ref[i]
            kh = jnp.dot(hb, wk_ref[i], preferred_element_type=jnp.float32) + bk_ref[i]
            vh = jnp.dot(hb, wv_ref[i], preferred_element_type=jnp.float32) + bv_ref[i]
            s = lax.dot_general(qh.astype(jnp.bfloat16), kh.astype(jnp.bfloat16),
                                (((1,), (1,)), ((), ())),
                                preferred_element_type=jnp.float32)
            s = s * scale + seg_bias            # mask cross-element pairs
            s = s - jnp.max(s, axis=-1, keepdims=True)
            p = jnp.exp(s)
            p = p * pl.reciprocal(jnp.sum(p, axis=-1, keepdims=True), approx=True)
            ah = jnp.dot(p.astype(jnp.bfloat16), vh.astype(jnp.bfloat16),
                         preferred_element_type=jnp.float32)      # (M, dh)
            attn = attn + jnp.dot(ah.astype(jnp.bfloat16), wproj_ref[i],
                                  preferred_element_type=jnp.float32)
        tok = tok + attn + proj_b_ref[d]

        h = _layernorm(tok, ln2_g_ref[d], ln2_b_ref[d], 1e-6)
        # TODO(synk): timm ViT uses exact (erf) GELU; tanh approximation here.
        m = jax.nn.gelu(_mm(h, fc1_w_ref[d]) + fc1_b_ref[d], approximate=True)
        tok = tok + _mm(m, fc2_w_ref[d]) + fc2_b_ref[d]

    # --- final backbone norm -> tokens = vit.forward_features(x) -------------
    tokens = _layernorm(tok, norm_g_ref[...], norm_b_ref[...], 1e-6)
    # TODO(synk): tokens.register_hook(self.save_tokens_grad) is backward-only.

    # --- EnhancedViT head: attention pooling over each element's tokens ------
    # The pooling Linear's bias cancels inside the softmax (shift-invariant),
    # so it is not passed to the kernel.
    scores = jnp.dot(tokens, ha_w_ref[...],
                     preferred_element_type=jnp.float32)          # (M, 1) f32
    e = jnp.exp(scores - jnp.max(scores, axis=0, keepdims=True))  # (M, 1)
    sel = sel_ref[...]                                            # (Bt, M) 0/1
    num = jnp.dot(sel, e * tokens, preferred_element_type=jnp.float32)   # (Bt, D)
    den = jnp.dot(sel, e, preferred_element_type=jnp.float32)            # (Bt, 1)
    feat = num * pl.reciprocal(den, approx=True)                         # (Bt, D)

    feat = _layernorm(feat, hln_g_ref[...], hln_b_ref[...], 1e-5)
    hid = jnp.maximum(_mm(feat, hfc1_w_ref[...]) + hfc1_b_ref[...], 0.0)
    logits = _mm(hid, hfc2_w_ref[...]) + hfc2_b_ref[...]          # (Bt, NCLS_PAD)
    out_ref[0] = logits.astype(out_ref.dtype)


# ----------------------------------------------------------------------------
# Wrapper: layout glue in JAX, all compute in the fused Pallas kernel
# ----------------------------------------------------------------------------
def _fs(shape):
    """Full-array (weight-resident) BlockSpec: constant index map."""
    n = len(shape)
    return pl.BlockSpec(shape, lambda i, n=n: (0,) * n)


def _split_heads_w(w, heads):
    """(depth, D, D_out) -> (depth*heads, D, dh) bf16 (columns split per head)."""
    depth, d_in, d_out = w.shape
    dh = d_out // heads
    return (w.reshape(depth, d_in, heads, dh).transpose(0, 2, 1, 3)
             .reshape(depth * heads, d_in, dh).astype(jnp.bfloat16))


def _split_heads_b(b, heads):
    """(depth, 1, D_out) -> (depth*heads, 1, dh) f32."""
    depth = b.shape[0]
    dh = b.shape[-1] // heads
    return b.reshape(depth * heads, 1, dh)


def _split_heads_proj(w, heads):
    """(depth, D, D) -> (depth*heads, dh, D) bf16 (rows split per head)."""
    depth, d_in, d_out = w.shape
    dh = d_in // heads
    return w.reshape(depth * heads, dh, d_out).astype(jnp.bfloat16)


def enhanced_vit_forward(params, x, *, patch, heads, n_classes, bt):
    # layout: x is NCHW (B, C, H, W), same as PyTorch.
    B, C, H, W = x.shape
    gh, gw = H // patch, W // patch
    Np = gh * gw
    Cpp = C * patch * patch
    D = params["patch_w"].shape[1]
    depth = params["qkv_w"].shape[0]
    dh = D // heads
    scale = dh ** -0.5
    N = Np + 1
    mlp = params["fc1_w"].shape[2]
    ch = params["hfc1_w"].shape[1]
    ncp = params["hfc2_w"].shape[1]     # lane-padded number of classes
    assert B % bt == 0
    nchunk = B // bt
    Mrows = bt * N

    # --- patch extraction (pure reshape/transpose glue) -----------------------
    patches = x.reshape(B, C, gh, patch, gw, patch).transpose(0, 2, 4, 1, 3, 5)
    patches = patches.reshape(B, Np, Cpp)
    # Row 0 of each element is a zero "CLS slot" so the patch matmul covers all
    # N token rows; chunks of Bt elements are flattened to (Bt*N, Cpp).
    patches_full = jnp.concatenate(
        [jnp.zeros((B, 1, Cpp), jnp.float32), patches], axis=1)   # (B, N, Cpp)
    patches_chunks = (patches_full.reshape(nchunk, Mrows, Cpp)
                      .astype(jnp.bfloat16))

    # Per-token additive offset: pos + [cls ; patch_bias], tiled over Bt.
    bias_rows = jnp.concatenate(
        [params["cls"], jnp.broadcast_to(params["patch_b"][None, :], (Np, D))],
        axis=0)
    tok_off = jnp.tile(params["pos"] + bias_rows, (bt, 1))        # (Bt*N, D) f32

    # Block-diagonal attention mask + pooling segment selector (host constants).
    seg_id = jnp.repeat(jnp.arange(bt), N)                        # (Bt*N,)
    same = seg_id[:, None] == seg_id[None, :]
    seg_bias = jnp.where(same, 0.0, -1e9).astype(jnp.float32)     # (M, M)
    sel = (jnp.arange(bt)[:, None] == seg_id[None, :]).astype(jnp.float32)

    # Per-head weight splits (host-side layout prep), bf16 weights for the MXU.
    wq = _split_heads_w(params["qkv_w"][:, :, 0:D], heads)
    wk = _split_heads_w(params["qkv_w"][:, :, D:2 * D], heads)
    wv = _split_heads_w(params["qkv_w"][:, :, 2 * D:3 * D], heads)
    bq = _split_heads_b(params["qkv_b"][:, :, 0:D], heads)
    bk = _split_heads_b(params["qkv_b"][:, :, D:2 * D], heads)
    bv = _split_heads_b(params["qkv_b"][:, :, 2 * D:3 * D], heads)
    wproj = _split_heads_proj(params["proj_w"], heads)
    patch_w = params["patch_w"].astype(jnp.bfloat16)
    fc1_w = params["fc1_w"].astype(jnp.bfloat16)
    fc2_w = params["fc2_w"].astype(jnp.bfloat16)
    hfc1_w = params["hfc1_w"].astype(jnp.bfloat16)
    hfc2_w = params["hfc2_w"].astype(jnp.bfloat16)
    # params["attn_b"] is intentionally unused: softmax(scores + c) == softmax(scores).

    kern = functools.partial(_fused_vit_kernel, depth=depth, heads=heads,
                             scale=scale)

    in_specs = [
        pl.BlockSpec((1, Mrows, Cpp), lambda i: (i, 0, 0)),   # per-chunk patches
        _fs((Cpp, D)),                                        # patch_w
        _fs((Mrows, D)),                                      # tok_off (pos/cls/bias)
        _fs((Mrows, Mrows)),                                  # block-diag attn mask
        _fs((bt, Mrows)),                                     # pooling selector
        _fs((depth, 1, D)), _fs((depth, 1, D)),               # ln1 g/b
        _fs((depth * heads, D, dh)),                          # wq
        _fs((depth * heads, D, dh)),                          # wk
        _fs((depth * heads, D, dh)),                          # wv
        _fs((depth * heads, 1, dh)),                          # bq
        _fs((depth * heads, 1, dh)),                          # bk
        _fs((depth * heads, 1, dh)),                          # bv
        _fs((depth * heads, dh, D)),                          # wproj (per head)
        _fs((depth, 1, D)),                                   # proj_b
        _fs((depth, 1, D)), _fs((depth, 1, D)),               # ln2 g/b
        _fs((depth, D, mlp)), _fs((depth, 1, mlp)),           # mlp fc1 w/b
        _fs((depth, mlp, D)), _fs((depth, 1, D)),             # mlp fc2 w/b
        _fs((1, D)), _fs((1, D)),                             # final norm g/b
        _fs((D, 1)),                                          # head attn w (bias dropped)
        _fs((1, D)), _fs((1, D)),                             # head LN g/b
        _fs((D, ch)), _fs((1, ch)),                           # head fc1 w/b
        _fs((ch, ncp)), _fs((1, ncp)),                        # head fc2 w/b (padded)
    ]

    out = pl.pallas_call(
        kern,
        out_shape=jax.ShapeDtypeStruct((nchunk, bt, ncp), jnp.float32),
        grid=(nchunk,),
        in_specs=in_specs,
        out_specs=pl.BlockSpec((1, bt, ncp), lambda i: (i, 0, 0)),
        compiler_params=pltpu.CompilerParams(
            dimension_semantics=("parallel",),
            vmem_limit_bytes=32 * 1024 * 1024),
    )(patches_chunks, patch_w, tok_off, seg_bias, sel,
      params["ln1_g"], params["ln1_b"],
      wq, wk, wv, bq, bk, bv, wproj, params["proj_b"],
      params["ln2_g"], params["ln2_b"],
      fc1_w, params["fc1_b"], fc2_w, params["fc2_b"],
      params["norm_g"], params["norm_b"],
      params["attn_w"],
      params["cls_ln_g"], params["cls_ln_b"],
      hfc1_w, params["hfc1_b"], hfc2_w, params["hfc2_b"])

    return out.reshape(B, ncp)[:, :n_classes]


# ----------------------------------------------------------------------------
# Deterministic synthetic parameters (shapes implied by the module __init__)
# ----------------------------------------------------------------------------
def init_params(key, *, C, patch, D, depth, mlp_hidden, n_tokens,
                cls_hidden, n_classes, n_classes_pad):
    def normal(k, shape, scale=0.02):
        return scale * jax.random.normal(k, shape, dtype=jnp.float32)

    ks = iter(jax.random.split(key, 16))
    Cpp = C * patch * patch
    p = {
        # Conv2d(C, D, patch, stride=patch) weight reshaped to (C*p*p, D)
        "patch_w": normal(next(ks), (Cpp, D)),
        "patch_b": jnp.zeros((D,), jnp.float32),
        "cls": normal(next(ks), (1, D)),
        "pos": normal(next(ks), (n_tokens, D)),
        # transformer blocks, stacked over depth
        "ln1_g": jnp.ones((depth, 1, D), jnp.float32),
        "ln1_b": jnp.zeros((depth, 1, D), jnp.float32),
        "qkv_w": normal(next(ks), (depth, D, 3 * D)),
        "qkv_b": jnp.zeros((depth, 1, 3 * D), jnp.float32),
        "proj_w": normal(next(ks), (depth, D, D)),
        "proj_b": jnp.zeros((depth, 1, D), jnp.float32),
        "ln2_g": jnp.ones((depth, 1, D), jnp.float32),
        "ln2_b": jnp.zeros((depth, 1, D), jnp.float32),
        "fc1_w": normal(next(ks), (depth, D, mlp_hidden)),
        "fc1_b": jnp.zeros((depth, 1, mlp_hidden), jnp.float32),
        "fc2_w": normal(next(ks), (depth, mlp_hidden, D)),
        "fc2_b": jnp.zeros((depth, 1, D), jnp.float32),
        # final backbone norm
        "norm_g": jnp.ones((1, D), jnp.float32),
        "norm_b": jnp.zeros((1, D), jnp.float32),
        # EnhancedViT head
        "attn_w": normal(next(ks), (D, 1)),     # nn.Linear(D, 1).weight.T
        "attn_b": jnp.zeros((1, 1), jnp.float32),  # cancels in softmax (unused)
        "cls_ln_g": jnp.ones((1, D), jnp.float32),
        "cls_ln_b": jnp.zeros((1, D), jnp.float32),
        "hfc1_w": normal(next(ks), (D, cls_hidden)),
        "hfc1_b": jnp.zeros((1, cls_hidden), jnp.float32),
    }
    # classifier output zero-padded to a lane-dense width; extra logits are 0
    fc2 = normal(next(ks), (cls_hidden, n_classes))
    p["hfc2_w"] = jnp.pad(fc2, ((0, 0), (0, n_classes_pad - n_classes)))
    p["hfc2_b"] = jnp.zeros((1, n_classes_pad), jnp.float32)
    return p


# ----------------------------------------------------------------------------
if __name__ == "__main__":
    # Small config consistent with the module's forward semantics:
    # ViT-style backbone with embed_dim=32, 4 heads, depth=2, patch=8 on a
    # 16x16 RGB image -> 4 patches + CLS = 5 tokens; MLP hidden = 4*D = 128;
    # head hidden = 128; 2 classes (padded to 128 lanes inside the kernel).
    # Batch 4 processed as 2 chunks of Bt=2 elements (grid=(2,) -> both v7x TCs).
    B, BT, C, IMG, PATCH = 4, 2, 3, 16, 8
    D, HEADS, DEPTH = 32, 4, 2
    MLP_HIDDEN = 4 * D
    CLS_HIDDEN = 128
    N_CLASSES, N_CLASSES_PAD = 2, 128
    n_tokens = (IMG // PATCH) ** 2 + 1

    key = jax.random.PRNGKey(0)
    pkey, xkey = jax.random.split(key)
    params = init_params(pkey, C=C, patch=PATCH, D=D, depth=DEPTH,
                         mlp_hidden=MLP_HIDDEN, n_tokens=n_tokens,
                         cls_hidden=CLS_HIDDEN, n_classes=N_CLASSES,
                         n_classes_pad=N_CLASSES_PAD)
    x = jax.random.normal(xkey, (B, C, IMG, IMG), dtype=jnp.float32)

    fwd = jax.jit(functools.partial(enhanced_vit_forward, patch=PATCH,
                                    heads=HEADS, n_classes=N_CLASSES, bt=BT))
    out = fwd(params, x)
    jax.block_until_ready(out)
    assert out.shape == (B, N_CLASSES) and out.dtype == jnp.float32
    print("KERNEL_OK")
</pallas_src>

<mosaic_0001>
module attributes {stable_mosaic.version = 11 : i64} {
  func.func @_fused_vit_kernel(%arg0: i32, %arg1: memref<1x10x192xbf16, #tpu.memory_space<vmem>>, %arg2: memref<192x32xbf16, #tpu.memory_space<vmem>>, %arg3: memref<10x32xf32, #tpu.memory_space<vmem>>, %arg4: memref<10x10xf32, #tpu.memory_space<vmem>>, %arg5: memref<2x10xf32, #tpu.memory_space<vmem>>, %arg6: memref<2x1x32xf32, #tpu.memory_space<vmem>>, %arg7: memref<2x1x32xf32, #tpu.memory_space<vmem>>, %arg8: memref<8x32x8xbf16, #tpu.memory_space<vmem>>, %arg9: memref<8x32x8xbf16, #tpu.memory_space<vmem>>, %arg10: memref<8x32x8xbf16, #tpu.memory_space<vmem>>, %arg11: memref<8x1x8xf32, #tpu.memory_space<vmem>>, %arg12: memref<8x1x8xf32, #tpu.memory_space<vmem>>, %arg13: memref<8x1x8xf32, #tpu.memory_space<vmem>>, %arg14: memref<8x8x32xbf16, #tpu.memory_space<vmem>>, %arg15: memref<2x1x32xf32, #tpu.memory_space<vmem>>, %arg16: memref<2x1x32xf32, #tpu.memory_space<vmem>>, %arg17: memref<2x1x32xf32, #tpu.memory_space<vmem>>, %arg18: memref<2x32x128xbf16, #tpu.memory_space<vmem>>, %arg19: memref<2x1x128xf32, #tpu.memory_space<vmem>>, %arg20: memref<2x128x32xbf16, #tpu.memory_space<vmem>>, %arg21: memref<2x1x32xf32, #tpu.memory_space<vmem>>, %arg22: memref<1x32xf32, #tpu.memory_space<vmem>>, %arg23: memref<1x32xf32, #tpu.memory_space<vmem>>, %arg24: memref<32x1xf32, #tpu.memory_space<vmem>>, %arg25: memref<1x32xf32, #tpu.memory_space<vmem>>, %arg26: memref<1x32xf32, #tpu.memory_space<vmem>>, %arg27: memref<32x128xbf16, #tpu.memory_space<vmem>>, %arg28: memref<1x128xf32, #tpu.memory_space<vmem>>, %arg29: memref<128x128xbf16, #tpu.memory_space<vmem>>, %arg30: memref<1x128xf32, #tpu.memory_space<vmem>>, %arg31: memref<1x2x128xf32, #tpu.memory_space<vmem>>) attributes {dimension_semantics = [#tpu.dimension_semantics<parallel>], iteration_bounds = array<i64: 2>, scalar_prefetch = 0 : i64, scratch_operands = 0 : i64, tpu.core_type = #tpu.core_type<tc>, window_params = [{transform_indices = @transform_0, window_bounds = array<i64: 1, 10, 192>}, {pipeline_mode = #tpu.pipeline_mode<synchronous>, transform_indices = @transform_1, window_bounds = array<i64: 192, 32>}, {pipeline_mode = #tpu.pipeline_mode<synchronous>, transform_indices = @transform_2, window_bounds = array<i64: 10, 32>}, {pipeline_mode = #tpu.pipeline_mode<synchronous>, transform_indices = @transform_3, window_bounds = array<i64: 10, 10>}, {pipeline_mode = #tpu.pipeline_mode<synchronous>, transform_indices = @transform_4, window_bounds = array<i64: 2, 10>}, {pipeline_mode = #tpu.pipeline_mode<synchronous>, transform_indices = @transform_5, window_bounds = array<i64: 2, 1, 32>}, {pipeline_mode = #tpu.pipeline_mode<synchronous>, transform_indices = @transform_6, window_bounds = array<i64: 2, 1, 32>}, {pipeline_mode = #tpu.pipeline_mode<synchronous>, transform_indices = @transform_7, window_bounds = array<i64: 8, 32, 8>}, {pipeline_mode = #tpu.pipeline_mode<synchronous>, transform_indices = @transform_8, window_bounds = array<i64: 8, 32, 8>}, {pipeline_mode = #tpu.pipeline_mode<synchronous>, transform_indices = @transform_9, window_bounds = array<i64: 8, 32, 8>}, {pipeline_mode = #tpu.pipeline_mode<synchronous>, transform_indices = @transform_10, window_bounds = array<i64: 8, 1, 8>}, {pipeline_mode = #tpu.pipeline_mode<synchronous>, transform_indices = @transform_11, window_bounds = array<i64: 8, 1, 8>}, {pipeline_mode = #tpu.pipeline_mode<synchronous>, transform_indices = @transform_12, window_bounds = array<i64: 8, 1, 8>}, {pipeline_mode = #tpu.pipeline_mode<synchronous>, transform_indices = @transform_13, window_bounds = array<i64: 8, 8, 32>}, {pipeline_mode = #tpu.pipeline_mode<synchronous>, transform_indices = @transform_14, window_bounds = array<i64: 2, 1, 32>}, {pipeline_mode = #tpu.pipeline_mode<synchronous>, transform_indices = @transform_15, window_bounds = array<i64: 2, 1, 32>}, {pipeline_mode = #tpu.pipeline_mode<synchronous>, transform_indices = @transform_16, window_bounds = array<i64: 2, 1, 32>}, {pipeline_mode = #tpu.pipeline_mode<synchronous>, transform_indices = @transform_17, window_bounds = array<i64: 2, 32, 128>}, {pipeline_mode = #tpu.pipeline_mode<synchronous>, transform_indices = @transform_18, window_bounds = array<i64: 2, 1, 128>}, {pipeline_mode = #tpu.pipeline_mode<synchronous>, transform_indices = @transform_19, window_bounds = array<i64: 2, 128, 32>}, {pipeline_mode = #tpu.pipeline_mode<synchronous>, transform_indices = @transform_20, window_bounds = array<i64: 2, 1, 32>}, {pipeline_mode = #tpu.pipeline_mode<synchronous>, transform_indices = @transform_21, window_bounds = array<i64: 1, 32>}, {pipeline_mode = #tpu.pipeline_mode<synchronous>, transform_indices = @transform_22, window_bounds = array<i64: 1, 32>}, {pipeline_mode = #tpu.pipeline_mode<synchronous>, transform_indices = @transform_23, window_bounds = array<i64: 32, 1>}, {pipeline_mode = #tpu.pipeline_mode<synchronous>, transform_indices = @transform_24, window_bounds = array<i64: 1, 32>}, {pipeline_mode = #tpu.pipeline_mode<synchronous>, transform_indices = @transform_25, window_bounds = array<i64: 1, 32>}, {pipeline_mode = #tpu.pipeline_mode<synchronous>, transform_indices = @transform_26, window_bounds = array<i64: 32, 128>}, {pipeline_mode = #tpu.pipeline_mode<synchronous>, transform_indices = @transform_27, window_bounds = array<i64: 1, 128>}, {pipeline_mode = #tpu.pipeline_mode<synchronous>, transform_indices = @transform_28, window_bounds = array<i64: 128, 128>}, {pipeline_mode = #tpu.pipeline_mode<synchronous>, transform_indices = @transform_29, window_bounds = array<i64: 1, 128>}, {transform_indices = @transform_30, window_bounds = array<i64: 1, 2, 128>}]} {
    %c0 = arith.constant 0 : index
    %c0_0 = arith.constant 0 : index
    %c0_1 = arith.constant 0 : index
    %0 = vector.load %arg1[%c0, %c0_0, %c0_1] : memref<1x10x192xbf16, #tpu.memory_space<vmem>>, vector<1x10x192xbf16>
    %1 = vector.shape_cast %0 : vector<1x10x192xbf16> to vector<10x192xbf16>
    %c0_2 = arith.constant 0 : index
    %c0_3 = arith.constant 0 : index
    %2 = vector.load %arg2[%c0_2, %c0_3] : memref<192x32xbf16, #tpu.memory_space<vmem>>, vector<192x32xbf16>
    %cst = arith.constant dense<0.000000e+00> : vector<10x32xf32>
    %3 = tpu.matmul %1, %2, %cst {dimension_numbers = #tpu.dot_dimension_numbers<[1], [0], [0], [1], [0, 0, 1, 1], [], []>} : vector<10x192xbf16>, vector<192x32xbf16>, vector<10x32xf32> -> vector<10x32xf32>
    %c0_4 = arith.constant 0 : index
    %c0_5 = arith.constant 0 : index
    %4 = vector.load %arg3[%c0_4, %c0_5] : memref<10x32xf32, #tpu.memory_space<vmem>>, vector<10x32xf32>
    %5 = arith.addf %3, %4 : vector<10x32xf32>
    %c0_6 = arith.constant 0 : index
    %c0_7 = arith.constant 0 : index
    %6 = vector.load %arg4[%c0_6, %c0_7] : memref<10x10xf32, #tpu.memory_space<vmem>>, vector<10x10xf32>
    %c0_8 = arith.constant 0 : index
    %c0_9 = arith.constant 0 : index
    %c0_10 = arith.constant 0 : index
    %7 = vector.load %arg6[%c0_8, %c0_9, %c0_10] : memref<2x1x32xf32, #tpu.memory_space<vmem>>, vector<1x1x32xf32>
    %8 = vector.shape_cast %7 : vector<1x1x32xf32> to vector<1x32xf32>
    %c0_11 = arith.constant 0 : index
    %c0_12 = arith.constant 0 : index
    %c0_13 = arith.constant 0 : index
    %9 = vector.load %arg7[%c0_11, %c0_12, %c0_13] : memref<2x1x32xf32, #tpu.memory_space<vmem>>, vector<1x1x32xf32>
    %10 = vector.shape_cast %9 : vector<1x1x32xf32> to vector<1x32xf32>
    %cst_14 = arith.constant dense<0.000000e+00> : vector<10xf32>
    %11 = vector.multi_reduction <add>, %5, %cst_14 [1] : vector<10x32xf32> to vector<10xf32>
    %12 = vector.shape_cast %11 : vector<10xf32> to vector<10x1xf32>
    %cst_15 = arith.constant 3.200000e+01 : f32
    %13 = vector.broadcast %cst_15 : f32 to vector<10x1xf32>
    %14 = arith.divf %12, %13 : vector<10x1xf32>
    %15 = vector.broadcast %14 : vector<10x1xf32> to vector<10x32xf32>
    %16 = arith.subf %5, %15 : vector<10x32xf32>
    %17 = arith.mulf %16, %16 : vector<10x32xf32>
    %cst_16 = arith.constant dense<0.000000e+00> : vector<10xf32>
    %18 = vector.multi_reduction <add>, %17, %cst_16 [1] : vector<10x32xf32> to vector<10xf32>
    %19 = vector.shape_cast %18 : vector<10xf32> to vector<10x1xf32>
    %cst_17 = arith.constant 3.200000e+01 : f32
    %20 = vector.broadcast %cst_17 : f32 to vector<10x1xf32>
    %21 = arith.divf %19, %20 : vector<10x1xf32>
    %22 = vector.broadcast %14 : vector<10x1xf32> to vector<10x32xf32>
    %23 = arith.subf %5, %22 : vector<10x32xf32>
    %cst_18 = arith.constant 9.99999997E-7 : f32
    %24 = vector.broadcast %cst_18 : f32 to vector<10x1xf32>
    %25 = arith.addf %21, %24 : vector<10x1xf32>
    %26 = math.rsqrt %25 : vector<10x1xf32>
    %27 = vector.broadcast %26 : vector<10x1xf32> to vector<10x32xf32>
    %28 = arith.mulf %23, %27 : vector<10x32xf32>
    %29 = vector.broadcast %8 : vector<1x32xf32> to vector<10x32xf32>
    %30 = arith.mulf %28, %29 : vector<10x32xf32>
    %31 = vector.broadcast %10 : vector<1x32xf32> to vector<10x32xf32>
    %32 = arith.addf %30, %31 : vector<10x32xf32>
    %33 = arith.truncf %32 : vector<10x32xf32> to vector<10x32xbf16>
    %cst_19 = arith.constant 0.000000e+00 : f32
    %34 = vector.broadcast %cst_19 : f32 to vector<10x32xf32>
    %c0_20 = arith.constant 0 : index
    %c0_21 = arith.constant 0 : index
    %c0_22 = arith.constant 0 : index
    %35 = vector.load %arg8[%c0_20, %c0_21, %c0_22] : memref<8x32x8xbf16, #tpu.memory_space<vmem>>, vector<1x32x8xbf16>
    %36 = vector.shape_cast %35 : vector<1x32x8xbf16> to vector<32x8xbf16>
    %cst_23 = arith.constant dense<0.000000e+00> : vector<10x8xf32>
    %37 = tpu.matmul %33, %36, %cst_23 {dimension_numbers = #tpu.dot_dimension_numbers<[1], [0], [0], [1], [0, 0, 1, 1], [], []>} : vector<10x32xbf16>, vector<32x8xbf16>, vector<10x8xf32> -> vector<10x8xf32>
    %c0_24 = arith.constant 0 : index
    %c0_25 = arith.constant 0 : index
    %c0_26 = arith.constant 0 : index
    %38 = vector.load %arg11[%c0_24, %c0_25, %c0_26] : memref<8x1x8xf32, #tpu.memory_space<vmem>>, vector<1x1x8xf32>
    %39 = vector.shape_cast %38 : vector<1x1x8xf32> to vector<1x8xf32>
    %40 = vector.broadcast %39 : vector<1x8xf32> to vector<10x8xf32>
    %41 = arith.addf %37, %40 : vector<10x8xf32>
    %c0_27 = arith.constant 0 : index
    %c0_28 = arith.constant 0 : index
    %c0_29 = arith.constant 0 : index
    %42 = vector.load %arg9[%c0_27, %c0_28, %c0_29] : memref<8x32x8xbf16, #tpu.memory_space<vmem>>, vector<1x32x8xbf16>
    %43 = vector.shape_cast %42 : vector<1x32x8xbf16> to vector<32x8xbf16>
    %cst_30 = arith.constant dense<0.000000e+00> : vector<10x8xf32>
    %44 = tpu.matmul %33, %43, %cst_30 {dimension_numbers = #tpu.dot_dimension_numbers<[1], [0], [0], [1], [0, 0, 1, 1], [], []>} : vector<10x32xbf16>, vector<32x8xbf16>, vector<10x8xf32> -> vector<10x8xf32>
    %c0_31 = arith.constant 0 : index
    %c0_32 = arith.constant 0 : index
    %c0_33 = arith.constant 0 : index
    %45 = vector.load %arg12[%c0_31, %c0_32, %c0_33] : memref<8x1x8xf32, #tpu.memory_space<vmem>>, vector<1x1x8xf32>
    %46 = vector.shape_cast %45 : vector<1x1x8xf32> to vector<1x8xf32>
    %47 = vector.broadcast %46 : vector<1x8xf32> to vector<10x8xf32>
    %48 = arith.addf %44, %47 : vector<10x8xf32>
    %c0_34 = arith.constant 0 : index
    %c0_35 = arith.constant 0 : index
    %c0_36 = arith.constant 0 : index
    %49 = vector.load %arg10[%c0_34, %c0_35, %c0_36] : memref<8x32x8xbf16, #tpu.memory_space<vmem>>, vector<1x32x8xbf16>
    %50 = vector.shape_cast %49 : vector<1x32x8xbf16> to vector<32x8xbf16>
    %cst_37 = arith.constant dense<0.000000e+00> : vector<10x8xf32>
    %51 = tpu.matmul %33, %50, %cst_37 {dimension_numbers = #tpu.dot_dimension_numbers<[1], [0], [0], [1], [0, 0, 1, 1], [], []>} : vector<10x32xbf16>, vector<32x8xbf16>, vector<10x8xf32> -> vector<10x8xf32>
    %c0_38 = arith.constant 0 : index
    %c0_39 = arith.constant 0 : index
    %c0_40 = arith.constant 0 : index
    %52 = vector.load %arg13[%c0_38, %c0_39, %c0_40] : memref<8x1x8xf32, #tpu.memory_space<vmem>>, vector<1x1x8xf32>
    %53 = vector.shape_cast %52 : vector<1x1x8xf32> to vector<1x8xf32>
    %54 = vector.broadcast %53 : vector<1x8xf32> to vector<10x8xf32>
    %55 = arith.addf %51, %54 : vector<10x8xf32>
    %56 = arith.truncf %41 : vector<10x8xf32> to vector<10x8xbf16>
    %57 = arith.truncf %48 : vector<10x8xf32> to vector<10x8xbf16>
    %cst_41 = arith.constant dense<0.000000e+00> : vector<10x10xf32>
    %58 = tpu.matmul %56, %57, %cst_41 {dimension_numbers = #tpu.dot_dimension_numbers<[1], [1], [0], [0], [0, 0, 1, 0], [], []>} : vector<10x8xbf16>, vector<10x8xbf16>, vector<10x10xf32> -> vector<10x10xf32>
    %cst_42 = arith.constant 0.353553385 : f32
    %59 = vector.broadcast %cst_42 : f32 to vector<10x10xf32>
    %60 = arith.mulf %58, %59 : vector<10x10xf32>
    %61 = arith.addf %60, %6 : vector<10x10xf32>
    %cst_43 = arith.constant dense<0xFF800000> : vector<10xf32>
    %62 = vector.multi_reduction <maximumf>, %61, %cst_43 [1] : vector<10x10xf32> to vector<10xf32>
    %63 = vector.shape_cast %62 : vector<10xf32> to vector<10x1xf32>
    %64 = vector.broadcast %63 : vector<10x1xf32> to vector<10x10xf32>
    %65 = arith.subf %61, %64 : vector<10x10xf32>
    %66 = math.exp %65 : vector<10x10xf32>
    %cst_44 = arith.constant dense<0.000000e+00> : vector<10xf32>
    %67 = vector.multi_reduction <add>, %66, %cst_44 [1] : vector<10x10xf32> to vector<10xf32>
    %68 = vector.shape_cast %67 : vector<10xf32> to vector<10x1xf32>
    %69 = tpu.reciprocal %68 {approx = true} : vector<10x1xf32> -> vector<10x1xf32>
    %70 = vector.broadcast %69 : vector<10x1xf32> to vector<10x10xf32>
    %71 = arith.mulf %66, %70 : vector<10x10xf32>
    %72 = arith.truncf %71 : vector<10x10xf32> to vector<10x10xbf16>
    %73 = arith.truncf %55 : vector<10x8xf32> to vector<10x8xbf16>
    %cst_45 = arith.constant dense<0.000000e+00> : vector<10x8xf32>
    %74 = tpu.matmul %72, %73, %cst_45 {dimension_numbers = #tpu.dot_dimension_numbers<[1], [0], [0], [1], [0, 0, 1, 1], [], []>} : vector<10x10xbf16>, vector<10x8xbf16>, vector<10x8xf32> -> vector<10x8xf32>
    %75 = arith.truncf %74 : vector<10x8xf32> to vector<10x8xbf16>
    %c0_46 = arith.constant 0 : index
    %c0_47 = arith.constant 0 : index
    %c0_48 = arith.constant 0 : index
    %76 = vector.load %arg14[%c0_46, %c0_47, %c0_48] : memref<8x8x32xbf16, #tpu.memory_space<vmem>>, vector<1x8x32xbf16>
    %77 = vector.shape_cast %76 : vector<1x8x32xbf16> to vector<8x32xbf16>
    %cst_49 = arith.constant dense<0.000000e+00> : vector<10x32xf32>
    %78 = tpu.matmul %75, %77, %cst_49 {dimension_numbers = #tpu.dot_dimension_numbers<[1], [0], [0], [1], [0, 0, 1, 1], [], []>} : vector<10x8xbf16>, vector<8x32xbf16>, vector<10x32xf32> -> vector<10x32xf32>
    %79 = arith.addf %34, %78 : vector<10x32xf32>
    %c1 = arith.constant 1 : index
    %c0_50 = arith.constant 0 : index
    %c0_51 = arith.constant 0 : index
    %80 = vector.load %arg8[%c1, %c0_50, %c0_51] : memref<8x32x8xbf16, #tpu.memory_space<vmem>>, vector<1x32x8xbf16>
    %81 = vector.shape_cast %80 : vector<1x32x8xbf16> to vector<32x8xbf16>
    %cst_52 = arith.constant dense<0.000000e+00> : vector<10x8xf32>
    %82 = tpu.matmul %33, %81, %cst_52 {dimension_numbers = #tpu.dot_dimension_numbers<[1], [0], [0], [1], [0, 0, 1, 1], [], []>} : vector<10x32xbf16>, vector<32x8xbf16>, vector<10x8xf32> -> vector<10x8xf32>
    %c1_53 = arith.constant 1 : index
    %c0_54 = arith.constant 0 : index
    %c0_55 = arith.constant 0 : index
    %83 = vector.load %arg11[%c1_53, %c0_54, %c0_55] : memref<8x1x8xf32, #tpu.memory_space<vmem>>, vector<1x1x8xf32>
    %84 = vector.shape_cast %83 : vector<1x1x8xf32> to vector<1x8xf32>
    %85 = vector.broadcast %84 : vector<1x8xf32> to vector<10x8xf32>
    %86 = arith.addf %82, %85 : vector<10x8xf32>
    %c1_56 = arith.constant 1 : index
    %c0_57 = arith.constant 0 : index
    %c0_58 = arith.constant 0 : index
    %87 = vector.load %arg9[%c1_56, %c0_57, %c0_58] : memref<8x32x8xbf16, #tpu.memory_space<vmem>>, vector<1x32x8xbf16>
    %88 = vector.shape_cast %87 : vector<1x32x8xbf16> to vector<32x8xbf16>
    %cst_59 = arith.constant dense<0.000000e+00> : vector<10x8xf32>
    %89 = tpu.matmul %33, %88, %cst_59 {dimension_numbers = #tpu.dot_dimension_numbers<[1], [0], [0], [1], [0, 0, 1, 1], [], []>} : vector<10x32xbf16>, vector<32x8xbf16>, vector<10x8xf32> -> vector<10x8xf32>
    %c1_60 = arith.constant 1 : index
    %c0_61 = arith.constant 0 : index
    %c0_62 = arith.constant 0 : index
    %90 = vector.load %arg12[%c1_60, %c0_61, %c0_62] : memref<8x1x8xf32, #tpu.memory_space<vmem>>, vector<1x1x8xf32>
    %91 = vector.shape_cast %90 : vector<1x1x8xf32> to vector<1x8xf32>
    %92 = vector.broadcast %91 : vector<1x8xf32> to vector<10x8xf32>
    %93 = arith.addf %89, %92 : vector<10x8xf32>
    %c1_63 = arith.constant 1 : index
    %c0_64 = arith.constant 0 : index
    %c0_65 = arith.constant 0 : index
    %94 = vector.load %arg10[%c1_63, %c0_64, %c0_65] : memref<8x32x8xbf16, #tpu.memory_space<vmem>>, vector<1x32x8xbf16>
    %95 = vector.shape_cast %94 : vector<1x32x8xbf16> to vector<32x8xbf16>
    %cst_66 = arith.constant dense<0.000000e+00> : vector<10x8xf32>
    %96 = tpu.matmul %33, %95, %cst_66 {dimension_numbers = #tpu.dot_dimension_numbers<[1], [0], [0], [1], [0, 0, 1, 1], [], []>} : vector<10x32xbf16>, vector<32x8xbf16>, vector<10x8xf32> -> vector<10x8xf32>
    %c1_67 = arith.constant 1 : index
    %c0_68 = arith.constant 0 : index
    %c0_69 = arith.constant 0 : index
    %97 = vector.load %arg13[%c1_67, %c0_68, %c0_69] : memref<8x1x8xf32, #tpu.memory_space<vmem>>, vector<1x1x8xf32>
    %98 = vector.shape_cast %97 : vector<1x1x8xf32> to vector<1x8xf32>
    %99 = vector.broadcast %98 : vector<1x8xf32> to vector<10x8xf32>
    %100 = arith.addf %96, %99 : vector<10x8xf32>
    %101 = arith.truncf %86 : vector<10x8xf32> to vector<10x8xbf16>
    %102 = arith.truncf %93 : vector<10x8xf32> to vector<10x8xbf16>
    %cst_70 = arith.constant dense<0.000000e+00> : vector<10x10xf32>
    %103 = tpu.matmul %101, %102, %cst_70 {dimension_numbers = #tpu.dot_dimension_numbers<[1], [1], [0], [0], [0, 0, 1, 0], [], []>} : vector<10x8xbf16>, vector<10x8xbf16>, vector<10x10xf32> -> vector<10x10xf32>
    %cst_71 = arith.constant 0.353553385 : f32
    %104 = vector.broadcast %cst_71 : f32 to vector<10x10xf32>
    %105 = arith.mulf %103, %104 : vector<10x10xf32>
    %106 = arith.addf %105, %6 : vector<10x10xf32>
    %cst_72 = arith.constant dense<0xFF800000> : vector<10xf32>
    %107 = vector.multi_reduction <maximumf>, %106, %cst_72 [1] : vector<10x10xf32> to vector<10xf32>
    %108 = vector.shape_cast %107 : vector<10xf32> to vector<10x1xf32>
    %109 = vector.broadcast %108 : vector<10x1xf32> to vector<10x10xf32>
    %110 = arith.subf %106, %109 : vector<10x10xf32>
    %111 = math.exp %110 : vector<10x10xf32>
    %cst_73 = arith.constant dense<0.000000e+00> : vector<10xf32>
    %112 = vector.multi_reduction <add>, %111, %cst_73 [1] : vector<10x10xf32> to vector<10xf32>
    %113 = vector.shape_cast %112 : vector<10xf32> to vector<10x1xf32>
    %114 = tpu.reciprocal %113 {approx = true} : vector<10x1xf32> -> vector<10x1xf32>
    %115 = vector.broadcast %114 : vector<10x1xf32> to vector<10x10xf32>
    %116 = arith.mulf %111, %115 : vector<10x10xf32>
    %117 = arith.truncf %116 : vector<10x10xf32> to vector<10x10xbf16>
    %118 = arith.truncf %100 : vector<10x8xf32> to vector<10x8xbf16>
    %cst_74 = arith.constant dense<0.000000e+00> : vector<10x8xf32>
    %119 = tpu.matmul %117, %118, %cst_74 {dimension_numbers = #tpu.dot_dimension_numbers<[1], [0], [0], [1], [0, 0, 1, 1], [], []>} : vector<10x10xbf16>, vector<10x8xbf16>, vector<10x8xf32> -> vector<10x8xf32>
    %120 = arith.truncf %119 : vector<10x8xf32> to vector<10x8xbf16>
    %c1_75 = arith.constant 1 : index
    %c0_76 = arith.constant 0 : index
    %c0_77 = arith.constant 0 : index
    %121 = vector.load %arg14[%c1_75, %c0_76, %c0_77] : memref<8x8x32xbf16, #tpu.memory_space<vmem>>, vector<1x8x32xbf16>
    %122 = vector.shape_cast %121 : vector<1x8x32xbf16> to vector<8x32xbf16>
    %cst_78 = arith.constant dense<0.000000e+00> : vector<10x32xf32>
    %123 = tpu.matmul %120, %122, %cst_78 {dimension_numbers = #tpu.dot_dimension_numbers<[1], [0], [0], [1], [0, 0, 1, 1], [], []>} : vector<10x8xbf16>, vector<8x32xbf16>, vector<10x32xf32> -> vector<10x32xf32>
    %124 = arith.addf %79, %123 : vector<10x32xf32>
    %c2 = arith.constant 2 : index
    %c0_79 = arith.constant 0 : index
    %c0_80 = arith.constant 0 : index
    %125 = vector.load %arg8[%c2, %c0_79, %c0_80] : memref<8x32x8xbf16, #tpu.memory_space<vmem>>, vector<1x32x8xbf16>
    %126 = vector.shape_cast %125 : vector<1x32x8xbf16> to vector<32x8xbf16>
    %cst_81 = arith.constant dense<0.000000e+00> : vector<10x8xf32>
    %127 = tpu.matmul %33, %126, %cst_81 {dimension_numbers = #tpu.dot_dimension_numbers<[1], [0], [0], [1], [0, 0, 1, 1], [], []>} : vector<10x32xbf16>, vector<32x8xbf16>, vector<10x8xf32> -> vector<10x8xf32>
    %c2_82 = arith.constant 2 : index
    %c0_83 = arith.constant 0 : index
    %c0_84 = arith.constant 0 : index
    %128 = vector.load %arg11[%c2_82, %c0_83, %c0_84] : memref<8x1x8xf32, #tpu.memory_space<vmem>>, vector<1x1x8xf32>
    %129 = vector.shape_cast %128 : vector<1x1x8xf32> to vector<1x8xf32>
    %130 = vector.broadcast %129 : vector<1x8xf32> to vector<10x8xf32>
    %131 = arith.addf %127, %130 : vector<10x8xf32>
    %c2_85 = arith.constant 2 : index
    %c0_86 = arith.constant 0 : index
    %c0_87 = arith.constant 0 : index
    %132 = vector.load %arg9[%c2_85, %c0_86, %c0_87] : memref<8x32x8xbf16, #tpu.memory_space<vmem>>, vector<1x32x8xbf16>
    %133 = vector.shape_cast %132 : vector<1x32x8xbf16> to vector<32x8xbf16>
    %cst_88 = arith.constant dense<0.000000e+00> : vector<10x8xf32>
    %134 = tpu.matmul %33, %133, %cst_88 {dimension_numbers = #tpu.dot_dimension_numbers<[1], [0], [0], [1], [0, 0, 1, 1], [], []>} : vector<10x32xbf16>, vector<32x8xbf16>, vector<10x8xf32> -> vector<10x8xf32>
    %c2_89 = arith.constant 2 : index
    %c0_90 = arith.constant 0 : index
    %c0_91 = arith.constant 0 : index
    %135 = vector.load %arg12[%c2_89, %c0_90, %c0_91] : memref<8x1x8xf32, #tpu.memory_space<vmem>>, vector<1x1x8xf32>
    %136 = vector.shape_cast %135 : vector<1x1x8xf32> to vector<1x8xf32>
    %137 = vector.broadcast %136 : vector<1x8xf32> to vector<10x8xf32>
    %138 = arith.addf %134, %137 : vector<10x8xf32>
    %c2_92 = arith.constant 2 : index
    %c0_93 = arith.constant 0 : index
    %c0_94 = arith.constant 0 : index
    %139 = vector.load %arg10[%c2_92, %c0_93, %c0_94] : memref<8x32x8xbf16, #tpu.memory_space<vmem>>, vector<1x32x8xbf16>
    %140 = vector.shape_cast %139 : vector<1x32x8xbf16> to vector<32x8xbf16>
    %cst_95 = arith.constant dense<0.000000e+00> : vector<10x8xf32>
    %141 = tpu.matmul %33, %140, %cst_95 {dimension_numbers = #tpu.dot_dimension_numbers<[1], [0], [0], [1], [0, 0, 1, 1], [], []>} : vector<10x32xbf16>, vector<32x8xbf16>, vector<10x8xf32> -> vector<10x8xf32>
    %c2_96 = arith.constant 2 : index
    %c0_97 = arith.constant 0 : index
    %c0_98 = arith.constant 0 : index
    %142 = vector.load %arg13[%c2_96, %c0_97, %c0_98] : memref<8x1x8xf32, #tpu.memory_space<vmem>>, vector<1x1x8xf32>
    %143 = vector.shape_cast %142 : vector<1x1x8xf32> to vector<1x8xf32>
    %144 = vector.broadcast %143 : vector<1x8xf32> to vector<10x8xf32>
    %145 = arith.addf %141, %144 : vector<10x8xf32>
    %146 = arith.truncf %131 : vector<10x8xf32> to vector<10x8xbf16>
    %147 = arith.truncf %138 : vector<10x8xf32> to vector<10x8xbf16>
    %cst_99 = arith.constant dense<0.000000e+00> : vector<10x10xf32>
    %148 = tpu.matmul %146, %147, %cst_99 {dimension_numbers = #tpu.dot_dimension_numbers<[1], [1], [0], [0], [0, 0, 1, 0], [], []>} : vector<10x8xbf16>, vector<10x8xbf16>, vector<10x10xf32> -> vector<10x10xf32>
    %cst_100 = arith.constant 0.353553385 : f32
    %149 = vector.broadcast %cst_100 : f32 to vector<10x10xf32>
    %150 = arith.mulf %148, %149 : vector<10x10xf32>
    %151 = arith.addf %150, %6 : vector<10x10xf32>
    %cst_101 = arith.constant dense<0xFF800000> : vector<10xf32>
    %152 = vector.multi_reduction <maximumf>, %151, %cst_101 [1] : vector<10x10xf32> to vector<10xf32>
    %153 = vector.shape_cast %152 : vector<10xf32> to vector<10x1xf32>
    %154 = vector.broadcast %153 : vector<10x1xf32> to vector<10x10xf32>
    %155 = arith.subf %151, %154 : vector<10x10xf32>
    %156 = math.exp %155 : vector<10x10xf32>
    %cst_102 = arith.constant dense<0.000000e+00> : vector<10xf32>
    %157 = vector.multi_reduction <add>, %156, %cst_102 [1] : vector<10x10xf32> to vector<10xf32>
    %158 = vector.shape_cast %157 : vector<10xf32> to vector<10x1xf32>
    %159 = tpu.reciprocal %158 {approx = true} : vector<10x1xf32> -> vector<10x1xf32>
    %160 = vector.broadcast %159 : vector<10x1xf32> to vector<10x10xf32>
    %161 = arith.mulf %156, %160 : vector<10x10xf32>
    %162 = arith.truncf %161 : vector<10x10xf32> to vector<10x10xbf16>
    %163 = arith.truncf %145 : vector<10x8xf32> to vector<10x8xbf16>
    %cst_103 = arith.constant dense<0.000000e+00> : vector<10x8xf32>
    %164 = tpu.matmul %162, %163, %cst_103 {dimension_numbers = #tpu.dot_dimension_numbers<[1], [0], [0], [1], [0, 0, 1, 1], [], []>} : vector<10x10xbf16>, vector<10x8xbf16>, vector<10x8xf32> -> vector<10x8xf32>
    %165 = arith.truncf %164 : vector<10x8xf32> to vector<10x8xbf16>
    %c2_104 = arith.constant 2 : index
    %c0_105 = arith.constant 0 : index
    %c0_106 = arith.constant 0 : index
    %166 = vector.load %arg14[%c2_104, %c0_105, %c0_106] : memref<8x8x32xbf16, #tpu.memory_space<vmem>>, vector<1x8x32xbf16>
    %167 = vector.shape_cast %166 : vector<1x8x32xbf16> to vector<8x32xbf16>
    %cst_107 = arith.constant dense<0.000000e+00> : vector<10x32xf32>
    %168 = tpu.matmul %165, %167, %cst_107 {dimension_numbers = #tpu.dot_dimension_numbers<[1], [0], [0], [1], [0, 0, 1, 1], [], []>} : vector<10x8xbf16>, vector<8x32xbf16>, vector<10x32xf32> -> vector<10x32xf32>
    %169 = arith.addf %124, %168 : vector<10x32xf32>
    %c3 = arith.constant 3 : index
    %c0_108 = arith.constant 0 : index
    %c0_109 = arith.constant 0 : index
    %170 = vector.load %arg8[%c3, %c0_108, %c0_109] : memref<8x32x8xbf16, #tpu.memory_space<vmem>>, vector<1x32x8xbf16>
    %171 = vector.shape_cast %170 : vector<1x32x8xbf16> to vector<32x8xbf16>
    %cst_110 = arith.constant dense<0.000000e+00> : vector<10x8xf32>
    %172 = tpu.matmul %33, %171, %cst_110 {dimension_numbers = #tpu.dot_dimension_numbers<[1], [0], [0], [1], [0, 0, 1, 1], [], []>} : vector<10x32xbf16>, vector<32x8xbf16>, vector<10x8xf32> -> vector<10x8xf32>
    %c3_111 = arith.constant 3 : index
    %c0_112 = arith.constant 0 : index
    %c0_113 = arith.constant 0 : index
    %173 = vector.load %arg11[%c3_111, %c0_112, %c0_113] : memref<8x1x8xf32, #tpu.memory_space<vmem>>, vector<1x1x8xf32>
    %174 = vector.shape_cast %173 : vector<1x1x8xf32> to vector<1x8xf32>
    %175 = vector.broadcast %174 : vector<1x8xf32> to vector<10x8xf32>
    %176 = arith.addf %172, %175 : vector<10x8xf32>
    %c3_114 = arith.constant 3 : index
    %c0_115 = arith.constant 0 : index
    %c0_116 = arith.constant 0 : index
    %177 = vector.load %arg9[%c3_114, %c0_115, %c0_116] : memref<8x32x8xbf16, #tpu.memory_space<vmem>>, vector<1x32x8xbf16>
    %178 = vector.shape_cast %177 : vector<1x32x8xbf16> to vector<32x8xbf16>
    %cst_117 = arith.constant dense<0.000000e+00> : vector<10x8xf32>
    %179 = tpu.matmul %33, %178, %cst_117 {dimension_numbers = #tpu.dot_dimension_numbers<[1], [0], [0], [1], [0, 0, 1, 1], [], []>} : vector<10x32xbf16>, vector<32x8xbf16>, vector<10x8xf32> -> vector<10x8xf32>
    %c3_118 = arith.constant 3 : index
    %c0_119 = arith.constant 0 : index
    %c0_120 = arith.constant 0 : index
    %180 = vector.load %arg12[%c3_118, %c0_119, %c0_120] : memref<8x1x8xf32, #tpu.memory_space<vmem>>, vector<1x1x8xf32>
    %181 = vector.shape_cast %180 : vector<1x1x8xf32> to vector<1x8xf32>
    %182 = vector.broadcast %181 : vector<1x8xf32> to vector<10x8xf32>
    %183 = arith.addf %179, %182 : vector<10x8xf32>
    %c3_121 = arith.constant 3 : index
    %c0_122 = arith.constant 0 : index
    %c0_123 = arith.constant 0 : index
    %184 = vector.load %arg10[%c3_121, %c0_122, %c0_123] : memref<8x32x8xbf16, #tpu.memory_space<vmem>>, vector<1x32x8xbf16>
    %185 = vector.shape_cast %184 : vector<1x32x8xbf16> to vector<32x8xbf16>
    %cst_124 = arith.constant dense<0.000000e+00> : vector<10x8xf32>
    %186 = tpu.matmul %33, %185, %cst_124 {dimension_numbers = #tpu.dot_dimension_numbers<[1], [0], [0], [1], [0, 0, 1, 1], [], []>} : vector<10x32xbf16>, vector<32x8xbf16>, vector<10x8xf32> -> vector<10x8xf32>
    %c3_125 = arith.constant 3 : index
    %c0_126 = arith.constant 0 : index
    %c0_127 = arith.constant 0 : index
    %187 = vector.load %arg13[%c3_125, %c0_126, %c0_127] : memref<8x1x8xf32, #tpu.memory_space<vmem>>, vector<1x1x8xf32>
    %188 = vector.shape_cast %187 : vector<1x1x8xf32> to vector<1x8xf32>
    %189 = vector.broadcast %188 : vector<1x8xf32> to vector<10x8xf32>
    %190 = arith.addf %186, %189 : vector<10x8xf32>
    %191 = arith.truncf %176 : vector<10x8xf32> to vector<10x8xbf16>
    %192 = arith.truncf %183 : vector<10x8xf32> to vector<10x8xbf16>
    %cst_128 = arith.constant dense<0.000000e+00> : vector<10x10xf32>
    %193 = tpu.matmul %191, %192, %cst_128 {dimension_numbers = #tpu.dot_dimension_numbers<[1], [1], [0], [0], [0, 0, 1, 0], [], []>} : vector<10x8xbf16>, vector<10x8xbf16>, vector<10x10xf32> -> vector<10x10xf32>
    %cst_129 = arith.constant 0.353553385 : f32
    %194 = vector.broadcast %cst_129 : f32 to vector<10x10xf32>
    %195 = arith.mulf %193, %194 : vector<10x10xf32>
    %196 = arith.addf %195, %6 : vector<10x10xf32>
    %cst_130 = arith.constant dense<0xFF800000> : vector<10xf32>
    %197 = vector.multi_reduction <maximumf>, %196, %cst_130 [1] : vector<10x10xf32> to vector<10xf32>
    %198 = vector.shape_cast %197 : vector<10xf32> to vector<10x1xf32>
    %199 = vector.broadcast %198 : vector<10x1xf32> to vector<10x10xf32>
    %200 = arith.subf %196, %199 : vector<10x10xf32>
    %201 = math.exp %200 : vector<10x10xf32>
    %cst_131 = arith.constant dense<0.000000e+00> : vector<10xf32>
    %202 = vector.multi_reduction <add>, %201, %cst_131 [1] : vector<10x10xf32> to vector<10xf32>
    %203 = vector.shape_cast %202 : vector<10xf32> to vector<10x1xf32>
    %204 = tpu.reciprocal %203 {approx = true} : vector<10x1xf32> -> vector<10x1xf32>
    %205 = vector.broadcast %204 : vector<10x1xf32> to vector<10x10xf32>
    %206 = arith.mulf %201, %205 : vector<10x10xf32>
    %207 = arith.truncf %206 : vector<10x10xf32> to vector<10x10xbf16>
    %208 = arith.truncf %190 : vector<10x8xf32> to vector<10x8xbf16>
    %cst_132 = arith.constant dense<0.000000e+00> : vector<10x8xf32>
    %209 = tpu.matmul %207, %208, %cst_132 {dimension_numbers = #tpu.dot_dimension_numbers<[1], [0], [0], [1], [0, 0, 1, 1], [], []>} : vector<10x10xbf16>, vector<10x8xbf16>, vector<10x8xf32> -> vector<10x8xf32>
    %210 = arith.truncf %209 : vector<10x8xf32> to vector<10x8xbf16>
    %c3_133 = arith.constant 3 : index
    %c0_134 = arith.constant 0 : index
    %c0_135 = arith.constant 0 : index
    %211 = vector.load %arg14[%c3_133, %c0_134, %c0_135] : memref<8x8x32xbf16, #tpu.memory_space<vmem>>, vector<1x8x32xbf16>
    %212 = vector.shape_cast %211 : vector<1x8x32xbf16> to vector<8x32xbf16>
    %cst_136 = arith.constant dense<0.000000e+00> : vector<10x32xf32>
    %213 = tpu.matmul %210, %212, %cst_136 {dimension_numbers = #tpu.dot_dimension_numbers<[1], [0], [0], [1], [0, 0, 1, 1], [], []>} : vector<10x8xbf16>, vector<8x32xbf16>, vector<10x32xf32> -> vector<10x32xf32>
    %214 = arith.addf %169, %213 : vector<10x32xf32>
    %215 = arith.addf %5, %214 : vector<10x32xf32>
    %c0_137 = arith.constant 0 : index
    %c0_138 = arith.constant 0 : index
    %c0_139 = arith.constant 0 : index
    %216 = vector.load %arg15[%c0_137, %c0_138, %c0_139] : memref<2x1x32xf32, #tpu.memory_space<vmem>>, vector<1x1x32xf32>
    %217 = vector.shape_cast %216 : vector<1x1x32xf32> to vector<1x32xf32>
    %218 = vector.broadcast %217 : vector<1x32xf32> to vector<10x32xf32>
    %219 = arith.addf %215, %218 : vector<10x32xf32>
    %c0_140 = arith.constant 0 : index
    %c0_141 = arith.constant 0 : index
    %c0_142 = arith.constant 0 : index
    %220 = vector.load %arg16[%c0_140, %c0_141, %c0_142] : memref<2x1x32xf32, #tpu.memory_space<vmem>>, vector<1x1x32xf32>
    %221 = vector.shape_cast %220 : vector<1x1x32xf32> to vector<1x32xf32>
    %c0_143 = arith.constant 0 : index
    %c0_144 = arith.constant 0 : index
    %c0_145 = arith.constant 0 : index
    %222 = vector.load %arg17[%c0_143, %c0_144, %c0_145] : memref<2x1x32xf32, #tpu.memory_space<vmem>>, vector<1x1x32xf32>
    %223 = vector.shape_cast %222 : vector<1x1x32xf32> to vector<1x32xf32>
    %cst_146 = arith.constant dense<0.000000e+00> : vector<10xf32>
    %224 = vector.multi_reduction <add>, %219, %cst_146 [1] : vector<10x32xf32> to vector<10xf32>
    %225 = vector.shape_cast %224 : vector<10xf32> to vector<10x1xf32>
    %cst_147 = arith.constant 3.200000e+01 : f32
    %226 = vector.broadcast %cst_147 : f32 to vector<10x1xf32>
    %227 = arith.divf %225, %226 : vector<10x1xf32>
    %228 = vector.broadcast %227 : vector<10x1xf32> to vector<10x32xf32>
    %229 = arith.subf %219, %228 : vector<10x32xf32>
    %230 = arith.mulf %229, %229 : vector<10x32xf32>
    %cst_148 = arith.constant dense<0.000000e+00> : vector<10xf32>
    %231 = vector.multi_reduction <add>, %230, %cst_148 [1] : vector<10x32xf32> to vector<10xf32>
    %232 = vector.shape_cast %231 : vector<10xf32> to vector<10x1xf32>
    %cst_149 = arith.constant 3.200000e+01 : f32
    %233 = vector.broadcast %cst_149 : f32 to vector<10x1xf32>
    %234 = arith.divf %232, %233 : vector<10x1xf32>
    %235 = vector.broadcast %227 : vector<10x1xf32> to vector<10x32xf32>
    %236 = arith.subf %219, %235 : vector<10x32xf32>
    %cst_150 = arith.constant 9.99999997E-7 : f32
    %237 = vector.broadcast %cst_150 : f32 to vector<10x1xf32>
    %238 = arith.addf %234, %237 : vector<10x1xf32>
    %239 = math.rsqrt %238 : vector<10x1xf32>
    %240 = vector.broadcast %239 : vector<10x1xf32> to vector<10x32xf32>
    %241 = arith.mulf %236, %240 : vector<10x32xf32>
    %242 = vector.broadcast %221 : vector<1x32xf32> to vector<10x32xf32>
    %243 = arith.mulf %241, %242 : vector<10x32xf32>
    %244 = vector.broadcast %223 : vector<1x32xf32> to vector<10x32xf32>
    %245 = arith.addf %243, %244 : vector<10x32xf32>
    %c0_151 = arith.constant 0 : index
    %c0_152 = arith.constant 0 : index
    %c0_153 = arith.constant 0 : index
    %246 = vector.load %arg18[%c0_151, %c0_152, %c0_153] : memref<2x32x128xbf16, #tpu.memory_space<vmem>>, vector<1x32x128xbf16>
    %247 = vector.shape_cast %246 : vector<1x32x128xbf16> to vector<32x128xbf16>
    %248 = arith.truncf %245 : vector<10x32xf32> to vector<10x32xbf16>
    %cst_154 = arith.constant dense<0.000000e+00> : vector<10x128xf32>
    %249 = tpu.matmul %248, %247, %cst_154 {dimension_numbers = #tpu.dot_dimension_numbers<[1], [0], [0], [1], [0, 0, 1, 1], [], []>} : vector<10x32xbf16>, vector<32x128xbf16>, vector<10x128xf32> -> vector<10x128xf32>
    %c0_155 = arith.constant 0 : index
    %c0_156 = arith.constant 0 : index
    %c0_157 = arith.constant 0 : index
    %250 = vector.load %arg19[%c0_155, %c0_156, %c0_157] : memref<2x1x128xf32, #tpu.memory_space<vmem>>, vector<1x1x128xf32>
    %251 = vector.shape_cast %250 : vector<1x1x128xf32> to vector<1x128xf32>
    %252 = vector.broadcast %251 : vector<1x128xf32> to vector<10x128xf32>
    %253 = arith.addf %249, %252 : vector<10x128xf32>
    %254 = arith.mulf %253, %253 : vector<10x128xf32>
    %255 = arith.mulf %253, %254 : vector<10x128xf32>
    %cst_158 = arith.constant 4.471500e-02 : f32
    %256 = vector.broadcast %cst_158 : f32 to vector<10x128xf32>
    %257 = arith.mulf %256, %255 : vector<10x128xf32>
    %258 = arith.addf %253, %257 : vector<10x128xf32>
    %cst_159 = arith.constant 0.797884583 : f32
    %259 = vector.broadcast %cst_159 : f32 to vector<10x128xf32>
    %260 = arith.mulf %259, %258 : vector<10x128xf32>
    %261 = math.tanh %260 : vector<10x128xf32>
    %cst_160 = arith.constant 1.000000e+00 : f32
    %262 = vector.broadcast %cst_160 : f32 to vector<10x128xf32>
    %263 = arith.addf %262, %261 : vector<10x128xf32>
    %cst_161 = arith.constant 5.000000e-01 : f32
    %264 = vector.broadcast %cst_161 : f32 to vector<10x128xf32>
    %265 = arith.mulf %264, %263 : vector<10x128xf32>
    %266 = arith.mulf %253, %265 : vector<10x128xf32>
    %c0_162 = arith.constant 0 : index
    %c0_163 = arith.constant 0 : index
    %c0_164 = arith.constant 0 : index
    %267 = vector.load %arg20[%c0_162, %c0_163, %c0_164] : memref<2x128x32xbf16, #tpu.memory_space<vmem>>, vector<1x128x32xbf16>
    %268 = vector.shape_cast %267 : vector<1x128x32xbf16> to vector<128x32xbf16>
    %269 = arith.truncf %266 : vector<10x128xf32> to vector<10x128xbf16>
    %cst_165 = arith.constant dense<0.000000e+00> : vector<10x32xf32>
    %270 = tpu.matmul %269, %268, %cst_165 {dimension_numbers = #tpu.dot_dimension_numbers<[1], [0], [0], [1], [0, 0, 1, 1], [], []>} : vector<10x128xbf16>, vector<128x32xbf16>, vector<10x32xf32> -> vector<10x32xf32>
    %271 = arith.addf %219, %270 : vector<10x32xf32>
    %c0_166 = arith.constant 0 : index
    %c0_167 = arith.constant 0 : index
    %c0_168 = arith.constant 0 : index
    %272 = vector.load %arg21[%c0_166, %c0_167, %c0_168] : memref<2x1x32xf32, #tpu.memory_space<vmem>>, vector<1x1x32xf32>
    %273 = vector.shape_cast %272 : vector<1x1x32xf32> to vector<1x32xf32>
    %274 = vector.broadcast %273 : vector<1x32xf32> to vector<10x32xf32>
    %275 = arith.addf %271, %274 : vector<10x32xf32>
    %c1_169 = arith.constant 1 : index
    %c0_170 = arith.constant 0 : index
    %c0_171 = arith.constant 0 : index
    %276 = vector.load %arg6[%c1_169, %c0_170, %c0_171] : memref<2x1x32xf32, #tpu.memory_space<vmem>>, vector<1x1x32xf32>
    %277 = vector.shape_cast %276 : vector<1x1x32xf32> to vector<1x32xf32>
    %c1_172 = arith.constant 1 : index
    %c0_173 = arith.constant 0 : index
    %c0_174 = arith.constant 0 : index
    %278 = vector.load %arg7[%c1_172, %c0_173, %c0_174] : memref<2x1x32xf32, #tpu.memory_space<vmem>>, vector<1x1x32xf32>
    %279 = vector.shape_cast %278 : vector<1x1x32xf32> to vector<1x32xf32>
    %cst_175 = arith.constant dense<0.000000e+00> : vector<10xf32>
    %280 = vector.multi_reduction <add>, %275, %cst_175 [1] : vector<10x32xf32> to vector<10xf32>
    %281 = vector.shape_cast %280 : vector<10xf32> to vector<10x1xf32>
    %cst_176 = arith.constant 3.200000e+01 : f32
    %282 = vector.broadcast %cst_176 : f32 to vector<10x1xf32>
    %283 = arith.divf %281, %282 : vector<10x1xf32>
    %284 = vector.broadcast %283 : vector<10x1xf32> to vector<10x32xf32>
    %285 = arith.subf %275, %284 : vector<10x32xf32>
    %286 = arith.mulf %285, %285 : vector<10x32xf32>
    %cst_177 = arith.constant dense<0.000000e+00> : vector<10xf32>
    %287 = vector.multi_reduction <add>, %286, %cst_177 [1] : vector<10x32xf32> to vector<10xf32>
    %288 = vector.shape_cast %287 : vector<10xf32> to vector<10x1xf32>
    %cst_178 = arith.constant 3.200000e+01 : f32
    %289 = vector.broadcast %cst_178 : f32 to vector<10x1xf32>
    %290 = arith.divf %288, %289 : vector<10x1xf32>
    %291 = vector.broadcast %283 : vector<10x1xf32> to vector<10x32xf32>
    %292 = arith.subf %275, %291 : vector<10x32xf32>
    %cst_179 = arith.constant 9.99999997E-7 : f32
    %293 = vector.broadcast %cst_179 : f32 to vector<10x1xf32>
    %294 = arith.addf %290, %293 : vector<10x1xf32>
    %295 = math.rsqrt %294 : vector<10x1xf32>
    %296 = vector.broadcast %295 : vector<10x1xf32> to vector<10x32xf32>
    %297 = arith.mulf %292, %296 : vector<10x32xf32>
    %298 = vector.broadcast %277 : vector<1x32xf32> to vector<10x32xf32>
    %299 = arith.mulf %297, %298 : vector<10x32xf32>
    %300 = vector.broadcast %279 : vector<1x32xf32> to vector<10x32xf32>
    %301 = arith.addf %299, %300 : vector<10x32xf32>
    %302 = arith.truncf %301 : vector<10x32xf32> to vector<10x32xbf16>
    %cst_180 = arith.constant 0.000000e+00 : f32
    %303 = vector.broadcast %cst_180 : f32 to vector<10x32xf32>
    %c4 = arith.constant 4 : index
    %c0_181 = arith.constant 0 : index
    %c0_182 = arith.constant 0 : index
    %304 = vector.load %arg8[%c4, %c0_181, %c0_182] : memref<8x32x8xbf16, #tpu.memory_space<vmem>>, vector<1x32x8xbf16>
    %305 = vector.shape_cast %304 : vector<1x32x8xbf16> to vector<32x8xbf16>
    %cst_183 = arith.constant dense<0.000000e+00> : vector<10x8xf32>
    %306 = tpu.matmul %302, %305, %cst_183 {dimension_numbers = #tpu.dot_dimension_numbers<[1], [0], [0], [1], [0, 0, 1, 1], [], []>} : vector<10x32xbf16>, vector<32x8xbf16>, vector<10x8xf32> -> vector<10x8xf32>
    %c4_184 = arith.constant 4 : index
    %c0_185 = arith.constant 0 : index
    %c0_186 = arith.constant 0 : index
    %307 = vector.load %arg11[%c4_184, %c0_185, %c0_186] : memref<8x1x8xf32, #tpu.memory_space<vmem>>, vector<1x1x8xf32>
    %308 = vector.shape_cast %307 : vector<1x1x8xf32> to vector<1x8xf32>
    %309 = vector.broadcast %308 : vector<1x8xf32> to vector<10x8xf32>
    %310 = arith.addf %306, %309 : vector<10x8xf32>
    %c4_187 = arith.constant 4 : index
    %c0_188 = arith.constant 0 : index
    %c0_189 = arith.constant 0 : index
    %311 = vector.load %arg9[%c4_187, %c0_188, %c0_189] : memref<8x32x8xbf16, #tpu.memory_space<vmem>>, vector<1x32x8xbf16>
    %312 = vector.shape_cast %311 : vector<1x32x8xbf16> to vector<32x8xbf16>
    %cst_190 = arith.constant dense<0.000000e+00> : vector<10x8xf32>
    %313 = tpu.matmul %302, %312, %cst_190 {dimension_numbers = #tpu.dot_dimension_numbers<[1], [0], [0], [1], [0, 0, 1, 1], [], []>} : vector<10x32xbf16>, vector<32x8xbf16>, vector<10x8xf32> -> vector<10x8xf32>
    %c4_191 = arith.constant 4 : index
    %c0_192 = arith.constant 0 : index
    %c0_193 = arith.constant 0 : index
    %314 = vector.load %arg12[%c4_191, %c0_192, %c0_193] : memref<8x1x8xf32, #tpu.memory_space<vmem>>, vector<1x1x8xf32>
    %315 = vector.shape_cast %314 : vector<1x1x8xf32> to vector<1x8xf32>
    %316 = vector.broadcast %315 : vector<1x8xf32> to vector<10x8xf32>
    %317 = arith.addf %313, %316 : vector<10x8xf32>
    %c4_194 = arith.constant 4 : index
    %c0_195 = arith.constant 0 : index
    %c0_196 = arith.constant 0 : index
    %318 = vector.load %arg10[%c4_194, %c0_195, %c0_196] : memref<8x32x8xbf16, #tpu.memory_space<vmem>>, vector<1x32x8xbf16>
    %319 = vector.shape_cast %318 : vector<1x32x8xbf16> to vector<32x8xbf16>
    %cst_197 = arith.constant dense<0.000000e+00> : vector<10x8xf32>
    %320 = tpu.matmul %302, %319, %cst_197 {dimension_numbers = #tpu.dot_dimension_numbers<[1], [0], [0], [1], [0, 0, 1, 1], [], []>} : vector<10x32xbf16>, vector<32x8xbf16>, vector<10x8xf32> -> vector<10x8xf32>
    %c4_198 = arith.constant 4 : index
    %c0_199 = arith.constant 0 : index
    %c0_200 = arith.constant 0 : index
    %321 = vector.load %arg13[%c4_198, %c0_199, %c0_200] : memref<8x1x8xf32, #tpu.memory_space<vmem>>, vector<1x1x8xf32>
    %322 = vector.shape_cast %321 : vector<1x1x8xf32> to vector<1x8xf32>
    %323 = vector.broadcast %322 : vector<1x8xf32> to vector<10x8xf32>
    %324 = arith.addf %320, %323 : vector<10x8xf32>
    %325 = arith.truncf %310 : vector<10x8xf32> to vector<10x8xbf16>
    %326 = arith.truncf %317 : vector<10x8xf32> to vector<10x8xbf16>
    %cst_201 = arith.constant dense<0.000000e+00> : vector<10x10xf32>
    %327 = tpu.matmul %325, %326, %cst_201 {dimension_numbers = #tpu.dot_dimension_numbers<[1], [1], [0], [0], [0, 0, 1, 0], [], []>} : vector<10x8xbf16>, vector<10x8xbf16>, vector<10x10xf32> -> vector<10x10xf32>
    %cst_202 = arith.constant 0.353553385 : f32
    %328 = vector.broadcast %cst_202 : f32 to vector<10x10xf32>
    %329 = arith.mulf %327, %328 : vector<10x10xf32>
    %330 = arith.addf %329, %6 : vector<10x10xf32>
    %cst_203 = arith.constant dense<0xFF800000> : vector<10xf32>
    %331 = vector.multi_reduction <maximumf>, %330, %cst_203 [1] : vector<10x10xf32> to vector<10xf32>
    %332 = vector.shape_cast %331 : vector<10xf32> to vector<10x1xf32>
    %333 = vector.broadcast %332 : vector<10x1xf32> to vector<10x10xf32>
    %334 = arith.subf %330, %333 : vector<10x10xf32>
    %335 = math.exp %334 : vector<10x10xf32>
    %cst_204 = arith.constant dense<0.000000e+00> : vector<10xf32>
    %336 = vector.multi_reduction <add>, %335, %cst_204 [1] : vector<10x10xf32> to vector<10xf32>
    %337 = vector.shape_cast %336 : vector<10xf32> to vector<10x1xf32>
    %338 = tpu.reciprocal %337 {approx = true} : vector<10x1xf32> -> vector<10x1xf32>
    %339 = vector.broadcast %338 : vector<10x1xf32> to vector<10x10xf32>
    %340 = arith.mulf %335, %339 : vector<10x10xf32>
    %341 = arith.truncf %340 : vector<10x10xf32> to vector<10x10xbf16>
    %342 = arith.truncf %324 : vector<10x8xf32> to vector<10x8xbf16>
    %cst_205 = arith.constant dense<0.000000e+00> : vector<10x8xf32>
    %343 = tpu.matmul %341, %342, %cst_205 {dimension_numbers = #tpu.dot_dimension_numbers<[1], [0], [0], [1], [0, 0, 1, 1], [], []>} : vector<10x10xbf16>, vector<10x8xbf16>, vector<10x8xf32> -> vector<10x8xf32>
    %344 = arith.truncf %343 : vector<10x8xf32> to vector<10x8xbf16>
    %c4_206 = arith.constant 4 : index
    %c0_207 = arith.constant 0 : index
    %c0_208 = arith.constant 0 : index
    %345 = vector.load %arg14[%c4_206, %c0_207, %c0_208] : memref<8x8x32xbf16, #tpu.memory_space<vmem>>, vector<1x8x32xbf16>
    %346 = vector.shape_cast %345 : vector<1x8x32xbf16> to vector<8x32xbf16>
    %cst_209 = arith.constant dense<0.000000e+00> : vector<10x32xf32>
    %347 = tpu.matmul %344, %346, %cst_209 {dimension_numbers = #tpu.dot_dimension_numbers<[1], [0], [0], [1], [0, 0, 1, 1], [], []>} : vector<10x8xbf16>, vector<8x32xbf16>, vector<10x32xf32> -> vector<10x32xf32>
    %348 = arith.addf %303, %347 : vector<10x32xf32>
    %c5 = arith.constant 5 : index
    %c0_210 = arith.constant 0 : index
    %c0_211 = arith.constant 0 : index
    %349 = vector.load %arg8[%c5, %c0_210, %c0_211] : memref<8x32x8xbf16, #tpu.memory_space<vmem>>, vector<1x32x8xbf16>
    %350 = vector.shape_cast %349 : vector<1x32x8xbf16> to vector<32x8xbf16>
    %cst_212 = arith.constant dense<0.000000e+00> : vector<10x8xf32>
    %351 = tpu.matmul %302, %350, %cst_212 {dimension_numbers = #tpu.dot_dimension_numbers<[1], [0], [0], [1], [0, 0, 1, 1], [], []>} : vector<10x32xbf16>, vector<32x8xbf16>, vector<10x8xf32> -> vector<10x8xf32>
    %c5_213 = arith.constant 5 : index
    %c0_214 = arith.constant 0 : index
    %c0_215 = arith.constant 0 : index
    %352 = vector.load %arg11[%c5_213, %c0_214, %c0_215] : memref<8x1x8xf32, #tpu.memory_space<vmem>>, vector<1x1x8xf32>
    %353 = vector.shape_cast %352 : vector<1x1x8xf32> to vector<1x8xf32>
    %354 = vector.broadcast %353 : vector<1x8xf32> to vector<10x8xf32>
    %355 = arith.addf %351, %354 : vector<10x8xf32>
    %c5_216 = arith.constant 5 : index
    %c0_217 = arith.constant 0 : index
    %c0_218 = arith.constant 0 : index
    %356 = vector.load %arg9[%c5_216, %c0_217, %c0_218] : memref<8x32x8xbf16, #tpu.memory_space<vmem>>, vector<1x32x8xbf16>
    %357 = vector.shape_cast %356 : vector<1x32x8xbf16> to vector<32x8xbf16>
    %cst_219 = arith.constant dense<0.000000e+00> : vector<10x8xf32>
    %358 = tpu.matmul %302, %357, %cst_219 {dimension_numbers = #tpu.dot_dimension_numbers<[1], [0], [0], [1], [0, 0, 1, 1], [], []>} : vector<10x32xbf16>, vector<32x8xbf16>, vector<10x8xf32> -> vector<10x8xf32>
    %c5_220 = arith.constant 5 : index
    %c0_221 = arith.constant 0 : index
    %c0_222 = arith.constant 0 : index
    %359 = vector.load %arg12[%c5_220, %c0_221, %c0_222] : memref<8x1x8xf32, #tpu.memory_space<vmem>>, vector<1x1x8xf32>
    %360 = vector.shape_cast %359 : vector<1x1x8xf32> to vector<1x8xf32>
    %361 = vector.broadcast %360 : vector<1x8xf32> to vector<10x8xf32>
    %362 = arith.addf %358, %361 : vector<10x8xf32>
    %c5_223 = arith.constant 5 : index
    %c0_224 = arith.constant 0 : index
    %c0_225 = arith.constant 0 : index
    %363 = vector.load %arg10[%c5_223, %c0_224, %c0_225] : memref<8x32x8xbf16, #tpu.memory_space<vmem>>, vector<1x32x8xbf16>
    %364 = vector.shape_cast %363 : vector<1x32x8xbf16> to vector<32x8xbf16>
    %cst_226 = arith.constant dense<0.000000e+00> : vector<10x8xf32>
    %365 = tpu.matmul %302, %364, %cst_226 {dimension_numbers = #tpu.dot_dimension_numbers<[1], [0], [0], [1], [0, 0, 1, 1], [], []>} : vector<10x32xbf16>, vector<32x8xbf16>, vector<10x8xf32> -> vector<10x8xf32>
    %c5_227 = arith.constant 5 : index
    %c0_228 = arith.constant 0 : index
    %c0_229 = arith.constant 0 : index
    %366 = vector.load %arg13[%c5_227, %c0_228, %c0_229] : memref<8x1x8xf32, #tpu.memory_space<vmem>>, vector<1x1x8xf32>
    %367 = vector.shape_cast %366 : vector<1x1x8xf32> to vector<1x8xf32>
    %368 = vector.broadcast %367 : vector<1x8xf32> to vector<10x8xf32>
    %369 = arith.addf %365, %368 : vector<10x8xf32>
    %370 = arith.truncf %355 : vector<10x8xf32> to vector<10x8xbf16>
    %371 = arith.truncf %362 : vector<10x8xf32> to vector<10x8xbf16>
    %cst_230 = arith.constant dense<0.000000e+00> : vector<10x10xf32>
    %372 = tpu.matmul %370, %371, %cst_230 {dimension_numbers = #tpu.dot_dimension_numbers<[1], [1], [0], [0], [0, 0, 1, 0], [], []>} : vector<10x8xbf16>, vector<10x8xbf16>, vector<10x10xf32> -> vector<10x10xf32>
    %cst_231 = arith.constant 0.353553385 : f32
    %373 = vector.broadcast %cst_231 : f32 to vector<10x10xf32>
    %374 = arith.mulf %372, %373 : vector<10x10xf32>
    %375 = arith.addf %374, %6 : vector<10x10xf32>
    %cst_232 = arith.constant dense<0xFF800000> : vector<10xf32>
    %376 = vector.multi_reduction <maximumf>, %375, %cst_232 [1] : vector<10x10xf32> to vector<10xf32>
    %377 = vector.shape_cast %376 : vector<10xf32> to vector<10x1xf32>
    %378 = vector.broadcast %377 : vector<10x1xf32> to vector<10x10xf32>
    %379 = arith.subf %375, %378 : vector<10x10xf32>
    %380 = math.exp %379 : vector<10x10xf32>
    %cst_233 = arith.constant dense<0.000000e+00> : vector<10xf32>
    %381 = vector.multi_reduction <add>, %380, %cst_233 [1] : vector<10x10xf32> to vector<10xf32>
    %382 = vector.shape_cast %381 : vector<10xf32> to vector<10x1xf32>
    %383 = tpu.reciprocal %382 {approx = true} : vector<10x1xf32> -> vector<10x1xf32>
    %384 = vector.broadcast %383 : vector<10x1xf32> to vector<10x10xf32>
    %385 = arith.mulf %380, %384 : vector<10x10xf32>
    %386 = arith.truncf %385 : vector<10x10xf32> to vector<10x10xbf16>
    %387 = arith.truncf %369 : vector<10x8xf32> to vector<10x8xbf16>
    %cst_234 = arith.constant dense<0.000000e+00> : vector<10x8xf32>
    %388 = tpu.matmul %386, %387, %cst_234 {dimension_numbers = #tpu.dot_dimension_numbers<[1], [0], [0], [1], [0, 0, 1, 1], [], []>} : vector<10x10xbf16>, vector<10x8xbf16>, vector<10x8xf32> -> vector<10x8xf32>
    %389 = arith.truncf %388 : vector<10x8xf32> to vector<10x8xbf16>
    %c5_235 = arith.constant 5 : index
    %c0_236 = arith.constant 0 : index
    %c0_237 = arith.constant 0 : index
    %390 = vector.load %arg14[%c5_235, %c0_236, %c0_237] : memref<8x8x32xbf16, #tpu.memory_space<vmem>>, vector<1x8x32xbf16>
    %391 = vector.shape_cast %390 : vector<1x8x32xbf16> to vector<8x32xbf16>
    %cst_238 = arith.constant dense<0.000000e+00> : vector<10x32xf32>
    %392 = tpu.matmul %389, %391, %cst_238 {dimension_numbers = #tpu.dot_dimension_numbers<[1], [0], [0], [1], [0, 0, 1, 1], [], []>} : vector<10x8xbf16>, vector<8x32xbf16>, vector<10x32xf32> -> vector<10x32xf32>
    %393 = arith.addf %348, %392 : vector<10x32xf32>
    %c6 = arith.constant 6 : index
    %c0_239 = arith.constant 0 : index
    %c0_240 = arith.constant 0 : index
    %394 = vector.load %arg8[%c6, %c0_239, %c0_240] : memref<8x32x8xbf16, #tpu.memory_space<vmem>>, vector<1x32x8xbf16>
    %395 = vector.shape_cast %394 : vector<1x32x8xbf16> to vector<32x8xbf16>
    %cst_241 = arith.constant dense<0.000000e+00> : vector<10x8xf32>
    %396 = tpu.matmul %302, %395, %cst_241 {dimension_numbers = #tpu.dot_dimension_numbers<[1], [0], [0], [1], [0, 0, 1, 1], [], []>} : vector<10x32xbf16>, vector<32x8xbf16>, vector<10x8xf32> -> vector<10x8xf32>
    %c6_242 = arith.constant 6 : index
    %c0_243 = arith.constant 0 : index
    %c0_244 = arith.constant 0 : index
    %397 = vector.load %arg11[%c6_242, %c0_243, %c0_244] : memref<8x1x8xf32, #tpu.memory_space<vmem>>, vector<1x1x8xf32>
    %398 = vector.shape_cast %397 : vector<1x1x8xf32> to vector<1x8xf32>
    %399 = vector.broadcast %398 : vector<1x8xf32> to vector<10x8xf32>
    %400 = arith.addf %396, %399 : vector<10x8xf32>
    %c6_245 = arith.constant 6 : index
    %c0_246 = arith.constant 0 : index
    %c0_247 = arith.constant 0 : index
    %401 = vector.load %arg9[%c6_245, %c0_246, %c0_247] : memref<8x32x8xbf16, #tpu.memory_space<vmem>>, vector<1x32x8xbf16>
    %402 = vector.shape_cast %401 : vector<1x32x8xbf16> to vector<32x8xbf16>
    %cst_248 = arith.constant dense<0.000000e+00> : vector<10x8xf32>
    %403 = tpu.matmul %302, %402, %cst_248 {dimension_numbers = #tpu.dot_dimension_numbers<[1], [0], [0], [1], [0, 0, 1, 1], [], []>} : vector<10x32xbf16>, vector<32x8xbf16>, vector<10x8xf32> -> vector<10x8xf32>
    %c6_249 = arith.constant 6 : index
    %c0_250 = arith.constant 0 : index
    %c0_251 = arith.constant 0 : index
    %404 = vector.load %arg12[%c6_249, %c0_250, %c0_251] : memref<8x1x8xf32, #tpu.memory_space<vmem>>, vector<1x1x8xf32>
    %405 = vector.shape_cast %404 : vector<1x1x8xf32> to vector<1x8xf32>
    %406 = vector.broadcast %405 : vector<1x8xf32> to vector<10x8xf32>
    %407 = arith.addf %403, %406 : vector<10x8xf32>
    %c6_252 = arith.constant 6 : index
    %c0_253 = arith.constant 0 : index
    %c0_254 = arith.constant 0 : index
    %408 = vector.load %arg10[%c6_252, %c0_253, %c0_254] : memref<8x32x8xbf16, #tpu.memory_space<vmem>>, vector<1x32x8xbf16>
    %409 = vector.shape_cast %408 : vector<1x32x8xbf16> to vector<32x8xbf16>
    %cst_255 = arith.constant dense<0.000000e+00> : vector<10x8xf32>
    %410 = tpu.matmul %302, %409, %cst_255 {dimension_numbers = #tpu.dot_dimension_numbers<[1], [0], [0], [1], [0, 0, 1, 1], [], []>} : vector<10x32xbf16>, vector<32x8xbf16>, vector<10x8xf32> -> vector<10x8xf32>
    %c6_256 = arith.constant 6 : index
    %c0_257 = arith.constant 0 : index
    %c0_258 = arith.constant 0 : index
    %411 = vector.load %arg13[%c6_256, %c0_257, %c0_258] : memref<8x1x8xf32, #tpu.memory_space<vmem>>, vector<1x1x8xf32>
    %412 = vector.shape_cast %411 : vector<1x1x8xf32> to vector<1x8xf32>
    %413 = vector.broadcast %412 : vector<1x8xf32> to vector<10x8xf32>
    %414 = arith.addf %410, %413 : vector<10x8xf32>
    %415 = arith.truncf %400 : vector<10x8xf32> to vector<10x8xbf16>
    %416 = arith.truncf %407 : vector<10x8xf32> to vector<10x8xbf16>
    %cst_259 = arith.constant dense<0.000000e+00> : vector<10x10xf32>
    %417 = tpu.matmul %415, %416, %cst_259 {dimension_numbers = #tpu.dot_dimension_numbers<[1], [1], [0], [0], [0, 0, 1, 0], [], []>} : vector<10x8xbf16>, vector<10x8xbf16>, vector<10x10xf32> -> vector<10x10xf32>
    %cst_260 = arith.constant 0.353553385 : f32
    %418 = vector.broadcast %cst_260 : f32 to vector<10x10xf32>
    %419 = arith.mulf %417, %418 : vector<10x10xf32>
    %420 = arith.addf %419, %6 : vector<10x10xf32>
    %cst_261 = arith.constant dense<0xFF800000> : vector<10xf32>
    %421 = vector.multi_reduction <maximumf>, %420, %cst_261 [1] : vector<10x10xf32> to vector<10xf32>
    %422 = vector.shape_cast %421 : vector<10xf32> to vector<10x1xf32>
    %423 = vector.broadcast %422 : vector<10x1xf32> to vector<10x10xf32>
    %424 = arith.subf %420, %423 : vector<10x10xf32>
    %425 = math.exp %424 : vector<10x10xf32>
    %cst_262 = arith.constant dense<0.000000e+00> : vector<10xf32>
    %426 = vector.multi_reduction <add>, %425, %cst_262 [1] : vector<10x10xf32> to vector<10xf32>
    %427 = vector.shape_cast %426 : vector<10xf32> to vector<10x1xf32>
    %428 = tpu.reciprocal %427 {approx = true} : vector<10x1xf32> -> vector<10x1xf32>
    %429 = vector.broadcast %428 : vector<10x1xf32> to vector<10x10xf32>
    %430 = arith.mulf %425, %429 : vector<10x10xf32>
    %431 = arith.truncf %430 : vector<10x10xf32> to vector<10x10xbf16>
    %432 = arith.truncf %414 : vector<10x8xf32> to vector<10x8xbf16>
    %cst_263 = arith.constant dense<0.000000e+00> : vector<10x8xf32>
    %433 = tpu.matmul %431, %432, %cst_263 {dimension_numbers = #tpu.dot_dimension_numbers<[1], [0], [0], [1], [0, 0, 1, 1], [], []>} : vector<10x10xbf16>, vector<10x8xbf16>, vector<10x8xf32> -> vector<10x8xf32>
    %434 = arith.truncf %433 : vector<10x8xf32> to vector<10x8xbf16>
    %c6_264 = arith.constant 6 : index
    %c0_265 = arith.constant 0 : index
    %c0_266 = arith.constant 0 : index
    %435 = vector.load %arg14[%c6_264, %c0_265, %c0_266] : memref<8x8x32xbf16, #tpu.memory_space<vmem>>, vector<1x8x32xbf16>
    %436 = vector.shape_cast %435 : vector<1x8x32xbf16> to vector<8x32xbf16>
    %cst_267 = arith.constant dense<0.000000e+00> : vector<10x32xf32>
    %437 = tpu.matmul %434, %436, %cst_267 {dimension_numbers = #tpu.dot_dimension_numbers<[1], [0], [0], [1], [0, 0, 1, 1], [], []>} : vector<10x8xbf16>, vector<8x32xbf16>, vector<10x32xf32> -> vector<10x32xf32>
    %438 = arith.addf %393, %437 : vector<10x32xf32>
    %c7 = arith.constant 7 : index
    %c0_268 = arith.constant 0 : index
    %c0_269 = arith.constant 0 : index
    %439 = vector.load %arg8[%c7, %c0_268, %c0_269] : memref<8x32x8xbf16, #tpu.memory_space<vmem>>, vector<1x32x8xbf16>
    %440 = vector.shape_cast %439 : vector<1x32x8xbf16> to vector<32x8xbf16>
    %cst_270 = arith.constant dense<0.000000e+00> : vector<10x8xf32>
    %441 = tpu.matmul %302, %440, %cst_270 {dimension_numbers = #tpu.dot_dimension_numbers<[1], [0], [0], [1], [0, 0, 1, 1], [], []>} : vector<10x32xbf16>, vector<32x8xbf16>, vector<10x8xf32> -> vector<10x8xf32>
    %c7_271 = arith.constant 7 : index
    %c0_272 = arith.constant 0 : index
    %c0_273 = arith.constant 0 : index
    %442 = vector.load %arg11[%c7_271, %c0_272, %c0_273] : memref<8x1x8xf32, #tpu.memory_space<vmem>>, vector<1x1x8xf32>
    %443 = vector.shape_cast %442 : vector<1x1x8xf32> to vector<1x8xf32>
    %444 = vector.broadcast %443 : vector<1x8xf32> to vector<10x8xf32>
    %445 = arith.addf %441, %444 : vector<10x8xf32>
    %c7_274 = arith.constant 7 : index
    %c0_275 = arith.constant 0 : index
    %c0_276 = arith.constant 0 : index
    %446 = vector.load %arg9[%c7_274, %c0_275, %c0_276] : memref<8x32x8xbf16, #tpu.memory_space<vmem>>, vector<1x32x8xbf16>
    %447 = vector.shape_cast %446 : vector<1x32x8xbf16> to vector<32x8xbf16>
    %cst_277 = arith.constant dense<0.000000e+00> : vector<10x8xf32>
    %448 = tpu.matmul %302, %447, %cst_277 {dimension_numbers = #tpu.dot_dimension_numbers<[1], [0], [0], [1], [0, 0, 1, 1], [], []>} : vector<10x32xbf16>, vector<32x8xbf16>, vector<10x8xf32> -> vector<10x8xf32>
    %c7_278 = arith.constant 7 : index
    %c0_279 = arith.constant 0 : index
    %c0_280 = arith.constant 0 : index
    %449 = vector.load %arg12[%c7_278, %c0_279, %c0_280] : memref<8x1x8xf32, #tpu.memory_space<vmem>>, vector<1x1x8xf32>
    %450 = vector.shape_cast %449 : vector<1x1x8xf32> to vector<1x8xf32>
    %451 = vector.broadcast %450 : vector<1x8xf32> to vector<10x8xf32>
    %452 = arith.addf %448, %451 : vector<10x8xf32>
    %c7_281 = arith.constant 7 : index
    %c0_282 = arith.constant 0 : index
    %c0_283 = arith.constant 0 : index
    %453 = vector.load %arg10[%c7_281, %c0_282, %c0_283] : memref<8x32x8xbf16, #tpu.memory_space<vmem>>, vector<1x32x8xbf16>
    %454 = vector.shape_cast %453 : vector<1x32x8xbf16> to vector<32x8xbf16>
    %cst_284 = arith.constant dense<0.000000e+00> : vector<10x8xf32>
    %455 = tpu.matmul %302, %454, %cst_284 {dimension_numbers = #tpu.dot_dimension_numbers<[1], [0], [0], [1], [0, 0, 1, 1], [], []>} : vector<10x32xbf16>, vector<32x8xbf16>, vector<10x8xf32> -> vector<10x8xf32>
    %c7_285 = arith.constant 7 : index
    %c0_286 = arith.constant 0 : index
    %c0_287 = arith.constant 0 : index
    %456 = vector.load %arg13[%c7_285, %c0_286, %c0_287] : memref<8x1x8xf32, #tpu.memory_space<vmem>>, vector<1x1x8xf32>
    %457 = vector.shape_cast %456 : vector<1x1x8xf32> to vector<1x8xf32>
    %458 = vector.broadcast %457 : vector<1x8xf32> to vector<10x8xf32>
    %459 = arith.addf %455, %458 : vector<10x8xf32>
    %460 = arith.truncf %445 : vector<10x8xf32> to vector<10x8xbf16>
    %461 = arith.truncf %452 : vector<10x8xf32> to vector<10x8xbf16>
    %cst_288 = arith.constant dense<0.000000e+00> : vector<10x10xf32>
    %462 = tpu.matmul %460, %461, %cst_288 {dimension_numbers = #tpu.dot_dimension_numbers<[1], [1], [0], [0], [0, 0, 1, 0], [], []>} : vector<10x8xbf16>, vector<10x8xbf16>, vector<10x10xf32> -> vector<10x10xf32>
    %cst_289 = arith.constant 0.353553385 : f32
    %463 = vector.broadcast %cst_289 : f32 to vector<10x10xf32>
    %464 = arith.mulf %462, %463 : vector<10x10xf32>
    %465 = arith.addf %464, %6 : vector<10x10xf32>
    %cst_290 = arith.constant dense<0xFF800000> : vector<10xf32>
    %466 = vector.multi_reduction <maximumf>, %465, %cst_290 [1] : vector<10x10xf32> to vector<10xf32>
    %467 = vector.shape_cast %466 : vector<10xf32> to vector<10x1xf32>
    %468 = vector.broadcast %467 : vector<10x1xf32> to vector<10x10xf32>
    %469 = arith.subf %465, %468 : vector<10x10xf32>
    %470 = math.exp %469 : vector<10x10xf32>
    %cst_291 = arith.constant dense<0.000000e+00> : vector<10xf32>
    %471 = vector.multi_reduction <add>, %470, %cst_291 [1] : vector<10x10xf32> to vector<10xf32>
    %472 = vector.shape_cast %471 : vector<10xf32> to vector<10x1xf32>
    %473 = tpu.reciprocal %472 {approx = true} : vector<10x1xf32> -> vector<10x1xf32>
    %474 = vector.broadcast %473 : vector<10x1xf32> to vector<10x10xf32>
    %475 = arith.mulf %470, %474 : vector<10x10xf32>
    %476 = arith.truncf %475 : vector<10x10xf32> to vector<10x10xbf16>
    %477 = arith.truncf %459 : vector<10x8xf32> to vector<10x8xbf16>
    %cst_292 = arith.constant dense<0.000000e+00> : vector<10x8xf32>
    %478 = tpu.matmul %476, %477, %cst_292 {dimension_numbers = #tpu.dot_dimension_numbers<[1], [0], [0], [1], [0, 0, 1, 1], [], []>} : vector<10x10xbf16>, vector<10x8xbf16>, vector<10x8xf32> -> vector<10x8xf32>
    %479 = arith.truncf %478 : vector<10x8xf32> to vector<10x8xbf16>
    %c7_293 = arith.constant 7 : index
    %c0_294 = arith.constant 0 : index
    %c0_295 = arith.constant 0 : index
    %480 = vector.load %arg14[%c7_293, %c0_294, %c0_295] : memref<8x8x32xbf16, #tpu.memory_space<vmem>>, vector<1x8x32xbf16>
    %481 = vector.shape_cast %480 : vector<1x8x32xbf16> to vector<8x32xbf16>
    %cst_296 = arith.constant dense<0.000000e+00> : vector<10x32xf32>
    %482 = tpu.matmul %479, %481, %cst_296 {dimension_numbers = #tpu.dot_dimension_numbers<[1], [0], [0], [1], [0, 0, 1, 1], [], []>} : vector<10x8xbf16>, vector<8x32xbf16>, vector<10x32xf32> -> vector<10x32xf32>
    %483 = arith.addf %438, %482 : vector<10x32xf32>
    %484 = arith.addf %275, %483 : vector<10x32xf32>
    %c1_297 = arith.constant 1 : index
    %c0_298 = arith.constant 0 : index
    %c0_299 = arith.constant 0 : index
    %485 = vector.load %arg15[%c1_297, %c0_298, %c0_299] : memref<2x1x32xf32, #tpu.memory_space<vmem>>, vector<1x1x32xf32>
    %486 = vector.shape_cast %485 : vector<1x1x32xf32> to vector<1x32xf32>
    %487 = vector.broadcast %486 : vector<1x32xf32> to vector<10x32xf32>
    %488 = arith.addf %484, %487 : vector<10x32xf32>
    %c1_300 = arith.constant 1 : index
    %c0_301 = arith.constant 0 : index
    %c0_302 = arith.constant 0 : index
    %489 = vector.load %arg16[%c1_300, %c0_301, %c0_302] : memref<2x1x32xf32, #tpu.memory_space<vmem>>, vector<1x1x32xf32>
    %490 = vector.shape_cast %489 : vector<1x1x32xf32> to vector<1x32xf32>
    %c1_303 = arith.constant 1 : index
    %c0_304 = arith.constant 0 : index
    %c0_305 = arith.constant 0 : index
    %491 = vector.load %arg17[%c1_303, %c0_304, %c0_305] : memref<2x1x32xf32, #tpu.memory_space<vmem>>, vector<1x1x32xf32>
    %492 = vector.shape_cast %491 : vector<1x1x32xf32> to vector<1x32xf32>
    %cst_306 = arith.constant dense<0.000000e+00> : vector<10xf32>
    %493 = vector.multi_reduction <add>, %488, %cst_306 [1] : vector<10x32xf32> to vector<10xf32>
    %494 = vector.shape_cast %493 : vector<10xf32> to vector<10x1xf32>
    %cst_307 = arith.constant 3.200000e+01 : f32
    %495 = vector.broadcast %cst_307 : f32 to vector<10x1xf32>
    %496 = arith.divf %494, %495 : vector<10x1xf32>
    %497 = vector.broadcast %496 : vector<10x1xf32> to vector<10x32xf32>
    %498 = arith.subf %488, %497 : vector<10x32xf32>
    %499 = arith.mulf %498, %498 : vector<10x32xf32>
    %cst_308 = arith.constant dense<0.000000e+00> : vector<10xf32>
    %500 = vector.multi_reduction <add>, %499, %cst_308 [1] : vector<10x32xf32> to vector<10xf32>
    %501 = vector.shape_cast %500 : vector<10xf32> to vector<10x1xf32>
    %cst_309 = arith.constant 3.200000e+01 : f32
    %502 = vector.broadcast %cst_309 : f32 to vector<10x1xf32>
    %503 = arith.divf %501, %502 : vector<10x1xf32>
    %504 = vector.broadcast %496 : vector<10x1xf32> to vector<10x32xf32>
    %505 = arith.subf %488, %504 : vector<10x32xf32>
    %cst_310 = arith.constant 9.99999997E-7 : f32
    %506 = vector.broadcast %cst_310 : f32 to vector<10x1xf32>
    %507 = arith.addf %503, %506 : vector<10x1xf32>
    %508 = math.rsqrt %507 : vector<10x1xf32>
    %509 = vector.broadcast %508 : vector<10x1xf32> to vector<10x32xf32>
    %510 = arith.mulf %505, %509 : vector<10x32xf32>
    %511 = vector.broadcast %490 : vector<1x32xf32> to vector<10x32xf32>
    %512 = arith.mulf %510, %511 : vector<10x32xf32>
    %513 = vector.broadcast %492 : vector<1x32xf32> to vector<10x32xf32>
    %514 = arith.addf %512, %513 : vector<10x32xf32>
    %c1_311 = arith.constant 1 : index
    %c0_312 = arith.constant 0 : index
    %c0_313 = arith.constant 0 : index
    %515 = vector.load %arg18[%c1_311, %c0_312, %c0_313] : memref<2x32x128xbf16, #tpu.memory_space<vmem>>, vector<1x32x128xbf16>
    %516 = vector.shape_cast %515 : vector<1x32x128xbf16> to vector<32x128xbf16>
    %517 = arith.truncf %514 : vector<10x32xf32> to vector<10x32xbf16>
    %cst_314 = arith.constant dense<0.000000e+00> : vector<10x128xf32>
    %518 = tpu.matmul %517, %516, %cst_314 {dimension_numbers = #tpu.dot_dimension_numbers<[1], [0], [0], [1], [0, 0, 1, 1], [], []>} : vector<10x32xbf16>, vector<32x128xbf16>, vector<10x128xf32> -> vector<10x128xf32>
    %c1_315 = arith.constant 1 : index
    %c0_316 = arith.constant 0 : index
    %c0_317 = arith.constant 0 : index
    %519 = vector.load %arg19[%c1_315, %c0_316, %c0_317] : memref<2x1x128xf32, #tpu.memory_space<vmem>>, vector<1x1x128xf32>
    %520 = vector.shape_cast %519 : vector<1x1x128xf32> to vector<1x128xf32>
    %521 = vector.broadcast %520 : vector<1x128xf32> to vector<10x128xf32>
    %522 = arith.addf %518, %521 : vector<10x128xf32>
    %523 = arith.mulf %522, %522 : vector<10x128xf32>
    %524 = arith.mulf %522, %523 : vector<10x128xf32>
    %cst_318 = arith.constant 4.471500e-02 : f32
    %525 = vector.broadcast %cst_318 : f32 to vector<10x128xf32>
    %526 = arith.mulf %525, %524 : vector<10x128xf32>
    %527 = arith.addf %522, %526 : vector<10x128xf32>
    %cst_319 = arith.constant 0.797884583 : f32
    %528 = vector.broadcast %cst_319 : f32 to vector<10x128xf32>
    %529 = arith.mulf %528, %527 : vector<10x128xf32>
    %530 = math.tanh %529 : vector<10x128xf32>
    %cst_320 = arith.constant 1.000000e+00 : f32
    %531 = vector.broadcast %cst_320 : f32 to vector<10x128xf32>
    %532 = arith.addf %531, %530 : vector<10x128xf32>
    %cst_321 = arith.constant 5.000000e-01 : f32
    %533 = vector.broadcast %cst_321 : f32 to vector<10x128xf32>
    %534 = arith.mulf %533, %532 : vector<10x128xf32>
    %535 = arith.mulf %522, %534 : vector<10x128xf32>
    %c1_322 = arith.constant 1 : index
    %c0_323 = arith.constant 0 : index
    %c0_324 = arith.constant 0 : index
    %536 = vector.load %arg20[%c1_322, %c0_323, %c0_324] : memref<2x128x32xbf16, #tpu.memory_space<vmem>>, vector<1x128x32xbf16>
    %537 = vector.shape_cast %536 : vector<1x128x32xbf16> to vector<128x32xbf16>
    %538 = arith.truncf %535 : vector<10x128xf32> to vector<10x128xbf16>
    %cst_325 = arith.constant dense<0.000000e+00> : vector<10x32xf32>
    %539 = tpu.matmul %538, %537, %cst_325 {dimension_numbers = #tpu.dot_dimension_numbers<[1], [0], [0], [1], [0, 0, 1, 1], [], []>} : vector<10x128xbf16>, vector<128x32xbf16>, vector<10x32xf32> -> vector<10x32xf32>
    %540 = arith.addf %488, %539 : vector<10x32xf32>
    %c1_326 = arith.constant 1 : index
    %c0_327 = arith.constant 0 : index
    %c0_328 = arith.constant 0 : index
    %541 = vector.load %arg21[%c1_326, %c0_327, %c0_328] : memref<2x1x32xf32, #tpu.memory_space<vmem>>, vector<1x1x32xf32>
    %542 = vector.shape_cast %541 : vector<1x1x32xf32> to vector<1x32xf32>
    %543 = vector.broadcast %542 : vector<1x32xf32> to vector<10x32xf32>
    %544 = arith.addf %540, %543 : vector<10x32xf32>
    %c0_329 = arith.constant 0 : index
    %c0_330 = arith.constant 0 : index
    %545 = vector.load %arg22[%c0_329, %c0_330] : memref<1x32xf32, #tpu.memory_space<vmem>>, vector<1x32xf32>
    %c0_331 = arith.constant 0 : index
    %c0_332 = arith.constant 0 : index
    %546 = vector.load %arg23[%c0_331, %c0_332] : memref<1x32xf32, #tpu.memory_space<vmem>>, vector<1x32xf32>
    %cst_333 = arith.constant dense<0.000000e+00> : vector<10xf32>
    %547 = vector.multi_reduction <add>, %544, %cst_333 [1] : vector<10x32xf32> to vector<10xf32>
    %548 = vector.shape_cast %547 : vector<10xf32> to vector<10x1xf32>
    %cst_334 = arith.constant 3.200000e+01 : f32
    %549 = vector.broadcast %cst_334 : f32 to vector<10x1xf32>
    %550 = arith.divf %548, %549 : vector<10x1xf32>
    %551 = vector.broadcast %550 : vector<10x1xf32> to vector<10x32xf32>
    %552 = arith.subf %544, %551 : vector<10x32xf32>
    %553 = arith.mulf %552, %552 : vector<10x32xf32>
    %cst_335 = arith.constant dense<0.000000e+00> : vector<10xf32>
    %554 = vector.multi_reduction <add>, %553, %cst_335 [1] : vector<10x32xf32> to vector<10xf32>
    %555 = vector.shape_cast %554 : vector<10xf32> to vector<10x1xf32>
    %cst_336 = arith.constant 3.200000e+01 : f32
    %556 = vector.broadcast %cst_336 : f32 to vector<10x1xf32>
    %557 = arith.divf %555, %556 : vector<10x1xf32>
    %558 = vector.broadcast %550 : vector<10x1xf32> to vector<10x32xf32>
    %559 = arith.subf %544, %558 : vector<10x32xf32>
    %cst_337 = arith.constant 9.99999997E-7 : f32
    %560 = vector.broadcast %cst_337 : f32 to vector<10x1xf32>
    %561 = arith.addf %557, %560 : vector<10x1xf32>
    %562 = math.rsqrt %561 : vector<10x1xf32>
    %563 = vector.broadcast %562 : vector<10x1xf32> to vector<10x32xf32>
    %564 = arith.mulf %559, %563 : vector<10x32xf32>
    %565 = vector.broadcast %545 : vector<1x32xf32> to vector<10x32xf32>
    %566 = arith.mulf %564, %565 : vector<10x32xf32>
    %567 = vector.broadcast %546 : vector<1x32xf32> to vector<10x32xf32>
    %568 = arith.addf %566, %567 : vector<10x32xf32>
    %c0_338 = arith.constant 0 : index
    %c0_339 = arith.constant 0 : index
    %569 = vector.load %arg24[%c0_338, %c0_339] : memref<32x1xf32, #tpu.memory_space<vmem>>, vector<32x1xf32>
    %cst_340 = arith.constant dense<0.000000e+00> : vector<10x1xf32>
    %570 = tpu.matmul %568, %569, %cst_340 {dimension_numbers = #tpu.dot_dimension_numbers<[1], [0], [0], [1], [0, 0, 1, 1], [], []>} : vector<10x32xf32>, vector<32x1xf32>, vector<10x1xf32> -> vector<10x1xf32>
    %cst_341 = arith.constant dense<0xFF800000> : vector<1xf32>
    %571 = vector.multi_reduction <maximumf>, %570, %cst_341 [0] : vector<10x1xf32> to vector<1xf32>
    %572 = vector.shape_cast %571 : vector<1xf32> to vector<1x1xf32>
    %573 = vector.broadcast %572 : vector<1x1xf32> to vector<10x1xf32>
    %574 = arith.subf %570, %573 : vector<10x1xf32>
    %575 = math.exp %574 : vector<10x1xf32>
    %c0_342 = arith.constant 0 : index
    %c0_343 = arith.constant 0 : index
    %576 = vector.load %arg5[%c0_342, %c0_343] : memref<2x10xf32, #tpu.memory_space<vmem>>, vector<2x10xf32>
    %577 = vector.broadcast %575 : vector<10x1xf32> to vector<10x32xf32>
    %578 = arith.mulf %577, %568 : vector<10x32xf32>
    %cst_344 = arith.constant dense<0.000000e+00> : vector<2x32xf32>
    %579 = tpu.matmul %576, %578, %cst_344 {dimension_numbers = #tpu.dot_dimension_numbers<[1], [0], [0], [1], [0, 0, 1, 1], [], []>} : vector<2x10xf32>, vector<10x32xf32>, vector<2x32xf32> -> vector<2x32xf32>
    %cst_345 = arith.constant dense<0.000000e+00> : vector<2x1xf32>
    %580 = tpu.matmul %576, %575, %cst_345 {dimension_numbers = #tpu.dot_dimension_numbers<[1], [0], [0], [1], [0, 0, 1, 1], [], []>} : vector<2x10xf32>, vector<10x1xf32>, vector<2x1xf32> -> vector<2x1xf32>
    %581 = tpu.reciprocal %580 {approx = true} : vector<2x1xf32> -> vector<2x1xf32>
    %582 = vector.broadcast %581 : vector<2x1xf32> to vector<2x32xf32>
    %583 = arith.mulf %579, %582 : vector<2x32xf32>
    %c0_346 = arith.constant 0 : index
    %c0_347 = arith.constant 0 : index
    %584 = vector.load %arg25[%c0_346, %c0_347] : memref<1x32xf32, #tpu.memory_space<vmem>>, vector<1x32xf32>
    %c0_348 = arith.constant 0 : index
    %c0_349 = arith.constant 0 : index
    %585 = vector.load %arg26[%c0_348, %c0_349] : memref<1x32xf32, #tpu.memory_space<vmem>>, vector<1x32xf32>
    %cst_350 = arith.constant dense<0.000000e+00> : vector<2xf32>
    %586 = vector.multi_reduction <add>, %583, %cst_350 [1] : vector<2x32xf32> to vector<2xf32>
    %587 = vector.shape_cast %586 : vector<2xf32> to vector<2x1xf32>
    %cst_351 = arith.constant 3.200000e+01 : f32
    %588 = vector.broadcast %cst_351 : f32 to vector<2x1xf32>
    %589 = arith.divf %587, %588 : vector<2x1xf32>
    %590 = vector.broadcast %589 : vector<2x1xf32> to vector<2x32xf32>
    %591 = arith.subf %583, %590 : vector<2x32xf32>
    %592 = arith.mulf %591, %591 : vector<2x32xf32>
    %cst_352 = arith.constant dense<0.000000e+00> : vector<2xf32>
    %593 = vector.multi_reduction <add>, %592, %cst_352 [1] : vector<2x32xf32> to vector<2xf32>
    %594 = vector.shape_cast %593 : vector<2xf32> to vector<2x1xf32>
    %cst_353 = arith.constant 3.200000e+01 : f32
    %595 = vector.broadcast %cst_353 : f32 to vector<2x1xf32>
    %596 = arith.divf %594, %595 : vector<2x1xf32>
    %597 = vector.broadcast %589 : vector<2x1xf32> to vector<2x32xf32>
    %598 = arith.subf %583, %597 : vector<2x32xf32>
    %cst_354 = arith.constant 9.99999974E-6 : f32
    %599 = vector.broadcast %cst_354 : f32 to vector<2x1xf32>
    %600 = arith.addf %596, %599 : vector<2x1xf32>
    %601 = math.rsqrt %600 : vector<2x1xf32>
    %602 = vector.broadcast %601 : vector<2x1xf32> to vector<2x32xf32>
    %603 = arith.mulf %598, %602 : vector<2x32xf32>
    %604 = vector.broadcast %584 : vector<1x32xf32> to vector<2x32xf32>
    %605 = arith.mulf %603, %604 : vector<2x32xf32>
    %606 = vector.broadcast %585 : vector<1x32xf32> to vector<2x32xf32>
    %607 = arith.addf %605, %606 : vector<2x32xf32>
    %c0_355 = arith.constant 0 : index
    %c0_356 = arith.constant 0 : index
    %608 = vector.load %arg27[%c0_355, %c0_356] : memref<32x128xbf16, #tpu.memory_space<vmem>>, vector<32x128xbf16>
    %609 = arith.truncf %607 : vector<2x32xf32> to vector<2x32xbf16>
    %cst_357 = arith.constant dense<0.000000e+00> : vector<2x128xf32>
    %610 = tpu.matmul %609, %608, %cst_357 {dimension_numbers = #tpu.dot_dimension_numbers<[1], [0], [0], [1], [0, 0, 1, 1], [], []>} : vector<2x32xbf16>, vector<32x128xbf16>, vector<2x128xf32> -> vector<2x128xf32>
    %c0_358 = arith.constant 0 : index
    %c0_359 = arith.constant 0 : index
    %611 = vector.load %arg28[%c0_358, %c0_359] : memref<1x128xf32, #tpu.memory_space<vmem>>, vector<1x128xf32>
    %612 = vector.broadcast %611 : vector<1x128xf32> to vector<2x128xf32>
    %613 = arith.addf %610, %612 : vector<2x128xf32>
    %cst_360 = arith.constant 0.000000e+00 : f32
    %614 = vector.broadcast %cst_360 : f32 to vector<2x128xf32>
    %615 = arith.maximumf %613, %614 : vector<2x128xf32>
    %c0_361 = arith.constant 0 : index
    %c0_362 = arith.constant 0 : index
    %616 = vector.load %arg29[%c0_361, %c0_362] : memref<128x128xbf16, #tpu.memory_space<vmem>>, vector<128x128xbf16>
    %617 = arith.truncf %615 : vector<2x128xf32> to vector<2x128xbf16>
    %cst_363 = arith.constant dense<0.000000e+00> : vector<2x128xf32>
    %618 = tpu.matmul %617, %616, %cst_363 {dimension_numbers = #tpu.dot_dimension_numbers<[1], [0], [0], [1], [0, 0, 1, 1], [], []>} : vector<2x128xbf16>, vector<128x128xbf16>, vector<2x128xf32> -> vector<2x128xf32>
    %c0_364 = arith.constant 0 : index
    %c0_365 = arith.constant 0 : index
    %619 = vector.load %arg30[%c0_364, %c0_365] : memref<1x128xf32, #tpu.memory_space<vmem>>, vector<1x128xf32>
    %620 = vector.broadcast %619 : vector<1x128xf32> to vector<2x128xf32>
    %621 = arith.addf %618, %620 : vector<2x128xf32>
    %c0_366 = arith.constant 0 : index
    %c0_367 = arith.constant 0 : index
    %c0_368 = arith.constant 0 : index
    %622 = vector.load %arg31[%c0_366, %c0_367, %c0_368] : memref<1x2x128xf32, #tpu.memory_space<vmem>>, vector<1x2x128xf32>
    %623 = vector.shape_cast %622 : vector<1x2x128xf32> to vector<2x128xf32>
    %624 = vector.shape_cast %621 : vector<2x128xf32> to vector<1x2x128xf32>
    tpu.vector_store %arg31[%c0_366, %c0_367, %c0_368], %624 {strides = array<i32>} : memref<1x2x128xf32, #tpu.memory_space<vmem>>, vector<1x2x128xf32>,
    return
  }
  func.func @transform_0(%arg0: i32) -> (i32, i32, i32) {
    %c0_i32 = arith.constant 0 : i32
    %c0_i32_0 = arith.constant 0 : i32
    %c0_i32_1 = arith.constant 0 : i32
    return %arg0, %c0_i32, %c0_i32_0 : i32, i32, i32
  }
  func.func @transform_1(%arg0: i32) -> (i32, i32) {
    %c0_i32 = arith.constant 0 : i32
    %c0_i32_0 = arith.constant 0 : i32
    %c0_i32_1 = arith.constant 0 : i32
    return %c0_i32, %c0_i32_0 : i32, i32
  }
  func.func @transform_2(%arg0: i32) -> (i32, i32) {
    %c0_i32 = arith.constant 0 : i32
    %c0_i32_0 = arith.constant 0 : i32
    %c0_i32_1 = arith.constant 0 : i32
    return %c0_i32, %c0_i32_0 : i32, i32
  }
  func.func @transform_3(%arg0: i32) -> (i32, i32) {
    %c0_i32 = arith.constant 0 : i32
    %c0_i32_0 = arith.constant 0 : i32
    %c0_i32_1 = arith.constant 0 : i32
    return %c0_i32, %c0_i32_0 : i32, i32
  }
  func.func @transform_4(%arg0: i32) -> (i32, i32) {
    %c0_i32 = arith.constant 0 : i32
    %c0_i32_0 = arith.constant 0 : i32
    %c0_i32_1 = arith.constant 0 : i32
    return %c0_i32, %c0_i32_0 : i32, i32
  }
  func.func @transform_5(%arg0: i32) -> (i32, i32, i32) {
    %c0_i32 = arith.constant 0 : i32
    %c0_i32_0 = arith.constant 0 : i32
    %c0_i32_1 = arith.constant 0 : i32
    %c0_i32_2 = arith.constant 0 : i32
    return %c0_i32, %c0_i32_0, %c0_i32_1 : i32, i32, i32
  }
  func.func @transform_6(%arg0: i32) -> (i32, i32, i32) {
    %c0_i32 = arith.constant 0 : i32
    %c0_i32_0 = arith.constant 0 : i32
    %c0_i32_1 = arith.constant 0 : i32
    %c0_i32_2 = arith.constant 0 : i32
    return %c0_i32, %c0_i32_0, %c0_i32_1 : i32, i32, i32
  }
  func.func @transform_7(%arg0: i32) -> (i32, i32, i32) {
    %c0_i32 = arith.constant 0 : i32
    %c0_i32_0 = arith.constant 0 : i32
    %c0_i32_1 = arith.constant 0 : i32
    %c0_i32_2 = arith.constant 0 : i32
    return %c0_i32, %c0_i32_0, %c0_i32_1 : i32, i32, i32
  }
  func.func @transform_8(%arg0: i32) -> (i32, i32, i32) {
    %c0_i32 = arith.constant 0 : i32
    %c0_i32_0 = arith.constant 0 : i32
    %c0_i32_1 = arith.constant 0 : i32
    %c0_i32_2 = arith.constant 0 : i32
    return %c0_i32, %c0_i32_0, %c0_i32_1 : i32, i32, i32
  }
  func.func @transform_9(%arg0: i32) -> (i32, i32, i32) {
    %c0_i32 = arith.constant 0 : i32
    %c0_i32_0 = arith.constant 0 : i32
    %c0_i32_1 = arith.constant 0 : i32
    %c0_i32_2 = arith.constant 0 : i32
    return %c0_i32, %c0_i32_0, %c0_i32_1 : i32, i32, i32
  }
  func.func @transform_10(%arg0: i32) -> (i32, i32, i32) {
    %c0_i32 = arith.constant 0 : i32
    %c0_i32_0 = arith.constant 0 : i32
    %c0_i32_1 = arith.constant 0 : i32
    %c0_i32_2 = arith.constant 0 : i32
    return %c0_i32, %c0_i32_0, %c0_i32_1 : i32, i32, i32
  }
  func.func @transform_11(%arg0: i32) -> (i32, i32, i32) {
    %c0_i32 = arith.constant 0 : i32
    %c0_i32_0 = arith.constant 0 : i32
    %c0_i32_1 = arith.constant 0 : i32
    %c0_i32_2 = arith.constant 0 : i32
    return %c0_i32, %c0_i32_0, %c0_i32_1 : i32, i32, i32
  }
  func.func @transform_12(%arg0: i32) -> (i32, i32, i32) {
    %c0_i32 = arith.constant 0 : i32
    %c0_i32_0 = arith.constant 0 : i32
    %c0_i32_1 = arith.constant 0 : i32
    %c0_i32_2 = arith.constant 0 : i32
    return %c0_i32, %c0_i32_0, %c0_i32_1 : i32, i32, i32
  }
  func.func @transform_13(%arg0: i32) -> (i32, i32, i32) {
    %c0_i32 = arith.constant 0 : i32
    %c0_i32_0 = arith.constant 0 : i32
    %c0_i32_1 = arith.constant 0 : i32
    %c0_i32_2 = arith.constant 0 : i32
    return %c0_i32, %c0_i32_0, %c0_i32_1 : i32, i32, i32
  }
  func.func @transform_14(%arg0: i32) -> (i32, i32, i32) {
    %c0_i32 = arith.constant 0 : i32
    %c0_i32_0 = arith.constant 0 : i32
    %c0_i32_1 = arith.constant 0 : i32
    %c0_i32_2 = arith.constant 0 : i32
    return %c0_i32, %c0_i32_0, %c0_i32_1 : i32, i32, i32
  }
  func.func @transform_15(%arg0: i32) -> (i32, i32, i32) {
    %c0_i32 = arith.constant 0 : i32
    %c0_i32_0 = arith.constant 0 : i32
    %c0_i32_1 = arith.constant 0 : i32
    %c0_i32_2 = arith.constant 0 : i32
    return %c0_i32, %c0_i32_0, %c0_i32_1 : i32, i32, i32
  }
  func.func @transform_16(%arg0: i32) -> (i32, i32, i32) {
    %c0_i32 = arith.constant 0 : i32
    %c0_i32_0 = arith.constant 0 : i32
    %c0_i32_1 = arith.constant 0 : i32
    %c0_i32_2 = arith.constant 0 : i32
    return %c0_i32, %c0_i32_0, %c0_i32_1 : i32, i32, i32
  }
  func.func @transform_17(%arg0: i32) -> (i32, i32, i32) {
    %c0_i32 = arith.constant 0 : i32
    %c0_i32_0 = arith.constant 0 : i32
    %c0_i32_1 = arith.constant 0 : i32
    %c0_i32_2 = arith.constant 0 : i32
    return %c0_i32, %c0_i32_0, %c0_i32_1 : i32, i32, i32
  }
  func.func @transform_18(%arg0: i32) -> (i32, i32, i32) {
    %c0_i32 = arith.constant 0 : i32
    %c0_i32_0 = arith.constant 0 : i32
    %c0_i32_1 = arith.constant 0 : i32
    %c0_i32_2 = arith.constant 0 : i32
    return %c0_i32, %c0_i32_0, %c0_i32_1 : i32, i32, i32
  }
  func.func @transform_19(%arg0: i32) -> (i32, i32, i32) {
    %c0_i32 = arith.constant 0 : i32
    %c0_i32_0 = arith.constant 0 : i32
    %c0_i32_1 = arith.constant 0 : i32
    %c0_i32_2 = arith.constant 0 : i32
    return %c0_i32, %c0_i32_0, %c0_i32_1 : i32, i32, i32
  }
  func.func @transform_20(%arg0: i32) -> (i32, i32, i32) {
    %c0_i32 = arith.constant 0 : i32
    %c0_i32_0 = arith.constant 0 : i32
    %c0_i32_1 = arith.constant 0 : i32
    %c0_i32_2 = arith.constant 0 : i32
    return %c0_i32, %c0_i32_0, %c0_i32_1 : i32, i32, i32
  }
  func.func @transform_21(%arg0: i32) -> (i32, i32) {
    %c0_i32 = arith.constant 0 : i32
    %c0_i32_0 = arith.constant 0 : i32
    %c0_i32_1 = arith.constant 0 : i32
    return %c0_i32, %c0_i32_0 : i32, i32
  }
  func.func @transform_22(%arg0: i32) -> (i32, i32) {
    %c0_i32 = arith.constant 0 : i32
    %c0_i32_0 = arith.constant 0 : i32
    %c0_i32_1 = arith.constant 0 : i32
    return %c0_i32, %c0_i32_0 : i32, i32
  }
  func.func @transform_23(%arg0: i32) -> (i32, i32) {
    %c0_i32 = arith.constant 0 : i32
    %c0_i32_0 = arith.constant 0 : i32
    %c0_i32_1 = arith.constant 0 : i32
    return %c0_i32, %c0_i32_0 : i32, i32
  }
  func.func @transform_24(%arg0: i32) -> (i32, i32) {
    %c0_i32 = arith.constant 0 : i32
    %c0_i32_0 = arith.constant 0 : i32
    %c0_i32_1 = arith.constant 0 : i32
    return %c0_i32, %c0_i32_0 : i32, i32
  }
  func.func @transform_25(%arg0: i32) -> (i32, i32) {
    %c0_i32 = arith.constant 0 : i32
    %c0_i32_0 = arith.constant 0 : i32
    %c0_i32_1 = arith.constant 0 : i32
    return %c0_i32, %c0_i32_0 : i32, i32
  }
  func.func @transform_26(%arg0: i32) -> (i32, i32) {
    %c0_i32 = arith.constant 0 : i32
    %c0_i32_0 = arith.constant 0 : i32
    %c0_i32_1 = arith.constant 0 : i32
    return %c0_i32, %c0_i32_0 : i32, i32
  }
  func.func @transform_27(%arg0: i32) -> (i32, i32) {
    %c0_i32 = arith.constant 0 : i32
    %c0_i32_0 = arith.constant 0 : i32
    %c0_i32_1 = arith.constant 0 : i32
    return %c0_i32, %c0_i32_0 : i32, i32
  }
  func.func @transform_28(%arg0: i32) -> (i32, i32) {
    %c0_i32 = arith.constant 0 : i32
    %c0_i32_0 = arith.constant 0 : i32
    %c0_i32_1 = arith.constant 0 : i32
    return %c0_i32, %c0_i32_0 : i32, i32
  }
  func.func @transform_29(%arg0: i32) -> (i32, i32) {
    %c0_i32 = arith.constant 0 : i32
    %c0_i32_0 = arith.constant 0 : i32
    %c0_i32_1 = arith.constant 0 : i32
    return %c0_i32, %c0_i32_0 : i32, i32
  }
  func.func @transform_30(%arg0: i32) -> (i32, i32, i32) {
    %c0_i32 = arith.constant 0 : i32
    %c0_i32_0 = arith.constant 0 : i32
    %c0_i32_1 = arith.constant 0 : i32
    return %arg0, %c0_i32, %c0_i32_0 : i32, i32, i32
  }
}

</mosaic_0001>

<bundles_post_ra>
// kernel: eq.15
= control target key start
LH: loop header
LB: loop body
LE: loop exit
PB: predicated region body
PF: predicated region fallthrough
CT: control target
= control target key end

     0   :  { %vm7_vm0 = vcmask 39936   ;;  %vm13_vm1 = vcmask 80936   ;;  %s39_s0 = inlined_call_operand.vmem [shape: s32[2,5], index: 0, kind: input, shape index: {}]   ;;  %s40_s1 = inlined_call_operand.vmem [shape: s32[10], index: 1, kind: output, shape index: {}]  }
   0x1   :  { %v4_v0 = vld [vmem:[%s39_s0] sm:$0x3]  ;;  %s22_s0 = smov 5  }
   0x2   :  { %5 = vst [vmem:[#allocation1] sm:$0x3] %v4_v0 }
   0x9   :  { %v10_v1 = vld [vmem:[#allocation1 + $0x1] sm:$0x1]   ;;  %v6_v2 = vld [vmem:[#allocation1] sm:$0x1]  }
   0xa   :  { %11 = vrot.lane.b32.xlu0 %v10_v1, %s22_s0  ;;  %8 = vst.msk [vmem:[#allocation0] sm:$0x1] %vm7_vm0, %v6_v2  }
  0x7c   :  { %v12_v3 = vpop.permute.xlu0 %11  }
  0x7d   :  { %14 = vst.msk [vmem:[#allocation0] sm:$0x1] %vm13_vm1, %v12_v3  }
  0x84   :  { %v18_v4 = vld [vmem:[#allocation0] sm:$0x1] }
  0x85   :  { %20 = vst [vmem:[%s40_s1] sm:$0x1] %v18_v4 }

// kernel: tile.9
= control target key start
LH: loop header
LB: loop body
LE: loop exit
PB: predicated region body
PF: predicated region fallthrough
CT: control target
= control target key end

     0   :  { %vm3_vm0 = vcmask 261120   ;;  %s34_s0 = inlined_call_operand.vmem [shape: f32[2,5,32], index: 0, kind: input, shape index: {}]   ;;  %s35_s1 = inlined_call_operand.vmem [shape: f32[10,32], index: 1, kind: output, shape index: {}]  }
   0x1   :  { %v2_v0 = vld [vmem:[%s34_s0] sm:$0x1f]   ;;  %v10_v1 = vld [vmem:[%s34_s0 + $0x8] sm:$0x1f]  }
   0x2   :  { %4 = vst.msk [vmem:[%s35_s1] sm:$0x1f] %vm3_vm0, %v2_v0   ;;  %11 = vst.msk [vmem:[%s35_s1 + $0x5] sm:$0x1f] %vm3_vm0, %v10_v1  }

// kernel: enhanced_vit_forward.1
= control target key start
LH: loop header
LB: loop body
LE: loop exit
PB: predicated region body
PF: predicated region fallthrough
CT: control target
= control target key end

     0   :  { %s6521_s6 = smov 1   ;;  %s6522_s10 = smov 2   ;;  %s7364_s0 = inlined_call_operand.smem [shape: u32[31], index: -1, kind: input, shape index: {}] }
   0x1   :  { %s6564_s5 = sld [smem:[%s7364_s0]]   ;;  %s6523_s14 = smov 3  }
   0x2   :  { %s6569_s9 = sld [smem:[%s7364_s0 + %s6521_s6]]   ;;  %s6524_s18 = smov 4  }
   0x3   :  { %s6574_s13 = sld [smem:[%s7364_s0 + %s6522_s10]]   ;;  %s6525_s22 = smov 5  }
   0x4   :  { %s6579_s17 = sld [smem:[%s7364_s0 + %s6523_s14]]   ;;  %s6526_s26 = smov 6  }
   0x5   :  { %s6584_s21 = sld [smem:[%s7364_s0 + %s6524_s18]]   ;;  %s6527_s30 = smov 7  }
   0x6   :  { %s6589_s25 = sld [smem:[%s7364_s0 + %s6525_s22]]   ;;  %s6528_s4 = smov 8  }
   0x7   :  { %s6594_s29 = sld [smem:[%s7364_s0 + %s6526_s26]]   ;;  %s6529_s10 = smov 9  }
   0x8   :  { %s6599_s3 = sld [smem:[%s7364_s0 + %s6527_s30]]   ;;  %s6530_s15 = smov 10  }
   0x9   :  { %s6604_s8 = sld [smem:[%s7364_s0 + %s6528_s4]]   ;;  %s6531_s20 = smov 11  }
   0xa   :  { %s6609_s14 = sld [smem:[%s7364_s0 + %s6529_s10]]   ;;  %s6532_s26 = smov 12  }
   0xb   :  { %7373 = sst [smem:[#allocation2_spill]] %s6584_s21  ;;  %s6533_s1 = smov 13  }
   0xc   :  { %s6614_s19 = sld [smem:[%s7364_s0 + %s6530_s15]]   ;;  %s6534_s7 = smov 14  }
   0xd   :  { %s6619_s24 = sld [smem:[%s7364_s0 + %s6531_s20]]   ;;  %s6535_s15 = smov 15  }
   0xe   :  { %s6624_s30 = sld [smem:[%s7364_s0 + %s6532_s26]]   ;;  %s6536_s22 = smov 16  }
   0xf   :  { %s6629_s6 = sld [smem:[%s7364_s0 + %s6533_s1]]   ;;  %s6537_s28 = smov 17  }
  0x10   :  { %s6634_s12 = sld [smem:[%s7364_s0 + %s6534_s7]]   ;;  %s6538_s7 = smov 18  }
  0x11   :  { %s6639_s20 = sld [smem:[%s7364_s0 + %s6535_s15]]   ;;  %s6539_s15 = smov 19  }
  0x12   :  { %s6644_s27 = sld [smem:[%s7364_s0 + %s6536_s22]]   ;;  %s6540_s22 = smov 20  }
  0x13   :  { %s6649_s4 = sld [smem:[%s7364_s0 + %s6537_s28]]   ;;  %s6541_s28 = smov 21  }
  0x14   :  { %s6654_s21 = sld [smem:[%s7364_s0 + %s6538_s7]]   ;;  %s6542_s7 = smov 22  }
  0x17   :  { %7374 = sst [smem:[#allocation3_spill]] %s6639_s20 }
  0x18   :  { %7375 = sst [smem:[#allocation4_spill]] %s6644_s27 }
  0x19   :  { %7376 = sst [smem:[#allocation5_spill]] %s6649_s4 }
  0x1a   :  { %7377 = sst [smem:[#allocation6_spill]] %s6654_s21 }
  0x1b   :  { %s6659_s20 = sld [smem:[%s7364_s0 + %s6539_s15]]   ;;  %s6543_s15 = smov 23  }
  0x1c   :  { %s6664_s27 = sld [smem:[%s7364_s0 + %s6540_s22]]   ;;  %s6544_s22 = smov 24  }
  0x1d   :  { %s6669_s4 = sld [smem:[%s7364_s0 + %s6541_s28]]   ;;  %s6545_s28 = smov 25  }
  0x1e   :  { %s6674_s21 = sld [smem:[%s7364_s0 + %s6542_s7]]   ;;  %s6546_s7 = smov 26  }
  0x21   :  { %7378 = sst [smem:[#allocation7_spill]] %s6659_s20 }
  0x22   :  { %7379 = sst [smem:[#allocation8_spill]] %s6664_s27 }
  0x23   :  { %7380 = sst [smem:[#allocation9_spill]] %s6669_s4 }
  0x24   :  { %7381 = sst [smem:[#allocation10_spill]] %s6674_s21 }
  0x25   :  { %s6679_s20 = sld [smem:[%s7364_s0 + %s6543_s15]]   ;;  %s6547_s15 = smov 27  }
  0x26   :  { %s6684_s27 = sld [smem:[%s7364_s0 + %s6544_s22]]   ;;  %s6548_s22 = smov 28  }
  0x27   :  { %s6689_s4 = sld [smem:[%s7364_s0 + %s6545_s28]]   ;;  %s6549_s28 = smov 29  }
  0x28   :  { %s6694_s21 = sld [smem:[%s7364_s0 + %s6546_s7]]   ;;  %s6550_s7 = smov 30  }
  0x2b   :  { %7382 = sst [smem:[#allocation11_spill]] %s6679_s20 }
  0x2c   :  { %7383 = sst [smem:[#allocation12_spill]] %s6684_s27 }
  0x2d   :  { %7384 = sst [smem:[#allocation13_spill]] %s6689_s4 }
  0x2e   :  { %7385 = sst [smem:[#allocation14_spill]] %s6694_s21 }
  0x2f   :  { %s6699_s20 = sld [smem:[%s7364_s0 + %s6547_s15]]   ;;  %s6716_s15 = smov 0  }
  0x30   :  { %s6704_s27 = sld [smem:[%s7364_s0 + %s6548_s22]]  }
  0x31   :  { %s6709_s4 = sld [smem:[%s7364_s0 + %s6549_s28]]  }
  0x32   :  { %s6714_s21 = sld [smem:[%s7364_s0 + %s6550_s7]]  }
  0x33 LB: > { %s5300_s16 = sadd.s32 4294967295, %s6519_s15   ;;  %p5304_p0 = scmp.ge.s32.totalorder %s6519_s15, 1  ;;  %s6519_s15 = sphi %s6716_s15, %s71_s15  }
  0x34   : > { %p843_p1 = scmp.lt.s32.totalorder %s6519_s15, 3 }
  0x36   : > { %p844_p2 = pnand %p5304_p0, %p843_p1 }
  0x37   : > { %v6318_v0 = vld [vmem:[%s6569_s9] sm:$0xff] (!%p844_p2)   ;;  %v6551_v1 = vmov (!%p844_p2), 0   ;;  %p920_p3 = scmp.lt.s32.totalorder (!%p844_p2), %s5300_s16, 1  ;;  %v6319_v2 = vld [vmem:[%s6569_s9 + $0x8] sm:$0xff] (!%p844_p2)   ;;  %v6320_v3 = vld [vmem:[%s6569_s9 + $0x10] sm:$0xff] (!%p844_p2)   ;;  %vm1039_vm0 = vcmask (!%p844_p2), 523264  }
  0x38   : > { %847 = sbr.rel (%p844_p2) target bundleno = 12153 (0x2f79), region = 140  ;;  %1043 = vmatprep.subr.bf16.mxu0 (!%p844_p2), %v6551_v1  ;;  %6317 = vset.pattern.permute.xlu1 (!%p844_p2), %v6551_v1  ;;  %v6321_v4 = vld [vmem:[%s6569_s9 + $0x18] sm:$0xff] (!%p844_p2)   ;;  %v6322_v5 = vld [vmem:[%s6569_s9 + $0x20] sm:$0xff] (!%p844_p2)   ;;  %v6323_v7 = vld [vmem:[%s6569_s9 + $0x28] sm:$0xff] (!%p844_p2)   ;;  %vm1088_vm1 = vcmask (!%p844_p2), 261120   ;;  %vm1092_vm2 = vcmask (!%p844_p2), 254976  }
  0x39   : > { %1044 = vmatpush1.bf16.msra.mxu0 (!%p844_p2), %v6318_v0  ;;  %6316 = vset.pattern.permute.xlu0 (!%p844_p2), %v6551_v1  ;;  %v6324_v8 = vld [vmem:[%s6569_s9 + $0x30] sm:$0xff] (!%p844_p2)   ;;  %v6325_v9 = vld [vmem:[%s6569_s9 + $0x38] sm:$0xff] (!%p844_p2)   ;;  %v6326_v10 = vld [vmem:[%s6569_s9 + $0x40] sm:$0xff] (!%p844_p2)   ;;  %v6552_v37 = vmov (!%p844_p2), 0.0   ;;  %vm6553_vm3 = vmmov (!%p844_p2), 0   ;;  %vm1331_vm4 = vcmask (!%p844_p2), 64512  }
  0x3a   : > { %1045 = vmatprep.subr.bf16.mxu0 (!%p844_p2), %v6551_v1  ;;  %v6327_v11 = vld [vmem:[%s6569_s9 + $0x48] sm:$0xff] (!%p844_p2)   ;;  %v6328_v12 = vld [vmem:[%s6569_s9 + $0x50] sm:$0xff] (!%p844_p2)   ;;  %v6329_v13 = vld [vmem:[%s6569_s9 + $0x58] sm:$0xff] (!%p844_p2)   ;;  %5820 = vmatprep.subr.bf16.mxu1 (!%p844_p2), %v6552_v37  ;;  %vm1412_vm5 = vcmask (!%p844_p2), 1044480   ;;  %vm1383_vm6 = vcmask (!%p844_p2), 80896   ;;  %vm1387_vm7 = vcmask (!%p844_p2), 74752  }
  0x3b   : > { %v956_v15 = vld [vmem:[%s6574_s13] sm:$0xff] (!%p844_p2)  ;;  %v957_v17 = vld [vmem:[%s6574_s13 + $0x8] sm:$0x3] (!%p844_p2)  ;;  %5824 = vmatprep.mubr.msk.bf16.mxu1 (!%p844_p2), %vm6553_vm3, %v6552_v37  ;;  %v6338_v57 = vld [vmem:[%s6604_s8 + $0x10] sm:$0xff] (!%p844_p2)   ;;  %vm1787_vm8 = vcmask (!%p844_p2), 1043456   ;;  %s7386_s22 = sld [smem:[#allocation5_spill]] (!%p844_p2) }
  0x3c   : > { %v6333_v35 = vld [vmem:[%s6599_s3] sm:$0xff] (!%p844_p2)   ;;  %v6335_v38 = vld [vmem:[%s6599_s3 + $0x8] sm:$0xff] (!%p844_p2)   ;;  %v6340_v60 = vld [vmem:[%s6604_s8 + $0x18] sm:$0xff] (!%p844_p2)   ;;  %s7387_s23 = sld [smem:[#allocation3_spill]] (!%p844_p2)  ;;  %s7388_s26 = sld [smem:[#allocation4_spill]] (!%p844_p2)  ;;  %vm4823_vm9 = vcmask (!%p844_p2), 1024  }
  0x3d   : > { %1046 = vmatpush1.bf16.msra.mxu0 (!%p844_p2), %v6319_v2  ;;  %v6334_v36 = vld [vmem:[%s6604_s8] sm:$0xff] (!%p844_p2)   ;;  %v6336_v39 = vld [vmem:[%s6604_s8 + $0x8] sm:$0xff] (!%p844_p2)   ;;  %s7389_s28 = sld [smem:[#allocation7_spill]] (!%p844_p2)  ;;  %s7390_s1 = sld [smem:[#allocation6_spill]] (!%p844_p2)  ;;  %vm4821_vm10 = vcmask (!%p844_p2), 7168   ;;  %vm4854_vm11 = vcmask (!%p844_p2), 1041408  }
  0x3e   : > { %1047 = vmatprep.subr.bf16.mxu0 (!%p844_p2), %v6551_v1  ;;  %5821 = vmatpush3.bf16.msra.mxu1 (!%p844_p2), %v6334_v36  ;;  %v5323_v48 = vld [vmem:[%s6589_s25] ss:$0 sm:$0xff] (!%p844_p2)  ;;  %v6339_v59 = vld [vmem:[%s6609_s14 + $0x8] sm:$0xff] (!%p844_p2)   ;;  %s7391_s2 = sld [smem:[#allocation8_spill]] (!%p844_p2)  ;;  %s7392_s7 = sld [smem:[#allocation11_spill]] (!%p844_p2)  ;;  %vm6555_vm12 = vmmov (!%p844_p2), 1  }
  0x3f   : > { %s7400_s16 = smov (!%p920_p3, %s5300_s16), 1  ;;  %5822 = vmatprep.subr.bf16.mxu1 %v6552_v37  ;;  %v5324_v52 = vld [vmem:[%s6594_s29] ss:$0 sm:$0xff]  ;;  %s7393_s10 = sld [smem:[#allocation9_spill]]  ;;  %vm6267_vm13 = vmpackc.low %vm4854_vm11, %vm6555_vm12 }
  0x40   : > { %s5643_s0 = sshll.u32 %s7400_s16, 4  ;;  %v6337_v56 = vld [vmem:[%s6609_s14] sm:$0xff]   ;;  %s7394_s11 = sld [smem:[#allocation10_spill]] }
  0x41   : > { %1048 = vmatpush1.bf16.msra.mxu0 %v6320_v3  ;;  %s924_s18 = scalar_lea.vmem %s6564_s5, %s5643_s0  ;;  %v5325_v61 = vld [vmem:[%s6614_s19] ss:$0 sm:$0xff]  ;;  %s7395_s0 = sld [smem:[#allocation2_spill]] }
  0x42   : > { %1049 = vmatprep.subr.bf16.mxu0 %v6551_v1  ;;  %v6332_v6 = vld [vmem:[%s924_s18 + $0x4] ss:$8 sps:$4 sm:$0x1f]   ;;  %v6330_v14 = vld [vmem:[%s924_s18] ss:$8 sps:$4 sm:$0x1f]   ;;  %5823 = vmatpush3.bf16.msra.mxu1 %v6336_v39 }
  0x43   : > { %5322 = vmatprep.mubr.msk.bf16.mxu0 %vm1039_vm0, %v6332_v6  ;;  %5828 = vmatprep.subr.bf16.mxu1 %v6552_v37  ;;  %v5329_v63 = vld [vmem:[%s6619_s24] ss:$0 sm:$0xff]  ;;  %s7396_s18 = sld [smem:[#allocation14_spill]] }
  0x45   : > { %1050 = vmatpush1.bf16.msra.mxu0 %v6321_v4 }
  0x46   : > { %1051 = vmatprep.subr.bf16.mxu0 %v6551_v1 }
  0x49   : > { %1052 = vmatpush1.bf16.msra.mxu0 %v6322_v5 }
  0x4a   : > { %1053 = vmatprep.subr.bf16.mxu0 %v6551_v1 }
  0x4d   : > { %1054 = vmatpush1.bf16.msra.mxu0 %v6323_v7 }
  0x4e   : > { %1055 = vmatprep.subr.bf16.mxu0 %v6551_v1 }
  0x51   : > { %1056 = vmatpush1.bf16.msra.mxu0 %v6324_v8 }
  0x52   : > { %1057 = vmatprep.subr.bf16.mxu0 %v6551_v1 }
  0x55   : > { %1058 = vmatpush1.bf16.msra.mxu0 %v6325_v9 }
  0x56   : > { %1059 = vmatprep.subr.bf16.mxu0 %v6551_v1 }
  0x59   : > { %1060 = vmatpush1.bf16.msra.mxu0 %v6326_v10 }
  0x5a   : > { %1061 = vmatprep.subr.bf16.mxu0 %v6551_v1 }
  0x5d   : > { %1062 = vmatpush1.bf16.msra.mxu0 %v6327_v11 }
  0x5e   : > { %1063 = vmatprep.subr.bf16.mxu0 %v6551_v1 }
  0x61   : > { %1064 = vmatpush1.bf16.msra.mxu0 %v6328_v12 }
  0x62   : > { %1065 = vmatprep.subr.bf16.mxu0 %v6551_v1 }
  0x65   : > { %1066 = vmatpush1.bf16.msra.mxu0 %v6329_v13 }
  0x66   : > { %5812 = vmatprep.subr.bf16.mxu0 %v6552_v37 }
  0x68   : > { %1076 = vmatmul.mubr.bf16.vlgmr.msra.gmra.mrb[0].mxu0 %v6330_v14  ;;  %v5333_v14 = vld [vmem:[%s6624_s30] ss:$0 sm:$0xff] }
  0x69   : > { %5813 = vmatpush3.bf16.msra.mxu0 %v6333_v35  ;;  %5816 = vmatprep.mubr.msk.bf16.mxu0 %vm6553_vm3, %v6552_v37  ;;  %v6810_v35 = vld [vmem:[%s6579_s17] sm:$0xff] }
  0x6a   : > { %5814 = vmatprep.subr.bf16.mxu0 %v6552_v37 }
  0x6d   : > { %5815 = vmatpush3.bf16.msra.mxu0 %v6335_v38 }
  0x6e   : > { %5856 = vmatprep.subr.bf16.mxu0 %v6552_v37 }
 0x13b   : > { %v1077_v16 = vpop.f32.mrb[0].mxu0 }
 0x13c   : > { %v6742_v18 = vadd.f32 %v1077_v16, %v956_v15  ;;  %v1079_v19 = vpop.f32.mrb[1].mxu0  ;;  %v5353_v16 = vld [vmem:[%s6619_s24 + $0x1] ss:$0 sm:$0xff] }
 0x13d   : > { %v1080_v20 = vpop.f32.mrb[2].mxu0 }
 0x13e   : > { %v6744_v21 = vadd.f32 %v1080_v20, %v957_v17  ;;  %v1082_v22 = vpop.f32.mrb[3].mxu0  ;;  %v1089_v23 = vsel %vm1088_vm1, %v6742_v18, 0.0 }
 0x13f   : > { %1090 = vadd.xlane.f32.xlu0 %v1089_v23 }
 0x140   : > { %v1093_v24 = vsel %vm1092_vm2, %v6744_v21, 0.0 }
 0x143   : > { %1094 = vadd.xlane.f32.xlu0 %v1093_v24 }
 0x1cc   : > { %v1091_v25 = vpop.xlane.xlu0 %1090 }
 0x1cd   : > { %v1097_v26 = vmul.f32 0.03125, %v1091_v25 }
 0x1cf   : > { %v1099_v27 = vsub.f32 %v6742_v18, %v1097_v26 }
 0x1d0   : > { %v1095_v28 = vpop.xlane.xlu0 %1094 }
 0x1d1   : > { %v1098_v29 = vmul.f32 0.03125, %v1095_v28  ;;  %v1101_v30 = vmul.f32 %v1099_v27, %v1099_v27 }
 0x1d3   : > { %v1100_v31 = vsub.f32 %v6744_v21, %v1098_v29  ;;  %v1103_v32 = vsel %vm1088_vm1, %v1101_v30, 0.0 }
 0x1d4   : > { %1104 = vadd.xlane.f32.xlu1 %v1103_v32 }
 0x1d5   : > { %v1102_v33 = vmul.f32 %v1100_v31, %v1100_v31 }
 0x1d7   : > { %v1106_v34 = vsel %vm1092_vm2, %v1102_v33, 0.0 }
 0x1d8   : > { %1107 = vadd.xlane.f32.xlu1 %v1106_v34 }
 0x261   : > { %v1105_v40 = vpop.xlane.xlu1 %1104 }
 0x262   : > { %v1109_v41 = vmul.f32 0.03125, %v1105_v40  ;;  %v6813_v40 = vld [vmem:[%s6579_s17 + $0x8] sm:$0x3] }
 0x264   : > { %v1111_v42 = vadd.f32 1e-06, %v1109_v41 }
 0x265   : > { %v1108_v43 = vpop.xlane.xlu1 %1107 }
 0x266   : > { %6411 = vrsqrt.f32 %v1111_v42  ;;  %v1110_v44 = vmul.f32 0.03125, %v1108_v43 }
 0x268   : > { %v1112_v45 = vadd.f32 1e-06, %v1110_v44 }
 0x26a   : > { %6413 = vrsqrt.f32 %v1112_v45 }
 0x270   : > { %v6412_v46 = vpop.eup %6411 }
 0x271   : > { %v1115_v47 = vmul.f32 %v6412_v46, %v1099_v27 }
 0x273   : > { %v1123_v50 = vmul.f32 %v5323_v48, %v1115_v47 }
 0x274   : > { %v6414_v49 = vpop.eup %6413 }
 0x275   : > { %v1116_v51 = vmul.f32 %v6414_v49, %v1100_v31  ;;  %v1131_v54 = vadd.f32 %v5324_v52, %v1123_v50 }
 0x277   : > { %v1124_v53 = vmul.f32 %v5323_v48, %v1116_v51 }
 0x279   : > { %v1132_v55 = vadd.f32 %v5324_v52, %v1124_v53 }
 0x27b   : > { %v6772_v58 = vpack.c.bf16 %v1132_v55, %v1131_v54 }
 0x27d   : > { %5817 = vmatmul.mubr.msk.bf16.vlgmr.msra.gmra.mrb[4].mxu0 %vm1088_vm1, %v6772_v58  ;;  %5825 = vmatmul.mubr.msk.bf16.vlgmr.msra.gmra.mrb[0].mxu1 %vm1088_vm1, %v6772_v58 }
 0x27e   : > { %5829 = vmatpush3.bf16.msra.mxu1 %v6337_v56  ;;  %5857 = vmatpush3.bf16.msra.mxu0 %v6338_v57 }
 0x27f   : > { %5830 = vmatprep.subr.bf16.mxu1 %v6552_v37  ;;  %5858 = vmatprep.subr.bf16.mxu0 %v6552_v37 }
 0x280   : > { %5832 = vmatprep.mubr.msk.bf16.mxu1 %vm6553_vm3, %v6552_v37  ;;  %5860 = vmatprep.mubr.msk.bf16.mxu0 %vm6553_vm3, %v6552_v37 }
 0x282   : > { %5831 = vmatpush3.bf16.msra.mxu1 %v6339_v59  ;;  %5859 = vmatpush3.bf16.msra.mxu0 %v6340_v60 }
 0x283   : > { %5836 = vmatprep.subr.bf16.mxu1 %v6552_v37  ;;  %5872 = vmatprep.subr.bf16.mxu0 %v6552_v37 }
 0x285   : > { %5833 = vmatmul.mubr.msk.bf16.vlgmr.msra.gmra.mrb[4].mxu1 %vm1088_vm1, %v6772_v58  ;;  %5861 = vmatmul.mubr.msk.bf16.vlgmr.msra.gmra.mrb[8].mxu0 %vm1088_vm1, %v6772_v58 }
 0x286   : > { %5838 = vmatprep.mubr.msk.bf16.mxu1 %vm6553_vm3, %v6552_v37  ;;  %5874 = vmatprep.mubr.msk.bf16.mxu0 %vm6553_vm3, %v6552_v37 }
 0x350   : > { %v1194_v62 = vpop.f32.mrb[4].mxu0  ;;  %v1258_v0 = vpop.f32.mrb[0].mxu1 }
 0x351   : > { %v5818_v1 = vpop.f32.mrb[5].mxu0  ;;  %v5826_v2 = vpop.f32.mrb[1].mxu1  ;;  %v1195_v5 = vadd.f32 %v5325_v61, %v1194_v62  ;;  %v1259_v6 = vadd.f32 %v5329_v63, %v1258_v0  ;;  %v6341_v0 = vld [vmem:[%s6599_s3 + $0x10] sm:$0xff]  }
 0x352   : > { %v1197_v3 = vpop.f32.mrb[6].mxu0  ;;  %v1261_v4 = vpop.f32.mrb[2].mxu1  ;;  %v6342_v2 = vld [vmem:[%s6599_s3 + $0x18] sm:$0xff]  }
 0x353   : > { %v1198_v7 = vadd.f32 %v5325_v61, %v1197_v3  ;;  %v1262_v8 = vadd.f32 %v5329_v63, %v1261_v4  ;;  %v5819_v9 = vpop.f32.mrb[7].mxu0  ;;  %v5827_v10 = vpop.f32.mrb[3].mxu1  ;;  %v6343_v3 = vld [vmem:[%s6609_s14 + $0x10] sm:$0xff]   ;;  %v6344_v4 = vld [vmem:[%s6609_s14 + $0x18] sm:$0xff]  }
 0x354   : > { %v5344_v10 = vld [vmem:[%s6614_s19 + $0x1] ss:$0 sm:$0xff] }
 0x355   : > { %v1329_v11 = vpack.c.bf16 %v1198_v7, %v1195_v5  ;;  %v1330_v12 = vpack.c.bf16 %v1262_v8, %v1259_v6 }
 0x357   : > { %v1336_v13 = vsel %vm1331_vm4, %v1330_v12, 0 }
 0x358   : > { %v1322_v15 = vpop.f32.mrb[4].mxu1  ;;  %5837 = vmatpush3.bf16.xpose.msra.mxu1 %v1336_v13  ;;  %v1584_v17 = vpop.f32.mrb[8].mxu0 }
 0x359   : > { %v5834_v19 = vpop.f32.mrb[5].mxu1  ;;  %v5862_v20 = vpop.f32.mrb[9].mxu0  ;;  %5842 = vmatprep.subr.bf16.mxu1 %v6552_v37  ;;  %v1323_v24 = vadd.f32 %v5333_v14, %v1322_v15  ;;  %v1585_v25 = vadd.f32 %v5353_v16, %v1584_v17 }
 0x35a   : > { %v1325_v22 = vpop.f32.mrb[6].mxu1  ;;  %v1587_v23 = vpop.f32.mrb[10].mxu0  ;;  %v5362_v19 = vld [vmem:[%s6624_s30 + $0x1] ss:$0 sm:$0xff] }
 0x35b   : > { %v1326_v26 = vadd.f32 %v5333_v14, %v1325_v22  ;;  %v1588_v27 = vadd.f32 %v5353_v16, %v1587_v23  ;;  %v5835_v28 = vpop.f32.mrb[7].mxu1  ;;  %v5863_v29 = vpop.f32.mrb[11].mxu0 }
 0x35d   : > { %v1408_v30 = vpack.c.bf16 %v1326_v26, %v1323_v24  ;;  %v1658_v31 = vpack.c.bf16 %v1588_v27, %v1585_v25 }
 0x35f   : > { %5839 = vmatmul.mubr.msk.bf16.vlgmr.msra.gmra.mrb[8].mxu1 %vm1331_vm4, %v1329_v11  ;;  %v1414_v32 = vsel %vm1412_vm5, %v1408_v30, 0  ;;  %v1663_v33 = vsel %vm1331_vm4, %v1658_v31, 0 }
 0x360   : > { %5843 = vmatpush3.bf16.msra.mxu1 %v1414_v32  ;;  %5873 = vmatpush3.bf16.xpose.msra.mxu0 %v1663_v33 }
 0x361   : > { %5844 = vmatprep.mubr.msk.bf16.mxu1 %vm6553_vm3, %v6552_v37  ;;  %5848 = vmatprep.subr.bf16.mxu1 %v6552_v37 }
 0x362   : > { %5884 = vmatprep.subr.bf16.mxu0 %v6552_v37 }
 0x432   : > { %v1372_v34 = vpop.f32.mrb[8].mxu1 }
 0x433   : > { %v1379_v36 = vmul.f32 0.35355338, %v1372_v34  ;;  %v5840_v38 = vpop.f32.mrb[9].mxu1 }
 0x434   : > { %v1375_v39 = vpop.f32.mrb[10].mxu1 }
 0x435   : > { %v1380_v41 = vmul.f32 0.35355338, %v1375_v39  ;;  %v5841_v42 = vpop.f32.mrb[11].mxu1  ;;  %v1381_v43 = vadd.f32 %v1379_v36, %v6810_v35 }
 0x437   : > { %v1384_v44 = vsel %vm1383_vm6, %v1381_v43, -inf  ;;  %v1382_v45 = vadd.f32 %v1380_v41, %v6813_v40 }
 0x438   : > { %1385 = vmax.xlane.f32.xlu0 %v1384_v44 }
 0x439   : > { %v1388_v46 = vsel %vm1387_vm7, %v1382_v45, -inf }
 0x43a   : > { %1389 = vmax.xlane.f32.xlu1 %v1388_v46 }
 0x4c5   : > { %v1386_v47 = vpop.xlane.xlu0 %1385 }
 0x4c6   : > { %v1391_v48 = vsub.f32 %v1381_v43, %v1386_v47 }
 0x4c7   : > { %v1390_v49 = vpop.xlane.xlu1 %1389 }
 0x4c8   : > { %v1393_v50 = vmul.f32 1.442695, %v1391_v48  ;;  %v1392_v51 = vsub.f32 %v1382_v45, %v1390_v49 }
 0x4ca   : > { %6415 = vpow2.f32 %v1393_v50  ;;  %v1395_v52 = vmul.f32 1.442695, %v1392_v51 }
 0x4cc   : > { %6417 = vpow2.f32 %v1395_v52 }
 0x4d4   : > { %v6416_v53 = vpop.eup %6415 }
 0x4d5   : > { %v1397_v54 = vsel %vm1383_vm6, %v6416_v53, 0.0 }
 0x4d6   : > { %v6418_v55 = vpop.eup %6417  ;;  %1398 = vadd.xlane.f32.xlu0 %v1397_v54 }
 0x4d7   : > { %v1400_v56 = vsel %vm1387_vm7, %v6418_v55, 0.0 }
 0x4d8   : > { %1401 = vadd.xlane.f32.xlu1 %v1400_v56  ;;  %v1458_v56 = vld [vmem:[%s6629_s6] sm:$0xf] }
 0x563   : > { %v1399_v57 = vpop.xlane.xlu0 %1398 }
 0x564   : > { %6419 = vrcp.f32 %v1399_v57 }
 0x565   : > { %v1402_v59 = vpop.xlane.xlu1 %1401 }
 0x566   : > { %6421 = vrcp.f32 %v1402_v59 }
 0x56e   : > { %v6420_v60 = vpop.eup %6419 }
 0x56f   : > { %v1405_v62 = vmul.f32 %v6420_v60, %v6416_v53 }
 0x570   : > { %v6422_v61 = vpop.eup %6421 }
 0x571   : > { %v1406_v63 = vmul.f32 %v6422_v61, %v6418_v55  ;;  %v1836_v61 = vsel %vm1787_vm8, %v1458_v56, 0 }
 0x573   : > { %v1407_v1 = vpack.c.bf16 %v1406_v63, %v1405_v62  ;;  %v6345_v62 = vld [vmem:[%s6604_s8 + $0x20] sm:$0xff]   ;;  %v6346_v63 = vld [vmem:[%s6604_s8 + $0x28] sm:$0xff]  }
 0x575   : > { %5845 = vmatmul.mubr.msk.bf16.vlgmr.msra.gmra.mrb[12].mxu1 %vm1383_vm6, %v1407_v1 }
 0x576   : > { %5849 = vmatpush3.bf16.msra.mxu1 %v6341_v0  ;;  %5852 = vmatprep.mubr.msk.bf16.mxu1 %vm6553_vm3, %v6552_v37  ;;  %v5368_v0 = vld [vmem:[%s6629_s6 + $0x4] sm:$0xf] }
 0x577   : > { %5850 = vmatprep.subr.bf16.mxu1 %v6552_v37  ;;  %v1789_v1 = vsel %vm1787_vm8, %v5368_v0, 0 }
 0x57a   : > { %5851 = vmatpush3.bf16.msra.mxu1 %v6342_v2 }
 0x57b   : > { %5864 = vmatprep.subr.bf16.mxu1 %v6552_v37 }
 0x57d   : > { %5853 = vmatmul.mubr.msk.bf16.vlgmr.msra.gmra.mrb[16].mxu1 %vm1088_vm1, %v6772_v58 }
 0x57e   : > { %5865 = vmatpush3.bf16.msra.mxu1 %v6343_v3  ;;  %5868 = vmatprep.mubr.msk.bf16.mxu1 %vm6553_vm3, %v6552_v37 }
 0x57f   : > { %5866 = vmatprep.subr.bf16.mxu1 %v6552_v37 }
 0x582   : > { %5867 = vmatpush3.bf16.msra.mxu1 %v6344_v4 }
 0x583   : > { %5878 = vmatprep.subr.bf16.mxu1 %v6552_v37 }
 0x585   : > { %5869 = vmatmul.mubr.msk.bf16.vlgmr.msra.gmra.mrb[20].mxu1 %vm1088_vm1, %v6772_v58 }
 0x586   : > { %5880 = vmatprep.mubr.msk.bf16.mxu1 %vm6553_vm3, %v6552_v37 }
 0x648   : > { %v6840_v5 = vpop.f32.mrb[12].mxu1 }
 0x649   : > { %v5846_v6 = vpop.f32.mrb[13].mxu1 }
 0x64a   : > { %v6842_v7 = vpop.f32.mrb[14].mxu1 }
 0x64b   : > { %v1457_v8 = vpack.c.bf16 %v6842_v7, %v6840_v5  ;;  %v5847_v9 = vpop.f32.mrb[15].mxu1  ;;  %v6347_v5 = vld [vmem:[%s6599_s3 + $0x20] sm:$0xff]  }
 0x650   : > { %v1518_v11 = vpop.f32.mrb[16].mxu1 }
 0x651   : > { %v5854_v12 = vpop.f32.mrb[17].mxu1  ;;  %v1519_v14 = vadd.f32 %v5344_v10, %v1518_v11 }
 0x652   : > { %v1521_v13 = vpop.f32.mrb[18].mxu1  ;;  %v6349_v12 = vld [vmem:[%s6609_s14 + $0x20] sm:$0xff]  }
 0x653   : > { %v1522_v15 = vadd.f32 %v5344_v10, %v1521_v13  ;;  %v5855_v16 = vpop.f32.mrb[19].mxu1 }
 0x655   : > { %v1657_v17 = vpack.c.bf16 %v1522_v15, %v1519_v14  ;;  %v6350_v14 = vld [vmem:[%s6609_s14 + $0x28] sm:$0xff]   ;;  %v5385_v15 = vld [vmem:[%s6619_s24 + $0x2] ss:$0 sm:$0xff] }
 0x657   : > { %5875 = vmatmul.mubr.msk.bf16.vlgmr.msra.gmra.mrb[12].mxu0 %vm1331_vm4, %v1657_v17 }
 0x658   : > { %v1650_v20 = vpop.f32.mrb[20].mxu1  ;;  %5886 = vmatprep.mubr.msk.bf16.mxu0 %vm6553_vm3, %v6552_v37  ;;  %5885 = vmatpush3.bf16.msra.mxu0 %v1789_v1 }
 0x659   : > { %v5870_v22 = vpop.f32.mrb[21].mxu1  ;;  %v1651_v24 = vadd.f32 %v5362_v19, %v1650_v20  ;;  %5896 = vmatprep.subr.bf16.mxu0 %v6552_v37 }
 0x65a   : > { %v1653_v23 = vpop.f32.mrb[22].mxu1 }
 0x65b   : > { %v1654_v25 = vadd.f32 %v5362_v19, %v1653_v23  ;;  %v5871_v26 = vpop.f32.mrb[23].mxu1 }
 0x65d   : > { %v1733_v27 = vpack.c.bf16 %v1654_v25, %v1651_v24 }
 0x65f   : > { %v1738_v28 = vsel %vm1412_vm5, %v1733_v27, 0 }
 0x660   : > { %5879 = vmatpush3.bf16.msra.mxu1 %v1738_v28 }
 0x661   : > { %5890 = vmatprep.subr.bf16.mxu1 %v6552_v37 }
 0x72a   : > { %v1699_v29 = vpop.f32.mrb[12].mxu0 }
 0x72b   : > { %v1706_v30 = vmul.f32 0.35355338, %v1699_v29  ;;  %v5876_v31 = vpop.f32.mrb[13].mxu0 }
 0x72c   : > { %v1702_v32 = vpop.f32.mrb[14].mxu0 }
 0x72d   : > { %v1707_v33 = vmul.f32 0.35355338, %v1702_v32  ;;  %v5877_v34 = vpop.f32.mrb[15].mxu0  ;;  %v1708_v36 = vadd.f32 %v1706_v30, %v6810_v35  ;;  %v5376_v32 = vld [vmem:[%s6614_s19 + $0x2] ss:$0 sm:$0xff] }
 0x72f   : > { %v1710_v38 = vsel %vm1383_vm6, %v1708_v36, -inf  ;;  %v1709_v39 = vadd.f32 %v1707_v33, %v6813_v40 }
 0x730   : > { %1711 = vmax.xlane.f32.xlu0 %v1710_v38 }
 0x731   : > { %v1713_v41 = vsel %vm1387_vm7, %v1709_v39, -inf }
 0x732   : > { %1714 = vmax.xlane.f32.xlu1 %v1713_v41 }
 0x7bd   : > { %v1712_v42 = vpop.xlane.xlu0 %1711 }
 0x7be   : > { %v1716_v43 = vsub.f32 %v1708_v36, %v1712_v42 }
 0x7bf   : > { %v1715_v44 = vpop.xlane.xlu1 %1714 }
 0x7c0   : > { %v1718_v45 = vmul.f32 1.442695, %v1716_v43  ;;  %v1717_v46 = vsub.f32 %v1709_v39, %v1715_v44  ;;  %v5394_v43 = vld [vmem:[%s6624_s30 + $0x2] ss:$0 sm:$0xff] }
 0x7c2   : > { %6423 = vpow2.f32 %v1718_v45  ;;  %v1720_v47 = vmul.f32 1.442695, %v1717_v46 }
 0x7c4   : > { %6425 = vpow2.f32 %v1720_v47 }
 0x7cc   : > { %v6424_v48 = vpop.eup %6423 }
 0x7cd   : > { %v1722_v49 = vsel %vm1383_vm6, %v6424_v48, 0.0 }
 0x7ce   : > { %v6426_v50 = vpop.eup %6425  ;;  %1723 = vadd.xlane.f32.xlu0 %v1722_v49 }
 0x7cf   : > { %v1725_v51 = vsel %vm1387_vm7, %v6426_v50, 0.0 }
 0x7d0   : > { %1726 = vadd.xlane.f32.xlu1 %v1725_v51 }
 0x85b   : > { %v1724_v52 = vpop.xlane.xlu0 %1723 }
 0x85c   : > { %6427 = vrcp.f32 %v1724_v52 }
 0x85d   : > { %v1727_v53 = vpop.xlane.xlu1 %1726 }
 0x85e   : > { %6429 = vrcp.f32 %v1727_v53 }
 0x866   : > { %v6428_v54 = vpop.eup %6427 }
 0x867   : > { %v1730_v57 = vmul.f32 %v6428_v54, %v6424_v48 }
 0x868   : > { %v6430_v55 = vpop.eup %6429 }
 0x869   : > { %v1731_v59 = vmul.f32 %v6430_v55, %v6426_v50 }
 0x86b   : > { %v1732_v60 = vpack.c.bf16 %v1731_v59, %v1730_v57 }
 0x86d   : > { %5881 = vmatmul.mubr.msk.bf16.vlgmr.msra.gmra.mrb[24].mxu1 %vm1383_vm6, %v1732_v60 }
 0x86e   : > { %5891 = vmatpush3.bf16.msra.mxu1 %v1836_v61  ;;  %5892 = vmatprep.mubr.msk.bf16.mxu1 %vm6553_vm3, %v6552_v37 }
 0x86f   : > { %5904 = vmatprep.subr.bf16.mxu1 %v6552_v37 }
 0x875   : > { %5893 = vmatmul.mubr.msk.bf16.vlgmr.msra.gmra.mrb[28].mxu1 %vm1331_vm4, %v1457_v8  ;;  %v6348_v8 = vld [vmem:[%s6599_s3 + $0x28] sm:$0xff]  }
 0x876   : > { %5905 = vmatpush3.bf16.msra.mxu1 %v6345_v62  ;;  %5908 = vmatprep.mubr.msk.bf16.mxu1 %vm6553_vm3, %v6552_v37 }
 0x877   : > { %5906 = vmatprep.subr.bf16.mxu1 %v6552_v37 }
 0x87a   : > { %5907 = vmatpush3.bf16.msra.mxu1 %v6346_v63 }
 0x87b   : > { %5920 = vmatprep.subr.bf16.mxu1 %v6552_v37 }
 0x87d   : > { %5909 = vmatmul.mubr.msk.bf16.vlgmr.msra.gmra.mrb[32].mxu1 %vm1088_vm1, %v6772_v58 }
 0x87e   : > { %5922 = vmatprep.mubr.msk.bf16.mxu1 %vm6553_vm3, %v6552_v37 }
 0x940   : > { %v1774_v2 = vpop.f32.mrb[24].mxu1 }
 0x941   : > { %v5882_v3 = vpop.f32.mrb[25].mxu1 }
 0x942   : > { %v1777_v4 = vpop.f32.mrb[26].mxu1 }
 0x943   : > { %v1781_v6 = vpack.c.bf16 %v1777_v4, %v1774_v2  ;;  %v5883_v7 = vpop.f32.mrb[27].mxu1 }
 0x945   : > { %5887 = vmatmul.mubr.msk.bf16.vlgmr.msra.gmra.mrb[16].mxu0 %vm1331_vm4, %v1781_v6 }
 0x946   : > { %5897 = vmatpush3.bf16.msra.mxu0 %v6347_v5  ;;  %5900 = vmatprep.mubr.msk.bf16.mxu0 %vm6553_vm3, %v6552_v37 }
 0x947   : > { %5898 = vmatprep.subr.bf16.mxu0 %v6552_v37 }
 0x948   : > { %v1872_v9 = vpop.f32.mrb[28].mxu1 }
 0x949   : > { %v5894_v10 = vpop.f32.mrb[29].mxu1 }
 0x94a   : > { %v1875_v11 = vpop.f32.mrb[30].mxu1  ;;  %5899 = vmatpush3.bf16.msra.mxu0 %v6348_v8 }
 0x94b   : > { %v5895_v13 = vpop.f32.mrb[31].mxu1  ;;  %5912 = vmatprep.subr.bf16.mxu0 %v6552_v37 }
 0x94d   : > { %5901 = vmatmul.mubr.msk.bf16.vlgmr.msra.gmra.mrb[20].mxu0 %vm1088_vm1, %v6772_v58 }
 0x94e   : > { %5913 = vmatpush3.bf16.msra.mxu0 %v6349_v12  ;;  %5916 = vmatprep.mubr.msk.bf16.mxu0 %vm6553_vm3, %v6552_v37 }
 0x94f   : > { %5914 = vmatprep.subr.bf16.mxu0 %v6552_v37 }
 0x950   : > { %v2004_v16 = vpop.f32.mrb[32].mxu1 }
 0x951   : > { %v5910_v17 = vpop.f32.mrb[33].mxu1  ;;  %v2005_v20 = vadd.f32 %v5385_v15, %v2004_v16 }
 0x952   : > { %v2007_v19 = vpop.f32.mrb[34].mxu1  ;;  %5915 = vmatpush3.bf16.msra.mxu0 %v6350_v14  ;;  %v6352_v17 = vld [vmem:[%s6599_s3 + $0x38] sm:$0xff]  }
 0x953   : > { %v2008_v22 = vadd.f32 %v5385_v15, %v2007_v19  ;;  %v5911_v23 = vpop.f32.mrb[35].mxu1  ;;  %5926 = vmatprep.subr.bf16.mxu0 %v6552_v37  ;;  %v6351_v15 = vld [vmem:[%s6599_s3 + $0x30] sm:$0xff]  }
 0x954   : > { %v6353_v19 = vld [vmem:[%s6609_s14 + $0x30] sm:$0xff]  }
 0x955   : > { %v2078_v24 = vpack.c.bf16 %v2008_v22, %v2005_v20  ;;  %5917 = vmatmul.mubr.msk.bf16.vlgmr.msra.gmra.mrb[24].mxu0 %vm1088_vm1, %v6772_v58  ;;  %v6354_v20 = vld [vmem:[%s6609_s14 + $0x38] sm:$0xff]   ;;  %v5400_v22 = vld [vmem:[%s6629_s6 + $0x8] sm:$0xf] }
 0x956   : > { %5928 = vmatprep.mubr.msk.bf16.mxu0 %vm6553_vm3, %v6552_v37  ;;  %v2208_v23 = vsel %vm1787_vm8, %v5400_v22, 0 }
 0x957   : > { %v2083_v25 = vsel %vm1331_vm4, %v2078_v24, 0 }
 0x958   : > { %5921 = vmatpush3.bf16.xpose.msra.mxu1 %v2083_v25 }
 0x959   : > { %5932 = vmatprep.subr.bf16.mxu1 %v6552_v37 }
 0xa18   : > { %v1825_v26 = vpop.f32.mrb[16].mxu0 }
 0xa19   : > { %v6904_v27 = vadd.f32 %v1872_v9, %v1825_v26  ;;  %v5888_v28 = vpop.f32.mrb[17].mxu0 }
 0xa1a   : > { %v1828_v29 = vpop.f32.mrb[18].mxu0  ;;  %v6355_v28 = vld [vmem:[%s6604_s8 + $0x30] sm:$0xff]  }
 0xa1b   : > { %v6906_v30 = vadd.f32 %v1875_v11, %v1828_v29  ;;  %v5889_v31 = vpop.f32.mrb[19].mxu0 }
 0xa20   : > { %v1938_v33 = vpop.f32.mrb[20].mxu0 }
 0xa21   : > { %v5902_v34 = vpop.f32.mrb[21].mxu0  ;;  %v1939_v38 = vadd.f32 %v5376_v32, %v1938_v33  ;;  %v5407_v33 = vld [vmem:[%s6614_s19 + $0x3] ss:$0 sm:$0xff] }
 0xa22   : > { %v1941_v36 = vpop.f32.mrb[22].mxu0 }
 0xa23   : > { %v1942_v39 = vadd.f32 %v5376_v32, %v1941_v36  ;;  %v5903_v41 = vpop.f32.mrb[23].mxu0  ;;  %v6356_v32 = vld [vmem:[%s6604_s8 + $0x38] sm:$0xff]  }
 0xa25   : > { %v2077_v42 = vpack.c.bf16 %v1942_v39, %v1939_v38 }
 0xa27   : > { %5923 = vmatmul.mubr.msk.bf16.vlgmr.msra.gmra.mrb[36].mxu1 %vm1331_vm4, %v2077_v42 }
 0xa28   : > { %v2070_v44 = vpop.f32.mrb[24].mxu0  ;;  %5934 = vmatprep.mubr.msk.bf16.mxu1 %vm6553_vm3, %v6552_v37  ;;  %5933 = vmatpush3.bf16.msra.mxu1 %v2208_v23 }
 0xa29   : > { %v5918_v45 = vpop.f32.mrb[25].mxu0  ;;  %v2071_v47 = vadd.f32 %v5394_v43, %v2070_v44  ;;  %5946 = vmatprep.subr.bf16.mxu1 %v6552_v37  ;;  %v5425_v44 = vld [vmem:[%s6624_s30 + $0x3] ss:$0 sm:$0xff] }
 0xa2a   : > { %v2073_v46 = vpop.f32.mrb[26].mxu0 }
 0xa2b   : > { %v2074_v48 = vadd.f32 %v5394_v43, %v2073_v46  ;;  %v5919_v49 = vpop.f32.mrb[27].mxu0 }
 0xa2d   : > { %v2153_v50 = vpack.c.bf16 %v2074_v48, %v2071_v47 }
 0xa2f   : > { %v2158_v51 = vsel %vm1412_vm5, %v2153_v50, 0 }
 0xa30   : > { %5927 = vmatpush3.bf16.msra.mxu0 %v2158_v51 }
 0xa31   : > { %5938 = vmatprep.subr.bf16.mxu0 %v6552_v37 }
 0xafa   : > { %v2119_v52 = vpop.f32.mrb[36].mxu1 }
 0xafb   : > { %v2126_v53 = vmul.f32 0.35355338, %v2119_v52  ;;  %v5924_v54 = vpop.f32.mrb[37].mxu1 }
 0xafc   : > { %v2122_v55 = vpop.f32.mrb[38].mxu1 }
 0xafd   : > { %v2127_v56 = vmul.f32 0.35355338, %v2122_v55  ;;  %v5925_v57 = vpop.f32.mrb[39].mxu1  ;;  %v2128_v59 = vadd.f32 %v2126_v53, %v6810_v35 }
 0xaff   : > { %v2130_v60 = vsel %vm1383_vm6, %v2128_v59, -inf  ;;  %v2129_v61 = vadd.f32 %v2127_v56, %v6813_v40 }
 0xb00   : > { %2131 = vmax.xlane.f32.xlu0 %v2130_v60 }
 0xb01   : > { %v2133_v62 = vsel %vm1387_vm7, %v2129_v61, -inf }
 0xb02   : > { %2134 = vmax.xlane.f32.xlu1 %v2133_v62 }
 0xb8d   : > { %v2132_v63 = vpop.xlane.xlu0 %2131 }
 0xb8e   : > { %v2136_v0 = vsub.f32 %v2128_v59, %v2132_v63  ;;  %v5416_v59 = vld [vmem:[%s6619_s24 + $0x3] ss:$0 sm:$0xff] }
 0xb8f   : > { %v2135_v1 = vpop.xlane.xlu1 %2134 }
 0xb90   : > { %v2138_v2 = vmul.f32 1.442695, %v2136_v0  ;;  %v2137_v3 = vsub.f32 %v2129_v61, %v2135_v1 }
 0xb92   : > { %6431 = vpow2.f32 %v2138_v2  ;;  %v2140_v4 = vmul.f32 1.442695, %v2137_v3 }
 0xb94   : > { %6433 = vpow2.f32 %v2140_v4 }
 0xb9c   : > { %v6432_v5 = vpop.eup %6431 }
 0xb9d   : > { %v2142_v6 = vsel %vm1383_vm6, %v6432_v5, 0.0 }
 0xb9e   : > { %v6434_v7 = vpop.eup %6433  ;;  %2143 = vadd.xlane.f32.xlu0 %v2142_v6 }
 0xb9f   : > { %v2145_v8 = vsel %vm1387_vm7, %v6434_v7, 0.0 }
 0xba0   : > { %2146 = vadd.xlane.f32.xlu1 %v2145_v8 }
 0xc2b   : > { %v2144_v9 = vpop.xlane.xlu0 %2143 }
 0xc2c   : > { %6435 = vrcp.f32 %v2144_v9 }
 0xc2d   : > { %v2147_v10 = vpop.xlane.xlu1 %2146 }
 0xc2e   : > { %6437 = vrcp.f32 %v2147_v10 }
 0xc36   : > { %v6436_v11 = vpop.eup %6435 }
 0xc37   : > { %v2150_v13 = vmul.f32 %v6436_v11, %v6432_v5 }
 0xc38   : > { %v6438_v12 = vpop.eup %6437 }
 0xc39   : > { %v2151_v14 = vmul.f32 %v6438_v12, %v6434_v7 }
 0xc3b   : > { %v2152_v16 = vpack.c.bf16 %v2151_v14, %v2150_v13 }
 0xc3d   : > { %5929 = vmatmul.mubr.msk.bf16.vlgmr.msra.gmra.mrb[28].mxu0 %vm1383_vm6, %v2152_v16 }
 0xc3e   : > { %5939 = vmatpush3.bf16.msra.mxu0 %v6351_v15  ;;  %5942 = vmatprep.mubr.msk.bf16.mxu0 %vm6553_vm3, %v6552_v37 }
 0xc3f   : > { %5940 = vmatprep.subr.bf16.mxu0 %v6552_v37 }
 0xc42   : > { %5941 = vmatpush3.bf16.msra.mxu0 %v6352_v17 }
 0xc43   : > { %5954 = vmatprep.subr.bf16.mxu0 %v6552_v37 }
 0xc45   : > { %5943 = vmatmul.mubr.msk.bf16.vlgmr.msra.gmra.mrb[32].mxu0 %vm1088_vm1, %v6772_v58 }
 0xc46   : > { %5955 = vmatpush3.bf16.msra.mxu0 %v6353_v19  ;;  %5958 = vmatprep.mubr.msk.bf16.mxu0 %vm6553_vm3, %v6552_v37 }
 0xc47   : > { %5956 = vmatprep.subr.bf16.mxu0 %v6552_v37 }
 0xc4a   : > { %5957 = vmatpush3.bf16.msra.mxu0 %v6354_v20 }
 0xc4b   : > { %5968 = vmatprep.subr.bf16.mxu0 %v6552_v37 }
 0xc4d   : > { %5959 = vmatmul.mubr.msk.bf16.vlgmr.msra.gmra.mrb[36].mxu0 %vm1088_vm1, %v6772_v58 }
 0xc4e   : > { %5970 = vmatprep.mubr.msk.bf16.mxu0 %vm6553_vm3, %v6552_v37 }
 0xd10   : > { %v2194_v24 = vpop.f32.mrb[28].mxu0 }
 0xd11   : > { %v5930_v25 = vpop.f32.mrb[29].mxu0 }
 0xd12   : > { %v2197_v26 = vpop.f32.mrb[30].mxu0 }
 0xd13   : > { %v2201_v29 = vpack.c.bf16 %v2197_v26, %v2194_v24  ;;  %v5931_v31 = vpop.f32.mrb[31].mxu0 }
 0xd14   : > { %v5431_v31 = vld [vmem:[%s6629_s6 + $0xc] sm:$0xf] }
 0xd15   : > { %5935 = vmatmul.mubr.msk.bf16.vlgmr.msra.gmra.mrb[40].mxu1 %vm1331_vm4, %v2201_v29 }
 0xd16   : > { %5947 = vmatpush3.bf16.msra.mxu1 %v6355_v28  ;;  %5950 = vmatprep.mubr.msk.bf16.mxu1 %vm6553_vm3, %v6552_v37 }
 0xd17   : > { %5948 = vmatprep.subr.bf16.mxu1 %v6552_v37 }
 0xd18   : > { %v2312_v34 = vpop.f32.mrb[32].mxu0 }
 0xd19   : > { %v5944_v36 = vpop.f32.mrb[33].mxu0  ;;  %v2313_v39 = vadd.f32 %v5407_v33, %v2312_v34 }
 0xd1a   : > { %v2315_v38 = vpop.f32.mrb[34].mxu0  ;;  %5949 = vmatpush3.bf16.msra.mxu1 %v6356_v32  ;;  %v2582_v32 = vsel %vm1787_vm8, %v5431_v31, 0 }
 0xd1b   : > { %v2316_v41 = vadd.f32 %v5407_v33, %v2315_v38  ;;  %v5945_v42 = vpop.f32.mrb[35].mxu0  ;;  %5962 = vmatprep.subr.bf16.mxu1 %v6552_v37 }
 0xd1d   : > { %v2451_v43 = vpack.c.bf16 %v2316_v41, %v2313_v39  ;;  %5951 = vmatmul.mubr.msk.bf16.vlgmr.msra.gmra.mrb[44].mxu1 %vm1088_vm1, %v6772_v58 }
 0xd1e   : > { %5964 = vmatprep.mubr.msk.bf16.mxu1 %vm6553_vm3, %v6552_v37 }
 0xd20   : > { %v2444_v45 = vpop.f32.mrb[36].mxu0 }
 0xd21   : > { %v5960_v46 = vpop.f32.mrb[37].mxu0  ;;  %v2445_v48 = vadd.f32 %v5425_v44, %v2444_v45 }
 0xd22   : > { %v2447_v47 = vpop.f32.mrb[38].mxu0 }
 0xd23   : > { %v2448_v49 = vadd.f32 %v5425_v44, %v2447_v47  ;;  %v5961_v50 = vpop.f32.mrb[39].mxu0  ;;  %v5433_v44 = vld [vmem:[%s6634_s12] ss:$0 sm:$0xff] }
 0xd25   : > { %v2527_v51 = vpack.c.bf16 %v2448_v49, %v2445_v48 }
 0xd27   : > { %v2532_v52 = vsel %vm1412_vm5, %v2527_v51, 0 }
 0xd28   : > { %5969 = vmatpush3.bf16.msra.mxu0 %v2532_v52 }
 0xd29   : > { %5980 = vmatprep.subr.bf16.mxu0 %v6552_v37 }
 0xde8   : > { %v2244_v53 = vpop.f32.mrb[40].mxu1 }
 0xde9   : > { %v6959_v58 = vadd.f32 %v2244_v53, %v6904_v27  ;;  %v5936_v54 = vpop.f32.mrb[41].mxu1 }
 0xdea   : > { %v2247_v55 = vpop.f32.mrb[42].mxu1 }
 0xdeb   : > { %v6962_v56 = vadd.f32 %v2247_v55, %v6906_v30  ;;  %v5937_v57 = vpop.f32.mrb[43].mxu1 }
 0xdf0   : > { %v2378_v60 = vpop.f32.mrb[44].mxu1 }
 0xdf1   : > { %v5952_v61 = vpop.f32.mrb[45].mxu1  ;;  %v2379_v63 = vadd.f32 %v5416_v59, %v2378_v60 }
 0xdf2   : > { %v2381_v62 = vpop.f32.mrb[46].mxu1 }
 0xdf3   : > { %v2382_v0 = vadd.f32 %v5416_v59, %v2381_v62  ;;  %v5953_v1 = vpop.f32.mrb[47].mxu1  ;;  %v6357_v62 = vld [vmem:[%s7386_s22] sm:$0xff]  }
 0xdf5   : > { %v2452_v2 = vpack.c.bf16 %v2382_v0, %v2379_v63  ;;  %v6358_v63 = vld [vmem:[%s7386_s22 + $0x8] sm:$0xff]  }
 0xdf7   : > { %v2457_v3 = vsel %vm1331_vm4, %v2452_v2, 0 }
 0xdf8   : > { %5963 = vmatpush3.bf16.xpose.msra.mxu1 %v2457_v3 }
 0xdf9   : > { %5974 = vmatprep.subr.bf16.mxu1 %v6552_v37 }
 0xdff   : > { %5965 = vmatmul.mubr.msk.bf16.vlgmr.msra.gmra.mrb[48].mxu1 %vm1331_vm4, %v2451_v43 }
 0xe00   : > { %5976 = vmatprep.mubr.msk.bf16.mxu1 %vm6553_vm3, %v6552_v37  ;;  %5975 = vmatpush3.bf16.msra.mxu1 %v2582_v32 }
 0xe01   : > { %5988 = vmatprep.subr.bf16.mxu1 %v6552_v37 }
 0xed2   : > { %v2493_v27 = vpop.f32.mrb[48].mxu1 }
 0xed3   : > { %v2500_v30 = vmul.f32 0.35355338, %v2493_v27  ;;  %v5966_v4 = vpop.f32.mrb[49].mxu1 }
 0xed4   : > { %v2496_v5 = vpop.f32.mrb[50].mxu1 }
 0xed5   : > { %v2501_v6 = vmul.f32 0.35355338, %v2496_v5  ;;  %v5967_v7 = vpop.f32.mrb[51].mxu1  ;;  %v2502_v8 = vadd.f32 %v2500_v30, %v6810_v35  ;;  %v5434_v5 = vld [vmem:[%s7387_s23] ss:$0 sm:$0xff] }
 0xed7   : > { %v2504_v9 = vsel %vm1383_vm6, %v2502_v8, -inf  ;;  %v2503_v10 = vadd.f32 %v2501_v6, %v6813_v40 }
 0xed8   : > { %2505 = vmax.xlane.f32.xlu0 %v2504_v9 }
 0xed9   : > { %v2507_v11 = vsel %vm1387_vm7, %v2503_v10, -inf }
 0xeda   : > { %2508 = vmax.xlane.f32.xlu1 %v2507_v11 }
 0xf65   : > { %v2506_v12 = vpop.xlane.xlu0 %2505 }
 0xf66   : > { %v2510_v13 = vsub.f32 %v2502_v8, %v2506_v12 }
 0xf67   : > { %v2509_v14 = vpop.xlane.xlu1 %2508 }
 0xf68   : > { %v2512_v15 = vmul.f32 1.442695, %v2510_v13  ;;  %v2511_v16 = vsub.f32 %v2503_v10, %v2509_v14  ;;  %v5435_v10 = vld [vmem:[%s7388_s26] ss:$0 sm:$0xff] }
 0xf6a   : > { %6439 = vpow2.f32 %v2512_v15  ;;  %v2514_v17 = vmul.f32 1.442695, %v2511_v16  ;;  %v6359_v15 = vld [vmem:[%s7389_s28] sm:$0xff]   ;;  %v6360_v16 = vld [vmem:[%s7389_s28 + $0x8] sm:$0xff]  }
 0xf6c   : > { %6441 = vpow2.f32 %v2514_v17  ;;  %v6361_v17 = vld [vmem:[%s7389_s28 + $0x10] sm:$0xff]  }
 0xf74   : > { %v6440_v19 = vpop.eup %6439 }
 0xf75   : > { %v2516_v20 = vsel %vm1383_vm6, %v6440_v19, 0.0 }
 0xf76   : > { %v6442_v35 = vpop.eup %6441  ;;  %2517 = vadd.xlane.f32.xlu0 %v2516_v20  ;;  %v6363_v20 = vld [vmem:[%s7389_s28 + $0x20] sm:$0xff]  }
 0xf77   : > { %v2519_v40 = vsel %vm1387_vm7, %v6442_v35, 0.0 }
 0xf78   : > { %2520 = vadd.xlane.f32.xlu1 %v2519_v40  ;;  %v6365_v40 = vld [vmem:[%s7389_s28 + $0x30] sm:$0xff]  }
0x1003   : > { %v2518_v22 = vpop.xlane.xlu0 %2517 }
0x1004   : > { %6443 = vrcp.f32 %v2518_v22  ;;  %v6366_v22 = vld [vmem:[%s7389_s28 + $0x38] sm:$0xff]  }
0x1005   : > { %v2521_v23 = vpop.xlane.xlu1 %2520 }
0x1006   : > { %6445 = vrcp.f32 %v2521_v23  ;;  %v5436_v23 = vld [vmem:[%s7390_s1] ss:$0 sm:$0xff] }
0x100e   : > { %v6444_v24 = vpop.eup %6443 }
0x100f   : > { %v2524_v26 = vmul.f32 %v6444_v24, %v6440_v19  ;;  %v6362_v19 = vld [vmem:[%s7389_s28 + $0x18] sm:$0xff]  }
0x1010   : > { %v6446_v25 = vpop.eup %6445 }
0x1011   : > { %v2525_v28 = vmul.f32 %v6446_v25, %v6442_v35  ;;  %v6364_v35 = vld [vmem:[%s7389_s28 + $0x28] sm:$0xff]  }
0x1013   : > { %v2526_v29 = vpack.c.bf16 %v2525_v28, %v2524_v26 }
0x1015   : > { %5971 = vmatmul.mubr.msk.bf16.vlgmr.msra.gmra.mrb[40].mxu0 %vm1383_vm6, %v2526_v29 }
0x1016   : > { %5984 = vmatprep.mubr.msk.bf16.mxu0 %vm6553_vm3, %v6552_v37  ;;  %5981 = vmatpush3.bf16.msra.mxu0 %v6357_v62 }
0x1017   : > { %5982 = vmatprep.subr.bf16.mxu0 %v6552_v37 }
0x101a   : > { %5983 = vmatpush3.bf16.msra.mxu0 %v6358_v63 }
0x101b   : > { %6008 = vmatprep.subr.bf16.mxu0 %v6552_v37 }
0x10e8   : > { %v2568_v33 = vpop.f32.mrb[40].mxu0 }
0x10e9   : > { %v5972_v34 = vpop.f32.mrb[41].mxu0 }
0x10ea   : > { %v2571_v36 = vpop.f32.mrb[42].mxu0 }
0x10eb   : > { %v2575_v38 = vpack.c.bf16 %v2571_v36, %v2568_v33  ;;  %v5973_v39 = vpop.f32.mrb[43].mxu0 }
0x10ed   : > { %5977 = vmatmul.mubr.msk.bf16.vlgmr.msra.gmra.mrb[52].mxu1 %vm1331_vm4, %v2575_v38 }
0x10ee   : > { %6004 = vmatprep.mubr.msk.bf16.mxu1 %vm6553_vm3, %v6552_v37  ;;  %5989 = vmatpush3.bf16.msra.mxu1 %v6359_v15 }
0x10ef   : > { %5990 = vmatprep.subr.bf16.mxu1 %v6552_v37 }
0x10f2   : > { %5991 = vmatpush3.bf16.msra.mxu1 %v6360_v16  ;;  %v5451_v16 = vld [vmem:[%s6589_s25 + $0x1] ss:$0 sm:$0xff] }
0x10f3   : > { %5992 = vmatprep.subr.bf16.mxu1 %v6552_v37 }
0x10f6   : > { %5993 = vmatpush3.bf16.msra.mxu1 %v6361_v17 }
0x10f7   : > { %5994 = vmatprep.subr.bf16.mxu1 %v6552_v37 }
0x10fa   : > { %5995 = vmatpush3.bf16.msra.mxu1 %v6362_v19 }
0x10fb   : > { %5996 = vmatprep.subr.bf16.mxu1 %v6552_v37 }
0x10fe   : > { %5997 = vmatpush3.bf16.msra.mxu1 %v6363_v20 }
0x10ff   : > { %5998 = vmatprep.subr.bf16.mxu1 %v6552_v37 }
0x1102   : > { %5999 = vmatpush3.bf16.msra.mxu1 %v6364_v35 }
0x1103   : > { %6000 = vmatprep.subr.bf16.mxu1 %v6552_v37 }
0x1106   : > { %6001 = vmatpush3.bf16.msra.mxu1 %v6365_v40  ;;  %v5452_v40 = vld [vmem:[%s6594_s29 + $0x1] ss:$0 sm:$0xff] }
0x1107   : > { %6002 = vmatprep.subr.bf16.mxu1 %v6552_v37 }
0x110a   : > { %6003 = vmatpush3.bf16.msra.mxu1 %v6366_v22 }
0x110b   : > { %6038 = vmatprep.subr.bf16.mxu1 %v6552_v37 }
0x11c0   : > { %v2618_v41 = vpop.f32.mrb[52].mxu1 }
0x11c1   : > { %v2625_v42 = vadd.f32 %v2618_v41, %v6959_v58  ;;  %v5978_v43 = vpop.f32.mrb[53].mxu1 }
0x11c2   : > { %v2621_v45 = vpop.f32.mrb[54].mxu1 }
0x11c3   : > { %v2627_v46 = vadd.f32 %v2625_v42, %v6742_v18  ;;  %v2626_v47 = vadd.f32 %v2621_v45, %v6962_v56  ;;  %v5979_v48 = vpop.f32.mrb[55].mxu1 }
0x11c5   : > { %v6989_v49 = vadd.f32 %v5433_v44, %v2627_v46  ;;  %v2628_v50 = vadd.f32 %v2626_v47, %v6744_v21 }
0x11c7   : > { %v6992_v51 = vadd.f32 %v5433_v44, %v2628_v50  ;;  %v2640_v52 = vsel %vm1088_vm1, %v6989_v49, 0.0 }
0x11c8   : > { %2641 = vadd.xlane.f32.xlu0 %v2640_v52 }
0x11c9   : > { %v2643_v53 = vsel %vm1092_vm2, %v6992_v51, 0.0 }
0x11ca   : > { %2644 = vadd.xlane.f32.xlu1 %v2643_v53 }
0x1255   : > { %v2642_v18 = vpop.xlane.xlu0 %2641 }
0x1256   : > { %v2646_v58 = vmul.f32 0.03125, %v2642_v18 }
0x1257   : > { %v2645_v54 = vpop.xlane.xlu1 %2644 }
0x1258   : > { %v2648_v55 = vsub.f32 %v6989_v49, %v2646_v58  ;;  %v2647_v56 = vmul.f32 0.03125, %v2645_v54 }
0x125a   : > { %v2649_v21 = vsub.f32 %v6992_v51, %v2647_v56  ;;  %v2650_v57 = vmul.f32 %v2648_v55, %v2648_v55 }
0x125c   : > { %v2652_v59 = vsel %vm1088_vm1, %v2650_v57, 0.0  ;;  %v2651_v60 = vmul.f32 %v2649_v21, %v2649_v21 }
0x125d   : > { %2653 = vadd.xlane.f32.xlu0 %v2652_v59 }
0x125e   : > { %v2655_v61 = vsel %vm1092_vm2, %v2651_v60, 0.0 }
0x125f   : > { %2656 = vadd.xlane.f32.xlu1 %v2655_v61 }
0x12ea   : > { %v2654_v0 = vpop.xlane.xlu0 %2653 }
0x12eb   : > { %v2658_v1 = vmul.f32 0.03125, %v2654_v0 }
0x12ec   : > { %v2657_v2 = vpop.xlane.xlu1 %2656 }
0x12ed   : > { %v2660_v3 = vadd.f32 1e-06, %v2658_v1  ;;  %v2659_v27 = vmul.f32 0.03125, %v2657_v2 }
0x12ef   : > { %6447 = vrsqrt.f32 %v2660_v3  ;;  %v2661_v30 = vadd.f32 1e-06, %v2659_v27 }
0x12f1   : > { %6449 = vrsqrt.f32 %v2661_v30 }
0x12f9   : > { %v6448_v4 = vpop.eup %6447 }
0x12fa   : > { %v2664_v6 = vmul.f32 %v6448_v4, %v2648_v55  ;;  %v5448_v55 = vld [vmem:[%s7391_s2] ss:$0 sm:$0xff] }
0x12fb   : > { %v6450_v7 = vpop.eup %6449 }
0x12fc   : > { %v2672_v8 = vmul.f32 %v5434_v5, %v2664_v6  ;;  %v2665_v9 = vmul.f32 %v6450_v7, %v2649_v21  ;;  %v6367_v7 = vld [vmem:[%s6599_s3 + $0x40] sm:$0xff]  }
0x12fe   : > { %v2673_v11 = vmul.f32 %v5434_v5, %v2665_v9  ;;  %v2680_v12 = vadd.f32 %v5435_v10, %v2672_v8  ;;  %v6368_v8 = vld [vmem:[%s6599_s3 + $0x48] sm:$0xff]  }
0x1300   : > { %v2681_v13 = vadd.f32 %v5435_v10, %v2673_v11 }
0x1302   : > { %v2686_v14 = vpack.c.bf16 %v2681_v13, %v2680_v12 }
0x1304   : > { %5985 = vmatmul.mubr.msk.bf16.vlgmr.msra.gmra.mrb[44].mxu0 %vm1088_vm1, %v2686_v14 }
0x1305   : > { %6012 = vmatprep.mubr.msk.bf16.mxu0 %vm6553_vm3, %v6552_v37  ;;  %6009 = vmatpush3.bf16.msra.mxu0 %v6367_v7 }
0x1306   : > { %6010 = vmatprep.subr.bf16.mxu0 %v6552_v37 }
0x1309   : > { %6011 = vmatpush3.bf16.msra.mxu0 %v6368_v8  ;;  %v7105_v8 = vld [vmem:[%s6579_s17 + $0x8] sm:$0x3] }
0x130a   : > { %6016 = vmatprep.subr.bf16.mxu0 %v6552_v37 }
0x13d7   : > { %v2743_v24 = vpop.f32.mrb[44].mxu0 }
0x13d8   : > { %v2744_v25 = vadd.f32 %v5436_v23, %v2743_v24  ;;  %v5986_v26 = vpop.f32.mrb[45].mxu0 }
0x13d9   : > { %v2746_v28 = vpop.f32.mrb[46].mxu0 }
0x13da   : > { %v2750_v29 = vmul.f32 %v2744_v25, %v2744_v25  ;;  %v2747_v31 = vadd.f32 %v5436_v23, %v2746_v28  ;;  %v5987_v32 = vpop.f32.mrb[47].mxu0  ;;  %v6370_v28 = vld [vmem:[%s6604_s8 + $0x48] sm:$0xff]  }
0x13db   : > { %v5458_v32 = vld [vmem:[%s6614_s19 + $0x4] ss:$0 sm:$0xff] }
0x13dc   : > { %v2752_v33 = vmul.f32 %v2750_v29, %v2744_v25  ;;  %v2751_v34 = vmul.f32 %v2747_v31, %v2747_v31  ;;  %v6371_v29 = vld [vmem:[%s6609_s14 + $0x40] sm:$0xff]  }
0x13de   : > { %v2754_v36 = vmul.f32 0.044715, %v2752_v33  ;;  %v2753_v38 = vmul.f32 %v2751_v34, %v2747_v31 }
0x13e0   : > { %v2756_v39 = vadd.f32 %v2754_v36, %v2744_v25  ;;  %v2755_v41 = vmul.f32 0.044715, %v2753_v38 }
0x13e2   : > { %v2758_v42 = vmul.f32 0.7978846, %v2756_v39  ;;  %v2757_v43 = vadd.f32 %v2755_v41, %v2747_v31 }
0x13e4   : > { %6451 = vtanh.f32 %v2758_v42  ;;  %v2759_v44 = vmul.f32 0.7978846, %v2757_v43  ;;  %v5467_v43 = vld [vmem:[%s6619_s24 + $0x4] ss:$0 sm:$0xff] }
0x13e6   : > { %6453 = vtanh.f32 %v2759_v44 }
0x13ee   : > { %v6452_v45 = vpop.eup %6451 }
0x13ef   : > { %v2762_v46 = vadd.f32 1.0, %v6452_v45 }
0x13f0   : > { %v6454_v47 = vpop.eup %6453 }
0x13f1   : > { %v2764_v48 = vmul.f32 0.5, %v2762_v46  ;;  %v2763_v50 = vadd.f32 1.0, %v6454_v47 }
0x13f3   : > { %v2765_v52 = vmul.f32 0.5, %v2763_v50  ;;  %v2766_v53 = vmul.f32 %v2764_v48, %v2744_v25  ;;  %v6369_v25 = vld [vmem:[%s6604_s8 + $0x40] sm:$0xff]  }
0x13f5   : > { %v2767_v18 = vmul.f32 %v2765_v52, %v2747_v31  ;;  %v6372_v31 = vld [vmem:[%s6609_s14 + $0x48] sm:$0xff]  }
0x13f7   : > { %v2784_v58 = vpack.c.bf16 %v2767_v18, %v2766_v53  ;;  %v5476_v18 = vld [vmem:[%s6624_s30 + $0x4] ss:$0 sm:$0xff] }
0x13f9   : > { %6005 = vmatmul.mubr.bf16.vlgmr.msra.gmra.mrb[56].mxu1 %v2784_v58 }
0x13fa   : > { %6040 = vmatprep.mubr.msk.bf16.mxu1 %vm6553_vm3, %v6552_v37 }
0x14cc   : > { %v2867_v54 = vpop.f32.mrb[56].mxu1 }
0x14cd   : > { %v2874_v56 = vadd.f32 %v2867_v54, %v6989_v49  ;;  %v6006_v21 = vpop.f32.mrb[57].mxu1 }
0x14ce   : > { %v2870_v57 = vpop.f32.mrb[58].mxu1 }
0x14cf   : > { %v7032_v59 = vadd.f32 %v5448_v55, %v2874_v56  ;;  %v2875_v60 = vadd.f32 %v2870_v57, %v6992_v51  ;;  %v6007_v61 = vpop.f32.mrb[59].mxu1 }
0x14d1   : > { %v7035_v62 = vadd.f32 %v5448_v55, %v2875_v60  ;;  %v2889_v63 = vsel %vm1088_vm1, %v7032_v59, 0.0  ;;  %v6373_v60 = vld [vmem:[%s6599_s3 + $0x50] sm:$0xff]  }
0x14d2   : > { %2890 = vadd.xlane.f32.xlu0 %v2889_v63 }
0x14d3   : > { %v2892_v0 = vsel %vm1092_vm2, %v7035_v62, 0.0 }
0x14d4   : > { %2893 = vadd.xlane.f32.xlu1 %v2892_v0  ;;  %v6374_v0 = vld [vmem:[%s6599_s3 + $0x58] sm:$0xff]  }
0x155f   : > { %v2891_v49 = vpop.xlane.xlu0 %2890 }
0x1560   : > { %v2895_v1 = vmul.f32 0.03125, %v2891_v49  ;;  %v6375_v49 = vld [vmem:[%s6609_s14 + $0x50] sm:$0xff]  }
0x1561   : > { %v2894_v2 = vpop.xlane.xlu1 %2893 }
0x1562   : > { %v2897_v3 = vsub.f32 %v7032_v59, %v2895_v1  ;;  %v2896_v27 = vmul.f32 0.03125, %v2894_v2  ;;  %v6376_v1 = vld [vmem:[%s6609_s14 + $0x58] sm:$0xff]  }
0x1564   : > { %v2898_v51 = vsub.f32 %v7035_v62, %v2896_v27  ;;  %v2899_v30 = vmul.f32 %v2897_v3, %v2897_v3 }
0x1566   : > { %v2901_v4 = vsel %vm1088_vm1, %v2899_v30, 0.0  ;;  %v2900_v5 = vmul.f32 %v2898_v51, %v2898_v51 }
0x1567   : > { %2902 = vadd.xlane.f32.xlu0 %v2901_v4 }
0x1568   : > { %v2904_v6 = vsel %vm1092_vm2, %v2900_v5, 0.0  ;;  %v7100_v5 = vld [vmem:[%s6579_s17] sm:$0xff] }
0x1569   : > { %2905 = vadd.xlane.f32.xlu1 %v2904_v6 }
0x15f4   : > { %v2903_v9 = vpop.xlane.xlu0 %2902 }
0x15f5   : > { %v2907_v10 = vmul.f32 0.03125, %v2903_v9 }
0x15f6   : > { %v2906_v11 = vpop.xlane.xlu1 %2905 }
0x15f7   : > { %v2909_v12 = vadd.f32 1e-06, %v2907_v10  ;;  %v2908_v13 = vmul.f32 0.03125, %v2906_v11  ;;  %v5488_v11 = vld [vmem:[%s6614_s19 + $0x5] ss:$0 sm:$0xff] }
0x15f9   : > { %6455 = vrsqrt.f32 %v2909_v12  ;;  %v2910_v14 = vadd.f32 1e-06, %v2908_v13 }
0x15fb   : > { %6457 = vrsqrt.f32 %v2910_v14 }
0x1603   : > { %v6456_v15 = vpop.eup %6455 }
0x1604   : > { %v2913_v17 = vmul.f32 %v6456_v15, %v2897_v3 }
0x1605   : > { %v6458_v19 = vpop.eup %6457 }
0x1606   : > { %v2921_v20 = vmul.f32 %v5451_v16, %v2913_v17  ;;  %v2914_v35 = vmul.f32 %v6458_v19, %v2898_v51 }
0x1608   : > { %v2922_v22 = vmul.f32 %v5451_v16, %v2914_v35  ;;  %v2929_v23 = vadd.f32 %v5452_v40, %v2921_v20  ;;  %v5506_v20 = vld [vmem:[%s6624_s30 + $0x5] ss:$0 sm:$0xff] }
0x160a   : > { %v2930_v24 = vadd.f32 %v5452_v40, %v2922_v22 }
0x160c   : > { %v7052_v26 = vpack.c.bf16 %v2930_v24, %v2929_v23 }
0x160e   : > { %6013 = vmatmul.mubr.msk.bf16.vlgmr.msra.gmra.mrb[48].mxu0 %vm1088_vm1, %v7052_v26 }
0x160f   : > { %6017 = vmatpush3.bf16.msra.mxu0 %v6369_v25  ;;  %6020 = vmatprep.mubr.msk.bf16.mxu0 %vm6553_vm3, %v6552_v37 }
0x1610   : > { %6018 = vmatprep.subr.bf16.mxu0 %v6552_v37 }
0x1613   : > { %6019 = vmatpush3.bf16.msra.mxu0 %v6370_v28 }
0x1614   : > { %6024 = vmatprep.subr.bf16.mxu0 %v6552_v37 }
0x1616   : > { %6021 = vmatmul.mubr.msk.bf16.vlgmr.msra.gmra.mrb[52].mxu0 %vm1088_vm1, %v7052_v26 }
0x1617   : > { %6025 = vmatpush3.bf16.msra.mxu0 %v6371_v29  ;;  %6028 = vmatprep.mubr.msk.bf16.mxu0 %vm6553_vm3, %v6552_v37 }
0x1618   : > { %6026 = vmatprep.subr.bf16.mxu0 %v6552_v37 }
0x161b   : > { %6027 = vmatpush3.bf16.msra.mxu0 %v6372_v31 }
0x161c   : > { %6032 = vmatprep.subr.bf16.mxu0 %v6552_v37 }
0x161e   : > { %6029 = vmatmul.mubr.msk.bf16.vlgmr.msra.gmra.mrb[56].mxu0 %vm1088_vm1, %v7052_v26 }
0x161f   : > { %6034 = vmatprep.mubr.msk.bf16.mxu0 %vm6553_vm3, %v6552_v37 }
0x16e1   : > { %v2994_v33 = vpop.f32.mrb[48].mxu0 }
0x16e2   : > { %v6014_v34 = vpop.f32.mrb[49].mxu0  ;;  %v2995_v38 = vadd.f32 %v5458_v32, %v2994_v33 }
0x16e3   : > { %v2997_v36 = vpop.f32.mrb[50].mxu0 }
0x16e4   : > { %v2998_v39 = vadd.f32 %v5458_v32, %v2997_v36  ;;  %v6015_v41 = vpop.f32.mrb[51].mxu0 }
0x16e6   : > { %v3133_v42 = vpack.c.bf16 %v2998_v39, %v2995_v38 }
0x16e9   : > { %v3060_v44 = vpop.f32.mrb[52].mxu0 }
0x16ea   : > { %v6022_v45 = vpop.f32.mrb[53].mxu0  ;;  %v3061_v47 = vadd.f32 %v5467_v43, %v3060_v44 }
0x16eb   : > { %v3063_v46 = vpop.f32.mrb[54].mxu0 }
0x16ec   : > { %v3064_v48 = vadd.f32 %v5467_v43, %v3063_v46  ;;  %v6023_v50 = vpop.f32.mrb[55].mxu0 }
0x16ee   : > { %v3134_v52 = vpack.c.bf16 %v3064_v48, %v3061_v47 }
0x16f0   : > { %v3139_v53 = vsel %vm1331_vm4, %v3134_v52, 0  ;;  %v6377_v52 = vld [vmem:[%s6604_s8 + $0x50] sm:$0xff]  }
0x16f1   : > { %v3126_v58 = vpop.f32.mrb[56].mxu0  ;;  %6033 = vmatpush3.bf16.xpose.msra.mxu0 %v3139_v53 }
0x16f2   : > { %v6030_v54 = vpop.f32.mrb[57].mxu0  ;;  %6044 = vmatprep.subr.bf16.mxu0 %v6552_v37  ;;  %v3127_v56 = vadd.f32 %v5476_v18, %v3126_v58 }
0x16f3   : > { %v3129_v55 = vpop.f32.mrb[58].mxu0 }
0x16f4   : > { %v3130_v21 = vadd.f32 %v5476_v18, %v3129_v55  ;;  %v6031_v57 = vpop.f32.mrb[59].mxu0  ;;  %v6378_v18 = vld [vmem:[%s6604_s8 + $0x58] sm:$0xff]  }
0x16f5   : > { %v5497_v57 = vld [vmem:[%s6619_s24 + $0x5] ss:$0 sm:$0xff] }
0x16f6   : > { %v3209_v61 = vpack.c.bf16 %v3130_v21, %v3127_v56 }
0x16f8   : > { %6035 = vmatmul.mubr.msk.bf16.vlgmr.msra.gmra.mrb[60].mxu0 %vm1331_vm4, %v3133_v42  ;;  %v3214_v63 = vsel %vm1412_vm5, %v3209_v61, 0 }
0x16f9   : > { %6039 = vmatpush3.bf16.msra.mxu1 %v3214_v63  ;;  %6045 = vmatpush3.bf16.msra.mxu0 %v6373_v60 }
0x16fa   : > { %6046 = vmatprep.subr.bf16.mxu0 %v6552_v37  ;;  %6048 = vmatprep.mubr.msk.bf16.mxu0 %vm6553_vm3, %v6552_v37 }
0x16fb   : > { %6052 = vmatprep.subr.bf16.mxu1 %v6552_v37 }
0x16fd   : > { %6047 = vmatpush3.bf16.msra.mxu0 %v6374_v0 }
0x16fe   : > { %6060 = vmatprep.subr.bf16.mxu0 %v6552_v37 }
0x1700   : > { %6049 = vmatmul.mubr.msk.bf16.vlgmr.msra.gmra.mrb[64].mxu0 %vm1088_vm1, %v7052_v26 }
0x1701   : > { %6061 = vmatpush3.bf16.msra.mxu0 %v6375_v49  ;;  %6064 = vmatprep.mubr.msk.bf16.mxu0 %vm6553_vm3, %v6552_v37 }
0x1702   : > { %6062 = vmatprep.subr.bf16.mxu0 %v6552_v37 }
0x1705   : > { %6063 = vmatpush3.bf16.msra.mxu0 %v6376_v1 }
0x1706   : > { %6074 = vmatprep.subr.bf16.mxu0 %v6552_v37 }
0x1708   : > { %6065 = vmatmul.mubr.msk.bf16.vlgmr.msra.gmra.mrb[68].mxu0 %vm1088_vm1, %v7052_v26 }
0x1709   : > { %6076 = vmatprep.mubr.msk.bf16.mxu0 %vm6553_vm3, %v6552_v37 }
0x17cb   : > { %v3175_v2 = vpop.f32.mrb[60].mxu0 }
0x17cc   : > { %v3182_v3 = vmul.f32 0.35355338, %v3175_v2  ;;  %v6036_v27 = vpop.f32.mrb[61].mxu0 }
0x17cd   : > { %v3178_v51 = vpop.f32.mrb[62].mxu0 }
0x17ce   : > { %v3183_v30 = vmul.f32 0.35355338, %v3178_v51  ;;  %v6037_v4 = vpop.f32.mrb[63].mxu0  ;;  %v3184_v6 = vadd.f32 %v7100_v5, %v3182_v3 }
0x17d0   : > { %v3186_v7 = vsel %vm1383_vm6, %v3184_v6, -inf  ;;  %v3185_v9 = vadd.f32 %v7105_v8, %v3183_v30 }
0x17d1   : > { %3187 = vmax.xlane.f32.xlu0 %v3186_v7 }
0x17d2   : > { %v3189_v10 = vsel %vm1387_vm7, %v3185_v9, -inf }
0x17d3   : > { %3190 = vmax.xlane.f32.xlu1 %v3189_v10  ;;  %v3319_v12 = vpop.f32.mrb[64].mxu0 }
0x17d4   : > { %v6050_v13 = vpop.f32.mrb[65].mxu0  ;;  %v7110_v15 = vadd.f32 %v5488_v11, %v3319_v12 }
0x17d5   : > { %v3322_v14 = vpop.f32.mrb[66].mxu0 }
0x17d6   : > { %v7112_v16 = vadd.f32 %v5488_v11, %v3322_v14  ;;  %v6051_v17 = vpop.f32.mrb[67].mxu0 }
0x17d8   : > { %v3458_v19 = vpack.c.bf16 %v7112_v16, %v7110_v15 }
0x17db   : > { %v3451_v35 = vpop.f32.mrb[68].mxu0 }
0x17dc   : > { %v6066_v40 = vpop.f32.mrb[69].mxu0  ;;  %v3452_v23 = vadd.f32 %v5506_v20, %v3451_v35 }
0x17dd   : > { %v3454_v22 = vpop.f32.mrb[70].mxu0 }
0x17de   : > { %v3455_v24 = vadd.f32 %v5506_v20, %v3454_v22  ;;  %v6067_v25 = vpop.f32.mrb[71].mxu0 }
0x17e0   : > { %v3534_v28 = vpack.c.bf16 %v3455_v24, %v3452_v23 }
0x17e2   : > { %v3539_v29 = vsel %vm1412_vm5, %v3534_v28, 0 }
0x17e3   : > { %6075 = vmatpush3.bf16.msra.mxu0 %v3539_v29  ;;  %v5482_v29 = vld [vmem:[%s6629_s6 + $0x10] sm:$0xf] }
0x17e4   : > { %6086 = vmatprep.subr.bf16.mxu0 %v6552_v37 }
0x185e   : > { %v3188_v31 = vpop.xlane.xlu0 %3187 }
0x185f   : > { %v3192_v32 = vsub.f32 %v3184_v6, %v3188_v31 }
0x1860   : > { %v3191_v33 = vpop.xlane.xlu1 %3190 }
0x1861   : > { %v3194_v34 = vmul.f32 1.442695, %v3192_v32  ;;  %v3193_v36 = vsub.f32 %v3185_v9, %v3191_v33 }
0x1863   : > { %6459 = vpow2.f32 %v3194_v34  ;;  %v3196_v38 = vmul.f32 1.442695, %v3193_v36  ;;  %v3636_v34 = vsel %vm1787_vm8, %v5482_v29, 0  ;;  %v6379_v36 = vld [vmem:[%s6604_s8 + $0x60] sm:$0xff]  }
0x1865   : > { %6461 = vpow2.f32 %v3196_v38  ;;  %v6380_v38 = vld [vmem:[%s6604_s8 + $0x68] sm:$0xff]  }
0x186d   : > { %v6460_v39 = vpop.eup %6459 }
0x186e   : > { %v3198_v41 = vsel %vm1383_vm6, %v6460_v39, 0.0 }
0x186f   : > { %v6462_v42 = vpop.eup %6461  ;;  %3199 = vadd.xlane.f32.xlu0 %v3198_v41 }
0x1870   : > { %v3201_v43 = vsel %vm1387_vm7, %v6462_v42, 0.0 }
0x1871   : > { %3202 = vadd.xlane.f32.xlu1 %v3201_v43 }
0x18fc   : > { %v3200_v44 = vpop.xlane.xlu0 %3199 }
0x18fd   : > { %6463 = vrcp.f32 %v3200_v44 }
0x18fe   : > { %v3203_v45 = vpop.xlane.xlu1 %3202 }
0x18ff   : > { %6465 = vrcp.f32 %v3203_v45  ;;  %v6381_v45 = vld [vmem:[%s6599_s3 + $0x60] sm:$0xff]  }
0x1907   : > { %v6464_v46 = vpop.eup %6463 }
0x1908   : > { %v3206_v48 = vmul.f32 %v6464_v46, %v6460_v39  ;;  %v5512_v39 = vld [vmem:[%s6629_s6 + $0x14] sm:$0xf] }
0x1909   : > { %v6466_v47 = vpop.eup %6465  ;;  %v3589_v41 = vsel %vm1787_vm8, %v5512_v39, 0 }
0x190a   : > { %v3207_v50 = vmul.f32 %v6466_v47, %v6462_v42 }
0x190c   : > { %v3208_v53 = vpack.c.bf16 %v3207_v50, %v3206_v48  ;;  %v6382_v48 = vld [vmem:[%s6599_s3 + $0x68] sm:$0xff]  }
0x190e   : > { %6041 = vmatmul.mubr.msk.bf16.vlgmr.msra.gmra.mrb[60].mxu1 %vm1383_vm6, %v3208_v53 }
0x190f   : > { %6053 = vmatpush3.bf16.msra.mxu1 %v6377_v52  ;;  %6056 = vmatprep.mubr.msk.bf16.mxu1 %vm6553_vm3, %v6552_v37 }
0x1910   : > { %6054 = vmatprep.subr.bf16.mxu1 %v6552_v37 }
0x1913   : > { %6055 = vmatpush3.bf16.msra.mxu1 %v6378_v18  ;;  %v6383_v18 = vld [vmem:[%s6609_s14 + $0x60] sm:$0xff]  }
0x1914   : > { %6068 = vmatprep.subr.bf16.mxu1 %v6552_v37 }
0x1916   : > { %6057 = vmatmul.mubr.msk.bf16.vlgmr.msra.gmra.mrb[64].mxu1 %vm1088_vm1, %v7052_v26 }
0x1917   : > { %6070 = vmatprep.mubr.msk.bf16.mxu1 %vm6553_vm3, %v6552_v37 }
0x19e1   : > { %v3250_v58 = vpop.f32.mrb[60].mxu1 }
0x19e2   : > { %v6042_v54 = vpop.f32.mrb[61].mxu1 }
0x19e3   : > { %v3253_v55 = vpop.f32.mrb[62].mxu1  ;;  %v6384_v54 = vld [vmem:[%s6609_s14 + $0x68] sm:$0xff]  }
0x19e4   : > { %v3257_v56 = vpack.c.bf16 %v3253_v55, %v3250_v58  ;;  %v6043_v21 = vpop.f32.mrb[63].mxu1  ;;  %v5529_v55 = vld [vmem:[%s6619_s24 + $0x6] ss:$0 sm:$0xff] }
0x19e9   : > { %v3385_v60 = vpop.f32.mrb[64].mxu1 }
0x19ea   : > { %v6058_v61 = vpop.f32.mrb[65].mxu1  ;;  %v3386_v0 = vadd.f32 %v5497_v57, %v3385_v60 }
0x19eb   : > { %v3388_v63 = vpop.f32.mrb[66].mxu1 }
0x19ec   : > { %v3389_v49 = vadd.f32 %v5497_v57, %v3388_v63  ;;  %v6059_v1 = vpop.f32.mrb[67].mxu1 }
0x19ee   : > { %v3459_v2 = vpack.c.bf16 %v3389_v49, %v3386_v0 }
0x19f0   : > { %v3464_v3 = vsel %vm1331_vm4, %v3459_v2, 0 }
0x19f1   : > { %6069 = vmatpush3.bf16.xpose.msra.mxu1 %v3464_v3 }
0x19f2   : > { %6080 = vmatprep.subr.bf16.mxu1 %v6552_v37 }
0x19f8   : > { %6071 = vmatmul.mubr.msk.bf16.vlgmr.msra.gmra.mrb[68].mxu1 %vm1331_vm4, %v3458_v19 }
0x19f9   : > { %6082 = vmatprep.mubr.msk.bf16.mxu1 %vm6553_vm3, %v6552_v37  ;;  %6081 = vmatpush3.bf16.msra.mxu1 %v3589_v41 }
0x19fa   : > { %6092 = vmatprep.subr.bf16.mxu1 %v6552_v37 }
0x1acb   : > { %v3500_v27 = vpop.f32.mrb[68].mxu1 }
0x1acc   : > { %v3507_v51 = vmul.f32 0.35355338, %v3500_v27  ;;  %v6072_v30 = vpop.f32.mrb[69].mxu1 }
0x1acd   : > { %v3503_v4 = vpop.f32.mrb[70].mxu1 }
0x1ace   : > { %v3508_v6 = vmul.f32 0.35355338, %v3503_v4  ;;  %v6073_v7 = vpop.f32.mrb[71].mxu1  ;;  %v3509_v9 = vadd.f32 %v7100_v5, %v3507_v51  ;;  %v5520_v4 = vld [vmem:[%s6614_s19 + $0x6] ss:$0 sm:$0xff] }
0x1ad0   : > { %v3511_v10 = vsel %vm1383_vm6, %v3509_v9, -inf  ;;  %v3510_v11 = vadd.f32 %v7105_v8, %v3508_v6 }
0x1ad1   : > { %3512 = vmax.xlane.f32.xlu0 %v3511_v10 }
0x1ad2   : > { %v3514_v12 = vsel %vm1387_vm7, %v3510_v11, -inf }
0x1ad3   : > { %3515 = vmax.xlane.f32.xlu1 %v3514_v12 }
0x1b5e   : > { %v3513_v13 = vpop.xlane.xlu0 %3512 }
0x1b5f   : > { %v3517_v14 = vsub.f32 %v3509_v9, %v3513_v13 }
0x1b60   : > { %v3516_v15 = vpop.xlane.xlu1 %3515 }
0x1b61   : > { %v3519_v16 = vmul.f32 1.442695, %v3517_v14  ;;  %v3518_v17 = vsub.f32 %v3510_v11, %v3516_v15  ;;  %v5538_v14 = vld [vmem:[%s6624_s30 + $0x6] ss:$0 sm:$0xff] }
0x1b63   : > { %6467 = vpow2.f32 %v3519_v16  ;;  %v3521_v19 = vmul.f32 1.442695, %v3518_v17 }
0x1b65   : > { %6469 = vpow2.f32 %v3521_v19 }
0x1b6d   : > { %v6468_v20 = vpop.eup %6467 }
0x1b6e   : > { %v3523_v35 = vsel %vm1383_vm6, %v6468_v20, 0.0 }
0x1b6f   : > { %v6470_v40 = vpop.eup %6469  ;;  %3524 = vadd.xlane.f32.xlu0 %v3523_v35 }
0x1b70   : > { %v3526_v22 = vsel %vm1387_vm7, %v6470_v40, 0.0 }
0x1b71   : > { %3527 = vadd.xlane.f32.xlu1 %v3526_v22 }
0x1bfc   : > { %v3525_v23 = vpop.xlane.xlu0 %3524 }
0x1bfd   : > { %6471 = vrcp.f32 %v3525_v23 }
0x1bfe   : > { %v3528_v24 = vpop.xlane.xlu1 %3527 }
0x1bff   : > { %6473 = vrcp.f32 %v3528_v24 }
0x1c07   : > { %v6472_v25 = vpop.eup %6471 }
0x1c08   : > { %v3531_v31 = vmul.f32 %v6472_v25, %v6468_v20 }
0x1c09   : > { %v6474_v28 = vpop.eup %6473 }
0x1c0a   : > { %v3532_v32 = vmul.f32 %v6474_v28, %v6470_v40 }
0x1c0c   : > { %v3533_v33 = vpack.c.bf16 %v3532_v32, %v3531_v31 }
0x1c0e   : > { %6077 = vmatmul.mubr.msk.bf16.vlgmr.msra.gmra.mrb[72].mxu0 %vm1383_vm6, %v3533_v33 }
0x1c0f   : > { %6087 = vmatpush3.bf16.msra.mxu0 %v3636_v34  ;;  %6088 = vmatprep.mubr.msk.bf16.mxu0 %vm6553_vm3, %v6552_v37 }
0x1c10   : > { %6100 = vmatprep.subr.bf16.mxu0 %v6552_v37 }
0x1c16   : > { %6089 = vmatmul.mubr.msk.bf16.vlgmr.msra.gmra.mrb[76].mxu0 %vm1331_vm4, %v3257_v56 }
0x1c17   : > { %6101 = vmatpush3.bf16.msra.mxu0 %v6379_v36  ;;  %6104 = vmatprep.mubr.msk.bf16.mxu0 %vm6553_vm3, %v6552_v37 }
0x1c18   : > { %6102 = vmatprep.subr.bf16.mxu0 %v6552_v37 }
0x1c1b   : > { %6103 = vmatpush3.bf16.msra.mxu0 %v6380_v38 }
0x1c1c   : > { %6116 = vmatprep.subr.bf16.mxu0 %v6552_v37 }
0x1c1e   : > { %6105 = vmatmul.mubr.msk.bf16.vlgmr.msra.gmra.mrb[80].mxu0 %vm1088_vm1, %v7052_v26 }
0x1c1f   : > { %6118 = vmatprep.mubr.msk.bf16.mxu0 %vm6553_vm3, %v6552_v37 }
0x1ce1   : > { %v3575_v42 = vpop.f32.mrb[72].mxu0 }
0x1ce2   : > { %v6078_v43 = vpop.f32.mrb[73].mxu0 }
0x1ce3   : > { %v3578_v44 = vpop.f32.mrb[74].mxu0 }
0x1ce4   : > { %v3582_v46 = vpack.c.bf16 %v3578_v44, %v3575_v42  ;;  %v6079_v47 = vpop.f32.mrb[75].mxu0 }
0x1ce6   : > { %6083 = vmatmul.mubr.msk.bf16.vlgmr.msra.gmra.mrb[72].mxu1 %vm1331_vm4, %v3582_v46 }
0x1ce7   : > { %6093 = vmatpush3.bf16.msra.mxu1 %v6381_v45  ;;  %6096 = vmatprep.mubr.msk.bf16.mxu1 %vm6553_vm3, %v6552_v37 }
0x1ce8   : > { %6094 = vmatprep.subr.bf16.mxu1 %v6552_v37 }
0x1ce9   : > { %v3672_v50 = vpop.f32.mrb[76].mxu0 }
0x1cea   : > { %v6090_v52 = vpop.f32.mrb[77].mxu0 }
0x1ceb   : > { %v3675_v53 = vpop.f32.mrb[78].mxu0  ;;  %6095 = vmatpush3.bf16.msra.mxu1 %v6382_v48 }
0x1cec   : > { %v6091_v58 = vpop.f32.mrb[79].mxu0  ;;  %6108 = vmatprep.subr.bf16.mxu1 %v6552_v37 }
0x1cee   : > { %6097 = vmatmul.mubr.msk.bf16.vlgmr.msra.gmra.mrb[76].mxu1 %vm1088_vm1, %v7052_v26 }
0x1cef   : > { %6109 = vmatpush3.bf16.msra.mxu1 %v6383_v18  ;;  %6112 = vmatprep.mubr.msk.bf16.mxu1 %vm6553_vm3, %v6552_v37 }
0x1cf0   : > { %6110 = vmatprep.subr.bf16.mxu1 %v6552_v37 }
0x1cf1   : > { %v3804_v56 = vpop.f32.mrb[80].mxu0 }
0x1cf2   : > { %v6106_v21 = vpop.f32.mrb[81].mxu0  ;;  %v3805_v60 = vadd.f32 %v5529_v55, %v3804_v56 }
0x1cf3   : > { %v3807_v57 = vpop.f32.mrb[82].mxu0  ;;  %6111 = vmatpush3.bf16.msra.mxu1 %v6384_v54  ;;  %v6386_v21 = vld [vmem:[%s6599_s3 + $0x78] sm:$0xff]  }
0x1cf4   : > { %v3808_v61 = vadd.f32 %v5529_v55, %v3807_v57  ;;  %v6107_v63 = vpop.f32.mrb[83].mxu0  ;;  %6122 = vmatprep.subr.bf16.mxu1 %v6552_v37  ;;  %v6385_v55 = vld [vmem:[%s6599_s3 + $0x70] sm:$0xff]  }
0x1cf5   : > { %v6387_v57 = vld [vmem:[%s6609_s14 + $0x70] sm:$0xff]  }
0x1cf6   : > { %v3878_v0 = vpack.c.bf16 %v3808_v61, %v3805_v60  ;;  %6113 = vmatmul.mubr.msk.bf16.vlgmr.msra.gmra.mrb[80].mxu1 %vm1088_vm1, %v7052_v26  ;;  %v6388_v60 = vld [vmem:[%s6609_s14 + $0x78] sm:$0xff]  }
0x1cf7   : > { %6124 = vmatprep.mubr.msk.bf16.mxu1 %vm6553_vm3, %v6552_v37  ;;  %v5544_v61 = vld [vmem:[%s6629_s6 + $0x18] sm:$0xf] }
0x1cf8   : > { %v3883_v49 = vsel %vm1331_vm4, %v3878_v0, 0  ;;  %v4008_v63 = vsel %vm1787_vm8, %v5544_v61, 0 }
0x1cf9   : > { %6117 = vmatpush3.bf16.xpose.msra.mxu0 %v3883_v49 }
0x1cfa   : > { %6128 = vmatprep.subr.bf16.mxu0 %v6552_v37 }
0x1db9   : > { %v3625_v1 = vpop.f32.mrb[72].mxu1 }
0x1dba   : > { %v7186_v2 = vadd.f32 %v3672_v50, %v3625_v1  ;;  %v6084_v3 = vpop.f32.mrb[73].mxu1 }
0x1dbb   : > { %v3628_v27 = vpop.f32.mrb[74].mxu1  ;;  %v6389_v3 = vld [vmem:[%s6604_s8 + $0x70] sm:$0xff]  }
0x1dbc   : > { %v7188_v51 = vadd.f32 %v3675_v53, %v3628_v27  ;;  %v6085_v30 = vpop.f32.mrb[75].mxu1 }
0x1dc1   : > { %v3738_v6 = vpop.f32.mrb[76].mxu1 }
0x1dc2   : > { %v6098_v7 = vpop.f32.mrb[77].mxu1  ;;  %v3739_v10 = vadd.f32 %v5520_v4, %v3738_v6  ;;  %v5551_v6 = vld [vmem:[%s6614_s19 + $0x7] ss:$0 sm:$0xff] }
0x1dc3   : > { %v3741_v9 = vpop.f32.mrb[78].mxu1 }
0x1dc4   : > { %v3742_v11 = vadd.f32 %v5520_v4, %v3741_v9  ;;  %v6099_v12 = vpop.f32.mrb[79].mxu1  ;;  %v6390_v4 = vld [vmem:[%s6604_s8 + $0x78] sm:$0xff]  }
0x1dc6   : > { %v3877_v13 = vpack.c.bf16 %v3742_v11, %v3739_v10 }
0x1dc8   : > { %6119 = vmatmul.mubr.msk.bf16.vlgmr.msra.gmra.mrb[84].mxu0 %vm1331_vm4, %v3877_v13 }
0x1dc9   : > { %v3870_v15 = vpop.f32.mrb[80].mxu1  ;;  %6130 = vmatprep.mubr.msk.bf16.mxu0 %vm6553_vm3, %v6552_v37  ;;  %6129 = vmatpush3.bf16.msra.mxu0 %v4008_v63 }
0x1dca   : > { %v6114_v16 = vpop.f32.mrb[81].mxu1  ;;  %v3871_v19 = vadd.f32 %v5538_v14, %v3870_v15  ;;  %6142 = vmatprep.subr.bf16.mxu0 %v6552_v37  ;;  %v5569_v15 = vld [vmem:[%s6624_s30 + $0x7] ss:$0 sm:$0xff] }
0x1dcb   : > { %v3873_v17 = vpop.f32.mrb[82].mxu1 }
0x1dcc   : > { %v3874_v20 = vadd.f32 %v5538_v14, %v3873_v17  ;;  %v6115_v35 = vpop.f32.mrb[83].mxu1 }
0x1dce   : > { %v3953_v40 = vpack.c.bf16 %v3874_v20, %v3871_v19 }
0x1dd0   : > { %v3958_v22 = vsel %vm1412_vm5, %v3953_v40, 0 }
0x1dd1   : > { %6123 = vmatpush3.bf16.msra.mxu1 %v3958_v22 }
0x1dd2   : > { %6134 = vmatprep.subr.bf16.mxu1 %v6552_v37 }
0x1e9b   : > { %v3919_v23 = vpop.f32.mrb[84].mxu0 }
0x1e9c   : > { %v3926_v24 = vmul.f32 0.35355338, %v3919_v23  ;;  %v6120_v25 = vpop.f32.mrb[85].mxu0 }
0x1e9d   : > { %v3922_v28 = vpop.f32.mrb[86].mxu0 }
0x1e9e   : > { %v3927_v29 = vmul.f32 0.35355338, %v3922_v28  ;;  %v6121_v31 = vpop.f32.mrb[87].mxu0  ;;  %v3928_v32 = vadd.f32 %v7100_v5, %v3926_v24 }
0x1ea0   : > { %v3930_v33 = vsel %vm1383_vm6, %v3928_v32, -inf  ;;  %v3929_v34 = vadd.f32 %v7105_v8, %v3927_v29 }
0x1ea1   : > { %3931 = vmax.xlane.f32.xlu0 %v3930_v33 }
0x1ea2   : > { %v3933_v36 = vsel %vm1387_vm7, %v3929_v34, -inf }
0x1ea3   : > { %3934 = vmax.xlane.f32.xlu1 %v3933_v36 }
0x1f2e   : > { %v3932_v38 = vpop.xlane.xlu0 %3931 }
0x1f2f   : > { %v3936_v39 = vsub.f32 %v3928_v32, %v3932_v38  ;;  %v5560_v32 = vld [vmem:[%s6619_s24 + $0x7] ss:$0 sm:$0xff] }
0x1f30   : > { %v3935_v41 = vpop.xlane.xlu1 %3934 }
0x1f31   : > { %v3938_v42 = vmul.f32 1.442695, %v3936_v39  ;;  %v3937_v43 = vsub.f32 %v3929_v34, %v3935_v41 }
0x1f33   : > { %6475 = vpow2.f32 %v3938_v42  ;;  %v3940_v44 = vmul.f32 1.442695, %v3937_v43 }
0x1f35   : > { %6477 = vpow2.f32 %v3940_v44 }
0x1f3d   : > { %v6476_v45 = vpop.eup %6475 }
0x1f3e   : > { %v3942_v46 = vsel %vm1383_vm6, %v6476_v45, 0.0 }
0x1f3f   : > { %v6478_v47 = vpop.eup %6477  ;;  %3943 = vadd.xlane.f32.xlu0 %v3942_v46 }
0x1f40   : > { %v3945_v48 = vsel %vm1387_vm7, %v6478_v47, 0.0 }
0x1f41   : > { %3946 = vadd.xlane.f32.xlu1 %v3945_v48 }
0x1fcc   : > { %v3944_v50 = vpop.xlane.xlu0 %3943 }
0x1fcd   : > { %6479 = vrcp.f32 %v3944_v50 }
0x1fce   : > { %v3947_v52 = vpop.xlane.xlu1 %3946 }
0x1fcf   : > { %6481 = vrcp.f32 %v3947_v52 }
0x1fd7   : > { %v6480_v53 = vpop.eup %6479 }
0x1fd8   : > { %v3950_v58 = vmul.f32 %v6480_v53, %v6476_v45 }
0x1fd9   : > { %v6482_v18 = vpop.eup %6481 }
0x1fda   : > { %v3951_v54 = vmul.f32 %v6482_v18, %v6478_v47 }
0x1fdc   : > { %v3952_v56 = vpack.c.bf16 %v3951_v54, %v3950_v58 }
0x1fde   : > { %6125 = vmatmul.mubr.msk.bf16.vlgmr.msra.gmra.mrb[84].mxu1 %vm1383_vm6, %v3952_v56 }
0x1fdf   : > { %6135 = vmatpush3.bf16.msra.mxu1 %v6385_v55  ;;  %6138 = vmatprep.mubr.msk.bf16.mxu1 %vm6553_vm3, %v6552_v37 }
0x1fe0   : > { %6136 = vmatprep.subr.bf16.mxu1 %v6552_v37 }
0x1fe3   : > { %6137 = vmatpush3.bf16.msra.mxu1 %v6386_v21 }
0x1fe4   : > { %6150 = vmatprep.subr.bf16.mxu1 %v6552_v37 }
0x1fe6   : > { %6139 = vmatmul.mubr.msk.bf16.vlgmr.msra.gmra.mrb[88].mxu1 %vm1088_vm1, %v7052_v26 }
0x1fe7   : > { %6151 = vmatpush3.bf16.msra.mxu1 %v6387_v57  ;;  %6154 = vmatprep.mubr.msk.bf16.mxu1 %vm6553_vm3, %v6552_v37 }
0x1fe8   : > { %6152 = vmatprep.subr.bf16.mxu1 %v6552_v37 }
0x1feb   : > { %6153 = vmatpush3.bf16.msra.mxu1 %v6388_v60 }
0x1fec   : > { %6164 = vmatprep.subr.bf16.mxu1 %v6552_v37 }
0x1fee   : > { %6155 = vmatmul.mubr.msk.bf16.vlgmr.msra.gmra.mrb[92].mxu1 %vm1088_vm1, %v7052_v26 }
0x1fef   : > { %6166 = vmatprep.mubr.msk.bf16.mxu1 %vm6553_vm3, %v6552_v37 }
0x20b1   : > { %v3994_v0 = vpop.f32.mrb[84].mxu1 }
0x20b2   : > { %v6126_v49 = vpop.f32.mrb[85].mxu1 }
0x20b3   : > { %v3997_v1 = vpop.f32.mrb[86].mxu1 }
0x20b4   : > { %v4001_v27 = vpack.c.bf16 %v3997_v1, %v3994_v0  ;;  %v6127_v30 = vpop.f32.mrb[87].mxu1 }
0x20b5   : > { %v5575_v30 = vld [vmem:[%s6629_s6 + $0x1c] sm:$0xf] }
0x20b6   : > { %6131 = vmatmul.mubr.msk.bf16.vlgmr.msra.gmra.mrb[88].mxu0 %vm1331_vm4, %v4001_v27 }
0x20b7   : > { %6143 = vmatpush3.bf16.msra.mxu0 %v6389_v3  ;;  %6146 = vmatprep.mubr.msk.bf16.mxu0 %vm6553_vm3, %v6552_v37 }
0x20b8   : > { %6144 = vmatprep.subr.bf16.mxu0 %v6552_v37 }
0x20b9   : > { %v4112_v7 = vpop.f32.mrb[88].mxu1 }
0x20ba   : > { %v6140_v9 = vpop.f32.mrb[89].mxu1  ;;  %v4113_v11 = vadd.f32 %v5551_v6, %v4112_v7 }
0x20bb   : > { %v4115_v10 = vpop.f32.mrb[90].mxu1  ;;  %6145 = vmatpush3.bf16.msra.mxu0 %v6390_v4  ;;  %v4382_v4 = vsel %vm1787_vm8, %v5575_v30, 0 }
0x20bc   : > { %v4116_v12 = vadd.f32 %v5551_v6, %v4115_v10  ;;  %v6141_v13 = vpop.f32.mrb[91].mxu1  ;;  %6158 = vmatprep.subr.bf16.mxu0 %v6552_v37 }
0x20be   : > { %v4251_v14 = vpack.c.bf16 %v4116_v12, %v4113_v11  ;;  %6147 = vmatmul.mubr.msk.bf16.vlgmr.msra.gmra.mrb[92].mxu0 %vm1088_vm1, %v7052_v26 }
0x20bf   : > { %6160 = vmatprep.mubr.msk.bf16.mxu0 %vm6553_vm3, %v6552_v37 }
0x20c1   : > { %v4244_v16 = vpop.f32.mrb[92].mxu1 }
0x20c2   : > { %v6156_v17 = vpop.f32.mrb[93].mxu1  ;;  %v4245_v20 = vadd.f32 %v5569_v15, %v4244_v16 }
0x20c3   : > { %v4247_v19 = vpop.f32.mrb[94].mxu1 }
0x20c4   : > { %v4248_v35 = vadd.f32 %v5569_v15, %v4247_v19  ;;  %v6157_v40 = vpop.f32.mrb[95].mxu1  ;;  %v5578_v15 = vld [vmem:[%s6634_s12 + $0x1] ss:$0 sm:$0xff] }
0x20c6   : > { %v4327_v22 = vpack.c.bf16 %v4248_v35, %v4245_v20 }
0x20c8   : > { %v4332_v23 = vsel %vm1412_vm5, %v4327_v22, 0 }
0x20c9   : > { %6165 = vmatpush3.bf16.msra.mxu1 %v4332_v23 }
0x20ca   : > { %6176 = vmatprep.subr.bf16.mxu1 %v6552_v37 }
0x2189   : > { %v4044_v24 = vpop.f32.mrb[88].mxu0 }
0x218a   : > { %v7241_v26 = vadd.f32 %v4044_v24, %v7186_v2  ;;  %v6132_v25 = vpop.f32.mrb[89].mxu0 }
0x218b   : > { %v4047_v28 = vpop.f32.mrb[90].mxu0 }
0x218c   : > { %v7244_v29 = vadd.f32 %v4047_v28, %v7188_v51  ;;  %v6133_v31 = vpop.f32.mrb[91].mxu0 }
0x2191   : > { %v4178_v33 = vpop.f32.mrb[92].mxu0 }
0x2192   : > { %v6148_v34 = vpop.f32.mrb[93].mxu0  ;;  %v4179_v38 = vadd.f32 %v5560_v32, %v4178_v33 }
0x2193   : > { %v4181_v36 = vpop.f32.mrb[94].mxu0 }
0x2194   : > { %v4182_v39 = vadd.f32 %v5560_v32, %v4181_v36  ;;  %v6149_v41 = vpop.f32.mrb[95].mxu0  ;;  %v6391_v36 = vld [vmem:[%s7386_s22 + $0x10] sm:$0xff]  }
0x2196   : > { %v4252_v42 = vpack.c.bf16 %v4182_v39, %v4179_v38  ;;  %v6392_v38 = vld [vmem:[%s7386_s22 + $0x18] sm:$0xff]  }
0x2198   : > { %v4257_v43 = vsel %vm1331_vm4, %v4252_v42, 0 }
0x2199   : > { %6159 = vmatpush3.bf16.xpose.msra.mxu0 %v4257_v43 }
0x219a   : > { %6170 = vmatprep.subr.bf16.mxu0 %v6552_v37 }
0x21a0   : > { %6161 = vmatmul.mubr.msk.bf16.vlgmr.msra.gmra.mrb[96].mxu0 %vm1331_vm4, %v4251_v14 }
0x21a1   : > { %6172 = vmatprep.mubr.msk.bf16.mxu0 %vm6553_vm3, %v6552_v37  ;;  %6171 = vmatpush3.bf16.msra.mxu0 %v4382_v4 }
0x21a2   : > { %6184 = vmatprep.subr.bf16.mxu0 %v6552_v37 }
0x2273   : > { %v4293_v2 = vpop.f32.mrb[96].mxu0 }
0x2274   : > { %v4300_v51 = vmul.f32 0.35355338, %v4293_v2  ;;  %v6162_v44 = vpop.f32.mrb[97].mxu0 }
0x2275   : > { %v4296_v45 = vpop.f32.mrb[98].mxu0 }
0x2276   : > { %v4301_v46 = vmul.f32 0.35355338, %v4296_v45  ;;  %v6163_v47 = vpop.f32.mrb[99].mxu0  ;;  %v4302_v48 = vadd.f32 %v7100_v5, %v4300_v51  ;;  %v5581_v45 = vld [vmem:[%s7387_s23 + $0x1] ss:$0 sm:$0xff] }
0x2278   : > { %v4304_v50 = vsel %vm1383_vm6, %v4302_v48, -inf  ;;  %v4303_v52 = vadd.f32 %v7105_v8, %v4301_v46 }
0x2279   : > { %4305 = vmax.xlane.f32.xlu0 %v4304_v50 }
0x227a   : > { %v4307_v53 = vsel %vm1387_vm7, %v4303_v52, -inf }
0x227b   : > { %4308 = vmax.xlane.f32.xlu1 %v4307_v53 }
0x2306   : > { %v4306_v18 = vpop.xlane.xlu0 %4305 }
0x2307   : > { %v4310_v58 = vsub.f32 %v4302_v48, %v4306_v18 }
0x2308   : > { %v4309_v54 = vpop.xlane.xlu1 %4308 }
0x2309   : > { %v4312_v55 = vmul.f32 1.442695, %v4310_v58  ;;  %v4311_v56 = vsub.f32 %v4303_v52, %v4309_v54  ;;  %v5582_v52 = vld [vmem:[%s7388_s26 + $0x1] ss:$0 sm:$0xff] }
0x230b   : > { %6483 = vpow2.f32 %v4312_v55  ;;  %v4314_v21 = vmul.f32 1.442695, %v4311_v56  ;;  %v6393_v55 = vld [vmem:[%s7389_s28 + $0x40] sm:$0xff]   ;;  %v6394_v56 = vld [vmem:[%s7389_s28 + $0x48] sm:$0xff]  }
0x230d   : > { %6485 = vpow2.f32 %v4314_v21  ;;  %v6395_v21 = vld [vmem:[%s7389_s28 + $0x50] sm:$0xff]  }
0x2315   : > { %v6484_v57 = vpop.eup %6483 }
0x2316   : > { %v4316_v60 = vsel %vm1383_vm6, %v6484_v57, 0.0 }
0x2317   : > { %v6486_v5 = vpop.eup %6485  ;;  %4317 = vadd.xlane.f32.xlu0 %v4316_v60  ;;  %v6397_v60 = vld [vmem:[%s7389_s28 + $0x60] sm:$0xff]  }
0x2318   : > { %v4319_v8 = vsel %vm1387_vm7, %v6486_v5, 0.0 }
0x2319   : > { %4320 = vadd.xlane.f32.xlu1 %v4319_v8  ;;  %v6399_v8 = vld [vmem:[%s7389_s28 + $0x70] sm:$0xff]  }
0x23a4   : > { %v4318_v61 = vpop.xlane.xlu0 %4317 }
0x23a5   : > { %6487 = vrcp.f32 %v4318_v61  ;;  %v6400_v61 = vld [vmem:[%s7389_s28 + $0x78] sm:$0xff]  }
0x23a6   : > { %v4321_v63 = vpop.xlane.xlu1 %4320 }
0x23a7   : > { %6489 = vrcp.f32 %v4321_v63  ;;  %v5588_v63 = vld [vmem:[%s7390_s1 + $0x1] ss:$0 sm:$0xff] }
0x23af   : > { %v6488_v0 = vpop.eup %6487 }
0x23b0   : > { %v4324_v1 = vmul.f32 %v6488_v0, %v6484_v57  ;;  %v6396_v57 = vld [vmem:[%s7389_s28 + $0x58] sm:$0xff]  }
0x23b1   : > { %v6490_v49 = vpop.eup %6489 }
0x23b2   : > { %v4325_v3 = vmul.f32 %v6490_v49, %v6486_v5  ;;  %v6398_v5 = vld [vmem:[%s7389_s28 + $0x68] sm:$0xff]  }
0x23b4   : > { %v4326_v27 = vpack.c.bf16 %v4325_v3, %v4324_v1 }
0x23b6   : > { %6167 = vmatmul.mubr.msk.bf16.vlgmr.msra.gmra.mrb[96].mxu1 %vm1383_vm6, %v4326_v27 }
0x23b7   : > { %6180 = vmatprep.mubr.msk.bf16.mxu1 %vm6553_vm3, %v6552_v37  ;;  %6177 = vmatpush3.bf16.msra.mxu1 %v6391_v36 }
0x23b8   : > { %6178 = vmatprep.subr.bf16.mxu1 %v6552_v37 }
0x23bb   : > { %6179 = vmatpush3.bf16.msra.mxu1 %v6392_v38 }
0x2489   : > { %v4368_v6 = vpop.f32.mrb[96].mxu1 }
0x248a   : > { %v6168_v7 = vpop.f32.mrb[97].mxu1 }
0x248b   : > { %v4371_v9 = vpop.f32.mrb[98].mxu1 }
0x248c   : > { %v4375_v10 = vpack.c.bf16 %v4371_v9, %v4368_v6  ;;  %v6169_v11 = vpop.f32.mrb[99].mxu1 }
0x248e   : > { %6173 = vmatmul.mubr.msk.bf16.vlgmr.msra.gmra.mrb[100].mxu0 %vm1331_vm4, %v4375_v10 }
0x248f   : > { %6200 = vmatprep.mubr.msk.bf16.mxu0 %vm6553_vm3, %v6552_v37  ;;  %6185 = vmatpush3.bf16.msra.mxu0 %v6393_v55 }
0x2490   : > { %6186 = vmatprep.subr.bf16.mxu0 %v6552_v37 }
0x2493   : > { %6187 = vmatpush3.bf16.msra.mxu0 %v6394_v56 }
0x2494   : > { %6188 = vmatprep.subr.bf16.mxu0 %v6552_v37 }
0x2497   : > { %6189 = vmatpush3.bf16.msra.mxu0 %v6395_v21 }
0x2498   : > { %6190 = vmatprep.subr.bf16.mxu0 %v6552_v37 }
0x249b   : > { %6191 = vmatpush3.bf16.msra.mxu0 %v6396_v57 }
0x249c   : > { %6192 = vmatprep.subr.bf16.mxu0 %v6552_v37 }
0x249f   : > { %6193 = vmatpush3.bf16.msra.mxu0 %v6397_v60 }
0x24a0   : > { %6194 = vmatprep.subr.bf16.mxu0 %v6552_v37 }
0x24a3   : > { %6195 = vmatpush3.bf16.msra.mxu0 %v6398_v5  ;;  %v5618_v5 = vld [vmem:[%s7393_s10] ss:$0 sm:$0xff]  ;;  %s7397_s10 = sld [smem:[#allocation12_spill]] }
0x24a4   : > { %6196 = vmatprep.subr.bf16.mxu0 %v6552_v37 }
0x24a7   : > { %6197 = vmatpush3.bf16.msra.mxu0 %v6399_v8 }
0x24a8   : > { %6198 = vmatprep.subr.bf16.mxu0 %v6552_v37 }
0x24ab   : > { %6199 = vmatpush3.bf16.msra.mxu0 %v6400_v61 }
0x2561   : > { %v4418_v12 = vpop.f32.mrb[100].mxu0 }
0x2562   : > { %v4425_v13 = vadd.f32 %v4418_v12, %v7241_v26  ;;  %v6174_v14 = vpop.f32.mrb[101].mxu0 }
0x2563   : > { %v4421_v16 = vpop.f32.mrb[102].mxu0 }
0x2564   : > { %v4427_v17 = vadd.f32 %v4425_v13, %v7032_v59  ;;  %v4426_v19 = vadd.f32 %v4421_v16, %v7244_v29  ;;  %v6175_v20 = vpop.f32.mrb[103].mxu0 }
0x2566   : > { %v7271_v35 = vadd.f32 %v5578_v15, %v4427_v17  ;;  %v4428_v40 = vadd.f32 %v4426_v19, %v7035_v62 }
0x2568   : > { %v7274_v22 = vadd.f32 %v5578_v15, %v4428_v40  ;;  %v4443_v23 = vsel %vm1088_vm1, %v7271_v35, 0.0 }
0x2569   : > { %4444 = vadd.xlane.f32.xlu0 %v4443_v23 }
0x256a   : > { %v4446_v24 = vsel %vm1092_vm2, %v7274_v22, 0.0 }
0x256b   : > { %4447 = vadd.xlane.f32.xlu1 %v4446_v24 }
0x25f6   : > { %v4445_v59 = vpop.xlane.xlu0 %4444 }
0x25f7   : > { %v4449_v26 = vmul.f32 0.03125, %v4445_v59 }
0x25f8   : > { %v4448_v25 = vpop.xlane.xlu1 %4447 }
0x25f9   : > { %v4451_v28 = vsub.f32 %v7271_v35, %v4449_v26  ;;  %v4450_v29 = vmul.f32 0.03125, %v4448_v25 }
0x25fb   : > { %v4452_v62 = vsub.f32 %v7274_v22, %v4450_v29  ;;  %v4453_v31 = vmul.f32 %v4451_v28, %v4451_v28 }
0x25fd   : > { %v4455_v32 = vsel %vm1088_vm1, %v4453_v31, 0.0  ;;  %v4454_v33 = vmul.f32 %v4452_v62, %v4452_v62 }
0x25fe   : > { %4456 = vadd.xlane.f32.xlu0 %v4455_v32 }
0x25ff   : > { %v4458_v34 = vsel %vm1092_vm2, %v4454_v33, 0.0 }
0x2600   : > { %4459 = vadd.xlane.f32.xlu1 %v4458_v34 }
0x268b   : > { %v4457_v39 = vpop.xlane.xlu0 %4456 }
0x268c   : > { %v4461_v41 = vmul.f32 0.03125, %v4457_v39 }
0x268d   : > { %v4460_v42 = vpop.xlane.xlu1 %4459 }
0x268e   : > { %v4463_v43 = vadd.f32 1e-06, %v4461_v41  ;;  %v4462_v2 = vmul.f32 0.03125, %v4460_v42 }
0x2690   : > { %6491 = vrsqrt.f32 %v4463_v43  ;;  %v4464_v51 = vadd.f32 1e-06, %v4462_v2 }
0x2692   : > { %6493 = vrsqrt.f32 %v4464_v51 }
0x269a   : > { %v6492_v44 = vpop.eup %6491 }
0x269b   : > { %v4467_v46 = vmul.f32 %v6492_v44, %v4451_v28  ;;  %v5617_v28 = vld [vmem:[%s7391_s2 + $0x1] ss:$0 sm:$0xff] }
0x269c   : > { %v6494_v47 = vpop.eup %6493 }
0x269d   : > { %v4475_v48 = vmul.f32 %v5581_v45, %v4467_v46  ;;  %v4468_v50 = vmul.f32 %v6494_v47, %v4452_v62  ;;  %v4736_v47 = vld [vmem:[%s7392_s7] sm:$0xff] }
0x269f   : > { %v4476_v53 = vmul.f32 %v5581_v45, %v4468_v50  ;;  %v4483_v18 = vadd.f32 %v5582_v52, %v4475_v48  ;;  %v4737_v48 = vld [vmem:[%s7392_s7 + $0x8] sm:$0xff] }
0x26a0   : > { %v6257_v50 = vpack.c.bf16 %v4737_v48, %v4736_v47 }
0x26a1   : > { %v4484_v58 = vadd.f32 %v5582_v52, %v4476_v53  ;;  %v4738_v52 = vld [vmem:[%s7392_s7 + $0x10] sm:$0xff]  ;;  %v4739_v53 = vld [vmem:[%s7392_s7 + $0x18] sm:$0xff] }
0x26a2   : > { %6258 = vmatprep.subr.bf16.mxu0 %v6257_v50 }
0x26a3   : > { %v4490_v54 = vpack.c.bf16 %v4484_v58, %v4483_v18  ;;  %v6261_v18 = vpack.c.bf16 %v4739_v53, %v4738_v52  ;;  %v5626_v52 = vld [vmem:[%s7397_s10] ss:$0 sm:$0xff] }
0x26a5   : > { %6181 = vmatmul.mubr.msk.bf16.vlgmr.msra.gmra.mrb[100].mxu1 %vm1088_vm1, %v4490_v54 }
0x26a6   : > { %6219 = vmatprep.mubr.msk.f32.mxu1 %vm6553_vm3, %v6552_v37 }
0x2778   : > { %v4548_v0 = vpop.f32.mrb[100].mxu1 }
0x2779   : > { %v4549_v49 = vadd.f32 %v5588_v63, %v4548_v0  ;;  %v6182_v1 = vpop.f32.mrb[101].mxu1 }
0x277a   : > { %v4551_v3 = vpop.f32.mrb[102].mxu1 }
0x277b   : > { %v4555_v27 = vmul.f32 %v4549_v49, %v4549_v49  ;;  %v4552_v30 = vadd.f32 %v5588_v63, %v4551_v3  ;;  %v6183_v4 = vpop.f32.mrb[103].mxu1  ;;  %v5619_v63 = vld [vmem:[%s7394_s11] ss:$0 sm:$0xff]  ;;  %s7398_s11 = sld [smem:[#allocation13_spill]] }
0x277d   : > { %v4557_v6 = vmul.f32 %v4555_v27, %v4549_v49  ;;  %v4556_v7 = vmul.f32 %v4552_v30, %v4552_v30 }
0x277f   : > { %v4559_v9 = vmul.f32 0.044715, %v4557_v6  ;;  %v4558_v10 = vmul.f32 %v4556_v7, %v4552_v30 }
0x2781   : > { %v4561_v11 = vadd.f32 %v4559_v9, %v4549_v49  ;;  %v4560_v12 = vmul.f32 0.044715, %v4558_v10 }
0x2783   : > { %v4563_v13 = vmul.f32 0.7978846, %v4561_v11  ;;  %v4562_v14 = vadd.f32 %v4560_v12, %v4552_v30 }
0x2785   : > { %6495 = vtanh.f32 %v4563_v13  ;;  %v4564_v15 = vmul.f32 0.7978846, %v4562_v14 }
0x2787   : > { %6497 = vtanh.f32 %v4564_v15 }
0x278f   : > { %v6496_v16 = vpop.eup %6495 }
0x2790   : > { %v4567_v17 = vadd.f32 1.0, %v6496_v16 }
0x2791   : > { %v6498_v19 = vpop.eup %6497 }
0x2792   : > { %v4569_v20 = vmul.f32 0.5, %v4567_v17  ;;  %v4568_v40 = vadd.f32 1.0, %v6498_v19 }
0x2794   : > { %v4570_v23 = vmul.f32 0.5, %v4568_v40  ;;  %v4571_v24 = vmul.f32 %v4569_v20, %v4549_v49 }
0x2796   : > { %v4572_v59 = vmul.f32 %v4570_v23, %v4552_v30 }
0x2798   : > { %v4590_v26 = vpack.c.bf16 %v4572_v59, %v4571_v24  ;;  %v6554_v59 = vmov 0.0|0.0  }
0x2799   : > { %6265 = vmatprep.subr.bf16.mxu1 %v6554_v59 }
0x279a   : > { %6201 = vmatmul.mubr.bf16.vlgmr.msra.gmra.mrb[104].mxu0 %v4590_v26 }
0x279b   : > { %6260 = vmatpush3.bf16.msra.mxu0 %v6257_v50 }
0x279c   : > { %6262 = vmatprep.subr.bf16.mxu0 %v6261_v18 }
0x279f   : > { %6264 = vmatpush3.bf16.msra.mxu0 %v6261_v18  ;;  %v5627_v18 = vld [vmem:[%s7398_s11] ss:$0 sm:$0xff] }
0x286d   : > { %v4673_v25 = vpop.f32.mrb[104].mxu0 }
0x286e   : > { %v4680_v29 = vadd.f32 %v4673_v25, %v7271_v35  ;;  %v6202_v62 = vpop.f32.mrb[105].mxu0 }
0x286f   : > { %v4676_v31 = vpop.f32.mrb[106].mxu0 }
0x2870   : > { %v4681_v32 = vadd.f32 %v4676_v31, %v7274_v22  ;;  %v6203_v33 = vpop.f32.mrb[107].mxu0  ;;  %v4690_v34 = vadd.f32 %v5617_v28, %v4680_v29  ;;  %v4838_v31 = vld [vmem:[%s7395_s0] sm:$0x3]  ;;  %s5307_s0 = sshll.u32 %s7400_s16, 1 }
0x2871   : > { %s928_s10 = scalar_lea.vmem %s6714_s21, %s5307_s0 }
0x2872   : > { %v4694_v36 = vsel %vm1088_vm1, %v4690_v34, 0.0  ;;  %v4691_v38 = vadd.f32 %v5617_v28, %v4681_v32 }
0x2873   : > { %4695 = vadd.xlane.f32.xlu0 %v4694_v36 }
0x2874   : > { %v4697_v39 = vsel %vm1092_vm2, %v4691_v38, 0.0 }
0x2875   : > { %4698 = vadd.xlane.f32.xlu1 %v4697_v39 }
0x2900   : > { %v4696_v41 = vpop.xlane.xlu0 %4695 }
0x2901   : > { %v4700_v42 = vmul.f32 0.03125, %v4696_v41 }
0x2902   : > { %v4699_v43 = vpop.xlane.xlu1 %4698 }
0x2903   : > { %v4702_v35 = vsub.f32 %v4690_v34, %v4700_v42  ;;  %v4701_v2 = vmul.f32 0.03125, %v4699_v43 }
0x2905   : > { %v4703_v51 = vsub.f32 %v4691_v38, %v4701_v2  ;;  %v4704_v22 = vmul.f32 %v4702_v35, %v4702_v35 }
0x2907   : > { %v4706_v44 = vsel %vm1088_vm1, %v4704_v22, 0.0  ;;  %v4705_v45 = vmul.f32 %v4703_v51, %v4703_v51 }
0x2908   : > { %4707 = vadd.xlane.f32.xlu0 %v4706_v44  ;;  %v6401_v44 = vld [vmem:[%s7396_s18] sm:$0xff]  }
0x2909   : > { %v4709_v46 = vsel %vm1092_vm2, %v4705_v45, 0.0  ;;  %v6402_v45 = vld [vmem:[%s7396_s18 + $0x8] sm:$0xff]  }
0x290a   : > { %4710 = vadd.xlane.f32.xlu1 %v4709_v46 }
0x2995   : > { %v4708_v58 = vpop.xlane.xlu0 %4707 }
0x2996   : > { %v4712_v54 = vmul.f32 0.03125, %v4708_v58 }
0x2997   : > { %v4711_v55 = vpop.xlane.xlu1 %4710 }
0x2998   : > { %v4714_v56 = vadd.f32 1e-06, %v4712_v54  ;;  %v4713_v21 = vmul.f32 0.03125, %v4711_v55  ;;  %v6403_v55 = vld [vmem:[%s6704_s27] sm:$0xff]  }
0x299a   : > { %6499 = vrsqrt.f32 %v4714_v56  ;;  %v4715_v57 = vadd.f32 1e-06, %v4713_v21  ;;  %v6404_v21 = vld [vmem:[%s6704_s27 + $0x8] sm:$0xff]  }
0x299c   : > { %6501 = vrsqrt.f32 %v4715_v57  ;;  %v6405_v57 = vld [vmem:[%s6704_s27 + $0x10] sm:$0xff]  }
0x29a4   : > { %v6500_v60 = vpop.eup %6499 }
0x29a5   : > { %v4718_v8 = vmul.f32 %v6500_v60, %v4702_v35  ;;  %v6406_v60 = vld [vmem:[%s6704_s27 + $0x18] sm:$0xff]  }
0x29a6   : > { %v6502_v61 = vpop.eup %6501 }
0x29a7   : > { %v4719_v0 = vmul.f32 %v6502_v61, %v4703_v51  ;;  %v4726_v49 = vmul.f32 %v5618_v5, %v4718_v8  ;;  %v6408_v8 = vld [vmem:[%s6704_s27 + $0x28] sm:$0xff]   ;;  %v6409_v61 = vld [vmem:[%s6704_s27 + $0x30] sm:$0xff]  }
0x29a9   : > { %v4727_v1 = vmul.f32 %v5618_v5, %v4719_v0  ;;  %v4734_v3 = vadd.f32 %v5619_v63, %v4726_v49  ;;  %v6407_v5 = vld [vmem:[%s6704_s27 + $0x20] sm:$0xff]  }
0x29aa   : > { %v5628_v0 = vld [vmem:[%s6699_s20] ss:$0 sm:$0xff] }
0x29ab   : > { %v4735_v27 = vadd.f32 %v5619_v63, %v4727_v1  ;;  %6212 = vmatprep.mubr.msk.f32.mxu0 %vm1088_vm1, %v4734_v3  ;;  %v6410_v63 = vld [vmem:[%s6704_s27 + $0x38] sm:$0xff]  }
0x29ad   : > { %6213 = vmatmul.mubr.msk.f32.vlgmr.msra.gmra.mrb[108].mxu0 %vm1088_vm1, %v4735_v27 }
0x2a80   : > { %v6214_v30 = vpop.f32.mrb[108].mxu0 }
0x2a81   : > { %v4824_v4 = vsel %vm4823_vm9, %v6214_v30, -inf  ;;  %v4812_v6 = vpop.f32.mrb[109].mxu0 }
0x2a82   : > { %v4822_v7 = vsel %vm4821_vm10, %v4812_v6, -inf }
0x2a83   : > { %v4825_v9 = vmax.f32 %v4822_v7, %v4824_v4  ;;  %v5632_v7 = vld [vmem:[%s6709_s4] ss:$0 sm:$0xff] }
0x2a85   : > { %v4826_v10 = vrot.slane %v4825_v9, 4 }
0x2a87   : > { %v4827_v11 = vmax.f32 %v4825_v9, %v4826_v10 }
0x2a89   : > { %v4828_v12 = vrot.slane %v4827_v11, 2 }
0x2a8b   : > { %v4829_v13 = vmax.f32 %v4827_v11, %v4828_v12 }
0x2a8d   : > { %v4830_v14 = vrot.slane %v4829_v13, 1 }
0x2a8f   : > { %v4831_v15 = vmax.f32 %v4829_v13, %v4830_v14 }
0x2a91   : > { %v4832_v16 = vsub.f32 %v4812_v6, %v4831_v15  ;;  %v4833_v17 = vsub.f32 %v6214_v30, %v4831_v15 }
0x2a93   : > { %v4834_v19 = vmul.f32 1.442695, %v4832_v16  ;;  %v4836_v20 = vmul.f32 1.442695, %v4833_v17 }
0x2a95   : > { %6503 = vpow2.f32 %v4834_v19 }
0x2a96   : > { %6505 = vpow2.f32 %v4836_v20 }
0x2a9f   : > { %v6504_v40 = vpop.eup %6503 }
0x2aa0   : > { %v6506_v23 = vpop.eup %6505  ;;  %4841 = vperm.xlu0 %6316, %v6504_v40  }
0x2aa1   : > { %4846 = vperm.xlu1 %6317, %v6506_v23   ;;  %v6270_v24 = vpack.c.bf16 %v6506_v23, %v6504_v40 }
0x2b1f   : > { %v4842_v26 = vpop.permute.xlu0 %4841 }
0x2b20   : > { %v4847_v25 = vpop.permute.xlu1 %4846  ;;  %v4849_v28 = vmul.f32 %v4842_v26, %v4734_v3 }
0x2b21   : > { %v4850_v29 = vmul.f32 %v4847_v25, %v4735_v27 }
0x2b23   : > { %v6266_v62 = vpack.c.bf16 %v4850_v29, %v4849_v28 }
0x2b25   : > { %6268 = vmatpush3.bf16.msk.msra.mxu1 %vm6267_vm13, %v6266_v62 }
0x2b26   : > { %6269 = vmatprep.subr.bf16.mxu1 %v6554_v59 }
0x2b28   : > { %6220 = vmatmul.mubr.msk.f32.vlgmr.msra.gmra.mrb[104].mxu1 %vm1383_vm6, %v4838_v31 }
0x2b29   : > { %6272 = vmatpush3.bf16.msk.msra.mxu1 %vm6267_vm13, %v6270_v24  ;;  %6226 = vmatprep.mubr.msk.f32.mxu1 %vm6553_vm3, %v6552_v37 }
0x2b2a   : > { %6229 = vmatprep.subr.bf16.mxu1 %v6552_v37 }
0x2b2c   : > { %6227 = vmatmul.mubr.msk.f32.vlgmr.msra.gmra.mrb[106].mxu1 %vm1383_vm6, %v4838_v31 }
0x2b2d   : > { %6233 = vmatprep.mubr.msk.bf16.mxu1 %vm6553_vm3, %v6552_v37  ;;  %6230 = vmatpush3.bf16.msra.mxu1 %v6401_v44 }
0x2b2e   : > { %6231 = vmatprep.subr.bf16.mxu1 %v6552_v37 }
0x2b31   : > { %6232 = vmatpush3.bf16.msra.mxu1 %v6402_v45 }
0x2b32   : > { %6237 = vmatprep.subr.bf16.mxu1 %v6552_v37 }
0x2bfb   : > { %v4924_v32 = vpop.f32.mrb[104].mxu1 }
0x2bfc   : > { %v6221_v33 = vpop.f32.mrb[105].mxu1 }
0x2bff   : > { %v4996_v34 = vpop.f32.mrb[106].mxu1 }
0x2c00   : > { %6507 = vrcp.f32 %v4996_v34  ;;  %v6228_v36 = vpop.f32.mrb[107].mxu1 }
0x2c0a   : > { %v6508_v38 = vpop.eup %6507 }
0x2c0b   : > { %5003 = vperm.xlu1 %6317, %v6508_v38  }
0x2c8a   : > { %v5004_v39 = vpop.permute.xlu1 %5003 }
0x2c8b   : > { %v5006_v41 = vmul.f32 %v5004_v39, %v4924_v32 }
0x2c8d   : > { %v5009_v42 = vsel %vm1092_vm2, %v5006_v41, 0.0 }
0x2c8e   : > { %5010 = vadd.xlane.f32.xlu1 %v5009_v42 }
0x2d1b   : > { %v5011_v43 = vpop.xlane.xlu1 %5010 }
0x2d1c   : > { %v5012_v35 = vmul.f32 0.03125, %v5011_v43 }
0x2d1e   : > { %v5013_v2 = vsub.f32 %v5006_v41, %v5012_v35 }
0x2d20   : > { %v5014_v51 = vmul.f32 %v5013_v2, %v5013_v2 }
0x2d22   : > { %v5015_v22 = vsel %vm1092_vm2, %v5014_v51, 0.0 }
0x2d23   : > { %5016 = vadd.xlane.f32.xlu0 %v5015_v22 }
0x2db0   : > { %v5017_v46 = vpop.xlane.xlu0 %5016 }
0x2db1   : > { %v5018_v47 = vmul.f32 0.03125, %v5017_v46 }
0x2db3   : > { %v5019_v48 = vadd.f32 1e-05, %v5018_v47 }
0x2db5   : > { %6509 = vrsqrt.f32 %v5019_v48 }
0x2dbf   : > { %v6510_v50 = vpop.eup %6509 }
0x2dc0   : > { %v5021_v53 = vmul.f32 %v6510_v50, %v5013_v2 }
0x2dc2   : > { %v5028_v58 = vmul.f32 %v5626_v52, %v5021_v53 }
0x2dc4   : > { %v5035_v54 = vadd.f32 %v5627_v18, %v5028_v58 }
0x2dc6   : > { %v5040_v56 = vpack.c.bf16 %v5035_v54, %v5035_v54 }
0x2dc8   : > { %6234 = vmatmul.mubr.msk.bf16.vlgmr.msra.gmra.mrb[108].mxu1 %vm1088_vm1, %v5040_v56 }
0x2dc9   : > { %6238 = vmatpush3.bf16.msra.mxu1 %v6403_v55  ;;  %6253 = vmatprep.mubr.msk.bf16.mxu1 %vm6553_vm3, %v6552_v37 }
0x2dca   : > { %6239 = vmatprep.subr.bf16.mxu1 %v6552_v37 }
0x2dcd   : > { %6240 = vmatpush3.bf16.msra.mxu1 %v6404_v21 }
0x2dce   : > { %6241 = vmatprep.subr.bf16.mxu1 %v6552_v37 }
0x2dd1   : > { %6242 = vmatpush3.bf16.msra.mxu1 %v6405_v57 }
0x2dd2   : > { %6243 = vmatprep.subr.bf16.mxu1 %v6552_v37 }
0x2dd5   : > { %6244 = vmatpush3.bf16.msra.mxu1 %v6406_v60 }
0x2dd6   : > { %6245 = vmatprep.subr.bf16.mxu1 %v6552_v37 }
0x2dd9   : > { %6246 = vmatpush3.bf16.msra.mxu1 %v6407_v5 }
0x2dda   : > { %6247 = vmatprep.subr.bf16.mxu1 %v6552_v37 }
0x2ddd   : > { %6248 = vmatpush3.bf16.msra.mxu1 %v6408_v8 }
0x2dde   : > { %6249 = vmatprep.subr.bf16.mxu1 %v6552_v37 }
0x2de1   : > { %6250 = vmatpush3.bf16.msra.mxu1 %v6409_v61 }
0x2de2   : > { %6251 = vmatprep.subr.bf16.mxu1 %v6552_v37 }
0x2de5   : > { %6252 = vmatpush3.bf16.msra.mxu1 %v6410_v63 }
0x2e9b   : > { %v5097_v49 = vpop.f32.mrb[108].mxu1 }
0x2e9c   : > { %v5098_v1 = vadd.f32 %v5628_v0, %v5097_v49  ;;  %v6235_v3 = vpop.f32.mrb[109].mxu1 }
0x2e9d   : > { %v5100_v27 = vpop.f32.mrb[110].mxu1 }
0x2e9e   : > { %v5103_v30 = vmax.f32 %v5098_v1, 0.0  ;;  %v6236_v4 = vpop.f32.mrb[111].mxu1 }
0x2ea0   : > { %v5120_v6 = vpack.c.bf16 %v5103_v30, %v5103_v30 }
0x2ea2   : > { %6254 = vmatmul.mubr.bf16.vlgmr.msra.gmra.mrb[112].mxu1 %v5120_v6 }
0x2f75   : > { %v5210_v9 = vpop.f32.mrb[112].mxu1 }
0x2f76   : > { %v5211_v10 = vadd.f32 %v5632_v7, %v5210_v9  ;;  %v6255_v11 = vpop.f32.mrb[113].mxu1 }
0x2f77   : > { %v5213_v12 = vpop.f32.mrb[114].mxu1 }
0x2f78   : > { %5216 = vst [vmem:[%s928_s10] sm:$0x3] %v5211_v10  ;;  %v6256_v37 = vpop.f32.mrb[115].mxu1 }
0x2f79 PF: > { %s71_s15 = sadd.s32 1, %s6519_s15  }
0x2f7a   : > { %p68_p4 = scmp.ge.s32.totalorder %s71_s15, 4  }
0x2f7c   :  { %70 = sbr.rel (!%p68_p4) target bundleno = 51 (0x33), region = 258 }

</bundles_post_ra>
